<compile_context>
chip_gen: v6e
topology: v6e:2x2x1
jax: 0.10.0
libtpu: 0.0.40
codegen_flags: <defaults>
</compile_context>

<pallas_src>
import functools

import jax
import jax.numpy as jnp
from jax.experimental import pallas as pl
from jax.experimental.pallas import tpu as pltpu


# ----------------------------------------------------------------------------
# Pallas kernel: fused (patches @ weight) + bias (+ ReLU)
# ----------------------------------------------------------------------------
def _matmul_bias_act_kernel(p_ref, w_ref, b_ref, o_ref, *, apply_relu):
    acc = jnp.dot(p_ref[...], w_ref[...], preferred_element_type=jnp.float32)
    acc = acc + b_ref[...]                       # (tm, Np) + (1, Np), f32
    if apply_relu:
        acc = jnp.maximum(acc, 0.0)
    o_ref[...] = acc.astype(o_ref.dtype)


def _pick_tm(M):
    """Largest tile dividing M; for big M force >=2 grid steps (v7x 2nd TC)."""
    if M < 256:
        return M
    cap = min(1024, M // 2)
    for t in (1024, 512, 256, 128, 64, 32, 16):
        if t <= cap and M % t == 0:
            return t
    return M


def pallas_matmul_bias_act(p, w, b, *, apply_relu, out_dtype):
    """p: (M, K) bf16, w: (K, Np) bf16 (Np multiple of 128), b: (Np,) f32."""
    M, K = p.shape
    Kw, Np = w.shape
    assert K == Kw and Np % 128 == 0 and b.shape == (Np,)
    tm = _pick_tm(M)

    kernel = functools.partial(_matmul_bias_act_kernel, apply_relu=apply_relu)
    return pl.pallas_call(
        kernel,
        out_shape=jax.ShapeDtypeStruct((M, Np), out_dtype),
        grid_spec=pltpu.PrefetchScalarGridSpec(
            num_scalar_prefetch=0,
            grid=(M // tm,),
            in_specs=[
                pl.BlockSpec((tm, K), lambda i: (i, 0)),
                pl.BlockSpec((K, Np), lambda i: (0, 0)),   # weight stays resident
                pl.BlockSpec((1, Np), lambda i: (0, 0)),
            ],
            out_specs=pl.BlockSpec((tm, Np), lambda i: (i, 0)),
        ),
        compiler_params=pltpu.CompilerParams(
            dimension_semantics=("parallel",)),
    )(p, w, b.reshape(1, Np))


# ----------------------------------------------------------------------------
# Parameter preparation (done once, outside the jitted forward).
# ----------------------------------------------------------------------------
def _round_up(x, m):
    return ((x + m - 1) // m) * m


def _subpixel_weight(wt, b):
    """ConvTranspose2d(k=4, s=2, p=1), PyTorch layout wt (Cin, Cout, 4, 4).

    Returns (W, bias) for the combined sub-pixel matmul:
      rows ordered (r, s, ci) over the 3x3 window of the 1-padded input,
      columns ordered (py, px, co) over the 4 output phases, lane-padded to 128.
    Phase (py,px), window offset (r,s) uses original-kernel tap
      ky = 2r - py, kx = 2s - px   (valid iff r-py in {0,1} and s-px in {0,1}),
    flipped:  wt[ci, co, 3-ky, 3-kx].
    """
    cin, cout, k, _ = wt.shape
    assert k == 4
    zero = jnp.zeros((cin, cout), wt.dtype)
    rows = []
    for r in range(3):
        for s in range(3):
            cols = []
            for py in range(2):
                for px in range(2):
                    if 0 <= r - py <= 1 and 0 <= s - px <= 1:
                        ky, kx = 2 * r - py, 2 * s - px
                        cols.append(wt[:, :, 3 - ky, 3 - kx])
                    else:
                        cols.append(zero)
            rows.append(jnp.concatenate(cols, axis=1))        # (Cin, 4*Cout)
    wall = jnp.concatenate(rows, axis=0)                      # (9*Cin, 4*Cout)
    ball = jnp.tile(b, 4)                                     # (4*Cout,)
    np_ = _round_up(4 * cout, 128)
    wall = jnp.pad(wall, ((0, 0), (0, np_ - 4 * cout)))
    ball = jnp.pad(ball, (0, np_ - 4 * cout))
    return wall.astype(jnp.bfloat16), ball.astype(jnp.float32)


def prepare_params(params):
    """params: list of (wt (Cin,Cout,4,4), b (Cout,)) in PyTorch layout."""
    w1, b1 = params[0]
    cin, cout, k, _ = w1.shape
    # layer 1 on a 1x1 map: out[n,ky,kx,co] = sum_ci z[n,ci]*wt[ci,co,ky,kx] + b[co]
    w1m = w1.transpose(0, 2, 3, 1).reshape(cin, k * k * cout).astype(jnp.bfloat16)
    b1m = jnp.tile(b1, k * k).astype(jnp.float32)             # (2048,) mult of 128
    rest = [_subpixel_weight(wt, b) for (wt, b) in params[1:]]
    return (w1m, b1m), rest


# ----------------------------------------------------------------------------
# Layer application (NHWC activations, bf16 between layers)
# ----------------------------------------------------------------------------
def _subpixel_conv_transpose(x, wall, ball, cout, *, apply_relu, out_dtype):
    """x: (N, H, W, Cin) NHWC -> (N, 2H, 2W, Cout) NHWC."""
    n, h, w, cin = x.shape
    xpad = jnp.pad(x, ((0, 0), (1, 1), (1, 1), (0, 0)))
    taps = [xpad[:, r:r + h, s:s + w, :] for r in range(3) for s in range(3)]
    p = jnp.stack(taps, axis=3).reshape(n * h * w, 9 * cin).astype(jnp.bfloat16)
    y = pallas_matmul_bias_act(p, wall, ball,
                               apply_relu=apply_relu, out_dtype=out_dtype)
    y = y[:, :4 * cout].reshape(n, h, w, 2, 2, cout)          # (.., py, px, co)
    y = y.transpose(0, 1, 3, 2, 4, 5).reshape(n, 2 * h, 2 * w, cout)  # pixel-shuffle
    return y


# ----------------------------------------------------------------------------
# GenNNSkeToImage forward: 26 -> 128 -> 64 -> 32 -> 16 -> 3 channels,
# spatial 1x1 -> 4x4 -> 8x8 -> 16x16 -> 32x32 -> 64x64.
# ----------------------------------------------------------------------------
_LAYER_CFG = [
    # (Cin, Cout, kernel, stride, padding, relu_after)
    (26, 128, 4, 1, 0, True),
    (128, 64, 4, 2, 1, True),
    (64, 32, 4, 2, 1, True),
    (32, 16, 4, 2, 1, True),
    (16, 3, 4, 2, 1, False),
]


def init_params(key):
    params = []
    for (cin, cout, k, _s, _p, _r) in _LAYER_CFG:
        key, kw, kb = jax.random.split(key, 3)
        fan = cin * k * k
        scale = 1.0 / jnp.sqrt(jnp.float32(fan))
        wt = jax.random.uniform(kw, (cin, cout, k, k), jnp.float32, -scale, scale)
        b = jax.random.uniform(kb, (cout,), jnp.float32, -scale, scale)
        params.append((wt, b))
    return params


@jax.jit
def gen_nn_ske_to_image(z, prepped):
    """z: (N, 26, 1, 1) NCHW -> (N, 3, 64, 64) NCHW."""
    (w1m, b1m), rest = prepped
    n = z.shape[0]
    c1_out = _LAYER_CFG[0][1]

    # layer 1: dense + ReLU, result directly NHWC (N, 4, 4, 128)
    z2 = z.reshape(n, -1).astype(jnp.bfloat16)
    y = pallas_matmul_bias_act(z2, w1m, b1m, apply_relu=True,
                               out_dtype=jnp.bfloat16)
    x = y.reshape(n, 4, 4, c1_out)

    couts = [cfg[1] for cfg in _LAYER_CFG[1:]]
    relus = [cfg[5] for cfg in _LAYER_CFG[1:]]
    for i, ((wall, ball), cout, relu) in enumerate(zip(rest, couts, relus)):
        last = (i == len(rest) - 1)
        x = _subpixel_conv_transpose(
            x, wall, ball, cout, apply_relu=relu,
            out_dtype=jnp.float32 if last else jnp.bfloat16)
    return x.transpose(0, 3, 1, 2)                            # NHWC -> NCHW once


# ----------------------------------------------------------------------------
# Pure-JAX f32 reference (zero-insert + im2col) for a sanity check.
# ----------------------------------------------------------------------------
def _ref_conv_transpose2d(x, wt, b, *, stride, padding, apply_relu):
    n, cin, h, w = x.shape
    _, cout, k, _ = wt.shape
    hu, wu = stride * (h - 1) + 1, stride * (w - 1) + 1
    xu = jnp.zeros((n, cin, hu, wu), x.dtype).at[:, :, ::stride, ::stride].set(x)
    pad = k - 1 - padding
    xp = jnp.pad(xu, ((0, 0), (0, 0), (pad, pad), (pad, pad)))
    hout = hu + 2 * pad - k + 1
    wout = wu + 2 * pad - k + 1
    wc = jnp.flip(wt, axis=(2, 3)).transpose(1, 0, 2, 3)      # (Cout, Cin, k, k)
    cols = [xp[:, :, ky:ky + hout, kx:kx + wout]
            for ky in range(k) for kx in range(k)]
    patches = jnp.stack(cols, axis=-1)
    patches = patches.transpose(0, 2, 3, 1, 4).reshape(n * hout * wout, cin * k * k)
    wmat = wc.transpose(1, 2, 3, 0).reshape(cin * k * k, cout)
    out = patches @ wmat + b
    if apply_relu:
        out = jnp.maximum(out, 0.0)
    return out.reshape(n, hout, wout, cout).transpose(0, 3, 1, 2)


def _ref_forward(z, params):
    x = z
    for (wt, b), (_ci, _co, _k, s, p, relu) in zip(params, _LAYER_CFG):
        x = _ref_conv_transpose2d(x, wt, b, stride=s, padding=p, apply_relu=relu)
    return x


if __name__ == "__main__":
    key = jax.random.PRNGKey(0)
    kz, kp = jax.random.split(key)

    batch = 2
    z = jax.random.normal(kz, (batch, 26, 1, 1), jnp.float32)
    params = init_params(kp)
    prepped = prepare_params(params)

    out = gen_nn_ske_to_image(z, prepped)
    out = jax.block_until_ready(out)

    assert out.shape == (batch, 3, 64, 64), out.shape
    assert out.dtype == jnp.float32
    assert bool(jnp.all(jnp.isfinite(out)))

    # Loose numerical sanity check vs. f32 reference (bf16 matmul inputs).
    ref = _ref_forward(z, params)
    scale = float(jnp.max(jnp.abs(ref)))
    err = float(jnp.max(jnp.abs(out - ref)))
    assert err <= 0.1 * scale + 1e-5, (err, scale)

    print("KERNEL_OK")
</pallas_src>

<mosaic_0001>
module attributes {stable_mosaic.version = 11 : i64} {
  func.func @_matmul_bias_act_kernel(%arg0: i32, %arg1: memref<2x26xbf16, #tpu.memory_space<vmem>>, %arg2: memref<26x2048xbf16, #tpu.memory_space<vmem>>, %arg3: memref<1x2048xf32, #tpu.memory_space<vmem>>, %arg4: memref<2x2048xbf16, #tpu.memory_space<vmem>>) attributes {dimension_semantics = [#tpu.dimension_semantics<parallel>], iteration_bounds = array<i64: 1>, scalar_prefetch = 0 : i64, scratch_operands = 0 : i64, tpu.core_type = #tpu.core_type<tc>, window_params = [{transform_indices = @transform_0, window_bounds = array<i64: 2, 26>}, {pipeline_mode = #tpu.pipeline_mode<synchronous>, transform_indices = @transform_1, window_bounds = array<i64: 26, 2048>}, {pipeline_mode = #tpu.pipeline_mode<synchronous>, transform_indices = @transform_2, window_bounds = array<i64: 1, 2048>}, {transform_indices = @transform_3, window_bounds = array<i64: 2, 2048>}]} {
    %c0 = arith.constant 0 : index
    %c0_0 = arith.constant 0 : index
    %0 = vector.load %arg1[%c0, %c0_0] : memref<2x26xbf16, #tpu.memory_space<vmem>>, vector<2x26xbf16>
    %c0_1 = arith.constant 0 : index
    %c0_2 = arith.constant 0 : index
    %1 = vector.load %arg2[%c0_1, %c0_2] : memref<26x2048xbf16, #tpu.memory_space<vmem>>, vector<26x2048xbf16>
    %cst = arith.constant dense<0.000000e+00> : vector<2x2048xf32>
    %2 = tpu.matmul %0, %1, %cst {dimension_numbers = #tpu.dot_dimension_numbers<[1], [0], [0], [1], [0, 0, 1, 1], [], []>} : vector<2x26xbf16>, vector<26x2048xbf16>, vector<2x2048xf32> -> vector<2x2048xf32>
    %c0_3 = arith.constant 0 : index
    %c0_4 = arith.constant 0 : index
    %3 = vector.load %arg3[%c0_3, %c0_4] : memref<1x2048xf32, #tpu.memory_space<vmem>>, vector<1x2048xf32>
    %4 = vector.broadcast %3 : vector<1x2048xf32> to vector<2x2048xf32>
    %5 = arith.addf %2, %4 : vector<2x2048xf32>
    %cst_5 = arith.constant 0.000000e+00 : f32
    %6 = vector.broadcast %cst_5 : f32 to vector<2x2048xf32>
    %7 = arith.maximumf %5, %6 : vector<2x2048xf32>
    %8 = arith.truncf %7 : vector<2x2048xf32> to vector<2x2048xbf16>
    %c0_6 = arith.constant 0 : index
    %c0_7 = arith.constant 0 : index
    %9 = vector.load %arg4[%c0_6, %c0_7] : memref<2x2048xbf16, #tpu.memory_space<vmem>>, vector<2x2048xbf16>
    tpu.vector_store %arg4[%c0_6, %c0_7], %8 {strides = array<i32>} : memref<2x2048xbf16, #tpu.memory_space<vmem>>, vector<2x2048xbf16>,
    return
  }
  func.func @transform_0(%arg0: i32) -> (i32, i32) {
    %c0_i32 = arith.constant 0 : i32
    %c0_i32_0 = arith.constant 0 : i32
    return %arg0, %c0_i32 : i32, i32
  }
  func.func @transform_1(%arg0: i32) -> (i32, i32) {
    %c0_i32 = arith.constant 0 : i32
    %c0_i32_0 = arith.constant 0 : i32
    %c0_i32_1 = arith.constant 0 : i32
    return %c0_i32, %c0_i32_0 : i32, i32
  }
  func.func @transform_2(%arg0: i32) -> (i32, i32) {
    %c0_i32 = arith.constant 0 : i32
    %c0_i32_0 = arith.constant 0 : i32
    %c0_i32_1 = arith.constant 0 : i32
    return %c0_i32, %c0_i32_0 : i32, i32
  }
  func.func @transform_3(%arg0: i32) -> (i32, i32) {
    %c0_i32 = arith.constant 0 : i32
    %c0_i32_0 = arith.constant 0 : i32
    return %arg0, %c0_i32 : i32, i32
  }
}

module attributes {stable_mosaic.version = 11 : i64} {
  func.func @_matmul_bias_act_kernel(%arg0: i32, %arg1: memref<32x1152xbf16, #tpu.memory_space<vmem>>, %arg2: memref<1152x256xbf16, #tpu.memory_space<vmem>>, %arg3: memref<1x256xf32, #tpu.memory_space<vmem>>, %arg4: memref<32x256xbf16, #tpu.memory_space<vmem>>) attributes {dimension_semantics = [#tpu.dimension_semantics<parallel>], iteration_bounds = array<i64: 1>, scalar_prefetch = 0 : i64, scratch_operands = 0 : i64, tpu.core_type = #tpu.core_type<tc>, window_params = [{transform_indices = @transform_0, window_bounds = array<i64: 32, 1152>}, {pipeline_mode = #tpu.pipeline_mode<synchronous>, transform_indices = @transform_1, window_bounds = array<i64: 1152, 256>}, {pipeline_mode = #tpu.pipeline_mode<synchronous>, transform_indices = @transform_2, window_bounds = array<i64: 1, 256>}, {transform_indices = @transform_3, window_bounds = array<i64: 32, 256>}]} {
    %c0 = arith.constant 0 : index
    %c0_0 = arith.constant 0 : index
    %0 = vector.load %arg1[%c0, %c0_0] : memref<32x1152xbf16, #tpu.memory_space<vmem>>, vector<32x1152xbf16>
    %c0_1 = arith.constant 0 : index
    %c0_2 = arith.constant 0 : index
    %1 = vector.load %arg2[%c0_1, %c0_2] : memref<1152x256xbf16, #tpu.memory_space<vmem>>, vector<1152x256xbf16>
    %cst = arith.constant dense<0.000000e+00> : vector<32x256xf32>
    %2 = tpu.matmul %0, %1, %cst {dimension_numbers = #tpu.dot_dimension_numbers<[1], [0], [0], [1], [0, 0, 1, 1], [], []>} : vector<32x1152xbf16>, vector<1152x256xbf16>, vector<32x256xf32> -> vector<32x256xf32>
    %c0_3 = arith.constant 0 : index
    %c0_4 = arith.constant 0 : index
    %3 = vector.load %arg3[%c0_3, %c0_4] : memref<1x256xf32, #tpu.memory_space<vmem>>, vector<1x256xf32>
    %4 = vector.broadcast %3 : vector<1x256xf32> to vector<32x256xf32>
    %5 = arith.addf %2, %4 : vector<32x256xf32>
    %cst_5 = arith.constant 0.000000e+00 : f32
    %6 = vector.broadcast %cst_5 : f32 to vector<32x256xf32>
    %7 = arith.maximumf %5, %6 : vector<32x256xf32>
    %8 = arith.truncf %7 : vector<32x256xf32> to vector<32x256xbf16>
    %c0_6 = arith.constant 0 : index
    %c0_7 = arith.constant 0 : index
    %9 = vector.load %arg4[%c0_6, %c0_7] : memref<32x256xbf16, #tpu.memory_space<vmem>>, vector<32x256xbf16>
    tpu.vector_store %arg4[%c0_6, %c0_7], %8 {strides = array<i32>} : memref<32x256xbf16, #tpu.memory_space<vmem>>, vector<32x256xbf16>,
    return
  }
  func.func @transform_0(%arg0: i32) -> (i32, i32) {
    %c0_i32 = arith.constant 0 : i32
    %c0_i32_0 = arith.constant 0 : i32
    return %arg0, %c0_i32 : i32, i32
  }
  func.func @transform_1(%arg0: i32) -> (i32, i32) {
    %c0_i32 = arith.constant 0 : i32
    %c0_i32_0 = arith.constant 0 : i32
    %c0_i32_1 = arith.constant 0 : i32
    return %c0_i32, %c0_i32_0 : i32, i32
  }
  func.func @transform_2(%arg0: i32) -> (i32, i32) {
    %c0_i32 = arith.constant 0 : i32
    %c0_i32_0 = arith.constant 0 : i32
    %c0_i32_1 = arith.constant 0 : i32
    return %c0_i32, %c0_i32_0 : i32, i32
  }
  func.func @transform_3(%arg0: i32) -> (i32, i32) {
    %c0_i32 = arith.constant 0 : i32
    %c0_i32_0 = arith.constant 0 : i32
    return %arg0, %c0_i32 : i32, i32
  }
}

module attributes {stable_mosaic.version = 11 : i64} {
  func.func @_matmul_bias_act_kernel(%arg0: i32, %arg1: memref<128x576xbf16, #tpu.memory_space<vmem>>, %arg2: memref<576x128xbf16, #tpu.memory_space<vmem>>, %arg3: memref<1x128xf32, #tpu.memory_space<vmem>>, %arg4: memref<128x128xbf16, #tpu.memory_space<vmem>>) attributes {dimension_semantics = [#tpu.dimension_semantics<parallel>], iteration_bounds = array<i64: 1>, scalar_prefetch = 0 : i64, scratch_operands = 0 : i64, tpu.core_type = #tpu.core_type<tc>, window_params = [{transform_indices = @transform_0, window_bounds = array<i64: 128, 576>}, {pipeline_mode = #tpu.pipeline_mode<synchronous>, transform_indices = @transform_1, window_bounds = array<i64: 576, 128>}, {pipeline_mode = #tpu.pipeline_mode<synchronous>, transform_indices = @transform_2, window_bounds = array<i64: 1, 128>}, {transform_indices = @transform_3, window_bounds = array<i64: 128, 128>}]} {
    %c0 = arith.constant 0 : index
    %c0_0 = arith.constant 0 : index
    %0 = vector.load %arg1[%c0, %c0_0] : memref<128x576xbf16, #tpu.memory_space<vmem>>, vector<128x576xbf16>
    %c0_1 = arith.constant 0 : index
    %c0_2 = arith.constant 0 : index
    %1 = vector.load %arg2[%c0_1, %c0_2] : memref<576x128xbf16, #tpu.memory_space<vmem>>, vector<576x128xbf16>
    %cst = arith.constant dense<0.000000e+00> : vector<128x128xf32>
    %2 = tpu.matmul %0, %1, %cst {dimension_numbers = #tpu.dot_dimension_numbers<[1], [0], [0], [1], [0, 0, 1, 1], [], []>} : vector<128x576xbf16>, vector<576x128xbf16>, vector<128x128xf32> -> vector<128x128xf32>
    %c0_3 = arith.constant 0 : index
    %c0_4 = arith.constant 0 : index
    %3 = vector.load %arg3[%c0_3, %c0_4] : memref<1x128xf32, #tpu.memory_space<vmem>>, vector<1x128xf32>
    %4 = vector.broadcast %3 : vector<1x128xf32> to vector<128x128xf32>
    %5 = arith.addf %2, %4 : vector<128x128xf32>
    %cst_5 = arith.constant 0.000000e+00 : f32
    %6 = vector.broadcast %cst_5 : f32 to vector<128x128xf32>
    %7 = arith.maximumf %5, %6 : vector<128x128xf32>
    %8 = arith.truncf %7 : vector<128x128xf32> to vector<128x128xbf16>
    %c0_6 = arith.constant 0 : index
    %c0_7 = arith.constant 0 : index
    %9 = vector.load %arg4[%c0_6, %c0_7] : memref<128x128xbf16, #tpu.memory_space<vmem>>, vector<128x128xbf16>
    tpu.vector_store %arg4[%c0_6, %c0_7], %8 {strides = array<i32>} : memref<128x128xbf16, #tpu.memory_space<vmem>>, vector<128x128xbf16>,
    return
  }
  func.func @transform_0(%arg0: i32) -> (i32, i32) {
    %c0_i32 = arith.constant 0 : i32
    %c0_i32_0 = arith.constant 0 : i32
    return %arg0, %c0_i32 : i32, i32
  }
  func.func @transform_1(%arg0: i32) -> (i32, i32) {
    %c0_i32 = arith.constant 0 : i32
    %c0_i32_0 = arith.constant 0 : i32
    %c0_i32_1 = arith.constant 0 : i32
    return %c0_i32, %c0_i32_0 : i32, i32
  }
  func.func @transform_2(%arg0: i32) -> (i32, i32) {
    %c0_i32 = arith.constant 0 : i32
    %c0_i32_0 = arith.constant 0 : i32
    %c0_i32_1 = arith.constant 0 : i32
    return %c0_i32, %c0_i32_0 : i32, i32
  }
  func.func @transform_3(%arg0: i32) -> (i32, i32) {
    %c0_i32 = arith.constant 0 : i32
    %c0_i32_0 = arith.constant 0 : i32
    return %arg0, %c0_i32 : i32, i32
  }
}

module attributes {stable_mosaic.version = 11 : i64} {
  func.func @_matmul_bias_act_kernel(%arg0: i32, %arg1: memref<256x288xbf16, #tpu.memory_space<vmem>>, %arg2: memref<288x128xbf16, #tpu.memory_space<vmem>>, %arg3: memref<1x128xf32, #tpu.memory_space<vmem>>, %arg4: memref<256x128xbf16, #tpu.memory_space<vmem>>) attributes {dimension_semantics = [#tpu.dimension_semantics<parallel>], iteration_bounds = array<i64: 2>, scalar_prefetch = 0 : i64, scratch_operands = 0 : i64, tpu.core_type = #tpu.core_type<tc>, window_params = [{transform_indices = @transform_0, window_bounds = array<i64: 256, 288>}, {pipeline_mode = #tpu.pipeline_mode<synchronous>, transform_indices = @transform_1, window_bounds = array<i64: 288, 128>}, {pipeline_mode = #tpu.pipeline_mode<synchronous>, transform_indices = @transform_2, window_bounds = array<i64: 1, 128>}, {transform_indices = @transform_3, window_bounds = array<i64: 256, 128>}]} {
    %c0 = arith.constant 0 : index
    %c0_0 = arith.constant 0 : index
    %0 = vector.load %arg1[%c0, %c0_0] : memref<256x288xbf16, #tpu.memory_space<vmem>>, vector<256x288xbf16>
    %c0_1 = arith.constant 0 : index
    %c0_2 = arith.constant 0 : index
    %1 = vector.load %arg2[%c0_1, %c0_2] : memref<288x128xbf16, #tpu.memory_space<vmem>>, vector<288x128xbf16>
    %cst = arith.constant dense<0.000000e+00> : vector<256x128xf32>
    %2 = tpu.matmul %0, %1, %cst {dimension_numbers = #tpu.dot_dimension_numbers<[1], [0], [0], [1], [0, 0, 1, 1], [], []>} : vector<256x288xbf16>, vector<288x128xbf16>, vector<256x128xf32> -> vector<256x128xf32>
    %c0_3 = arith.constant 0 : index
    %c0_4 = arith.constant 0 : index
    %3 = vector.load %arg3[%c0_3, %c0_4] : memref<1x128xf32, #tpu.memory_space<vmem>>, vector<1x128xf32>
    %4 = vector.broadcast %3 : vector<1x128xf32> to vector<256x128xf32>
    %5 = arith.addf %2, %4 : vector<256x128xf32>
    %cst_5 = arith.constant 0.000000e+00 : f32
    %6 = vector.broadcast %cst_5 : f32 to vector<256x128xf32>
    %7 = arith.maximumf %5, %6 : vector<256x128xf32>
    %8 = arith.truncf %7 : vector<256x128xf32> to vector<256x128xbf16>
    %c0_6 = arith.constant 0 : index
    %c0_7 = arith.constant 0 : index
    %9 = vector.load %arg4[%c0_6, %c0_7] : memref<256x128xbf16, #tpu.memory_space<vmem>>, vector<256x128xbf16>
    tpu.vector_store %arg4[%c0_6, %c0_7], %8 {strides = array<i32>} : memref<256x128xbf16, #tpu.memory_space<vmem>>, vector<256x128xbf16>,
    return
  }
  func.func @transform_0(%arg0: i32) -> (i32, i32) {
    %c0_i32 = arith.constant 0 : i32
    %c0_i32_0 = arith.constant 0 : i32
    return %arg0, %c0_i32 : i32, i32
  }
  func.func @transform_1(%arg0: i32) -> (i32, i32) {
    %c0_i32 = arith.constant 0 : i32
    %c0_i32_0 = arith.constant 0 : i32
    %c0_i32_1 = arith.constant 0 : i32
    return %c0_i32, %c0_i32_0 : i32, i32
  }
  func.func @transform_2(%arg0: i32) -> (i32, i32) {
    %c0_i32 = arith.constant 0 : i32
    %c0_i32_0 = arith.constant 0 : i32
    %c0_i32_1 = arith.constant 0 : i32
    return %c0_i32, %c0_i32_0 : i32, i32
  }
  func.func @transform_3(%arg0: i32) -> (i32, i32) {
    %c0_i32 = arith.constant 0 : i32
    %c0_i32_0 = arith.constant 0 : i32
    return %arg0, %c0_i32 : i32, i32
  }
}

module attributes {stable_mosaic.version = 11 : i64} {
  func.func @_matmul_bias_act_kernel(%arg0: i32, %arg1: memref<1024x144xbf16, #tpu.memory_space<vmem>>, %arg2: memref<144x128xbf16, #tpu.memory_space<vmem>>, %arg3: memref<1x128xf32, #tpu.memory_space<vmem>>, %arg4: memref<1024x128xf32, #tpu.memory_space<vmem>>) attributes {dimension_semantics = [#tpu.dimension_semantics<parallel>], iteration_bounds = array<i64: 2>, scalar_prefetch = 0 : i64, scratch_operands = 0 : i64, tpu.core_type = #tpu.core_type<tc>, window_params = [{transform_indices = @transform_0, window_bounds = array<i64: 1024, 144>}, {pipeline_mode = #tpu.pipeline_mode<synchronous>, transform_indices = @transform_1, window_bounds = array<i64: 144, 128>}, {pipeline_mode = #tpu.pipeline_mode<synchronous>, transform_indices = @transform_2, window_bounds = array<i64: 1, 128>}, {transform_indices = @transform_3, window_bounds = array<i64: 1024, 128>}]} {
    %c0 = arith.constant 0 : index
    %c0_0 = arith.constant 0 : index
    %0 = vector.load %arg1[%c0, %c0_0] : memref<1024x144xbf16, #tpu.memory_space<vmem>>, vector<1024x144xbf16>
    %c0_1 = arith.constant 0 : index
    %c0_2 = arith.constant 0 : index
    %1 = vector.load %arg2[%c0_1, %c0_2] : memref<144x128xbf16, #tpu.memory_space<vmem>>, vector<144x128xbf16>
    %cst = arith.constant dense<0.000000e+00> : vector<1024x128xf32>
    %2 = tpu.matmul %0, %1, %cst {dimension_numbers = #tpu.dot_dimension_numbers<[1], [0], [0], [1], [0, 0, 1, 1], [], []>} : vector<1024x144xbf16>, vector<144x128xbf16>, vector<1024x128xf32> -> vector<1024x128xf32>
    %c0_3 = arith.constant 0 : index
    %c0_4 = arith.constant 0 : index
    %3 = vector.load %arg3[%c0_3, %c0_4] : memref<1x128xf32, #tpu.memory_space<vmem>>, vector<1x128xf32>
    %4 = vector.broadcast %3 : vector<1x128xf32> to vector<1024x128xf32>
    %5 = arith.addf %2, %4 : vector<1024x128xf32>
    %c0_5 = arith.constant 0 : index
    %c0_6 = arith.constant 0 : index
    %6 = vector.load %arg4[%c0_5, %c0_6] : memref<1024x128xf32, #tpu.memory_space<vmem>>, vector<1024x128xf32>
    tpu.vector_store %arg4[%c0_5, %c0_6], %5 {strides = array<i32>} : memref<1024x128xf32, #tpu.memory_space<vmem>>, vector<1024x128xf32>,
    return
  }
  func.func @transform_0(%arg0: i32) -> (i32, i32) {
    %c0_i32 = arith.constant 0 : i32
    %c0_i32_0 = arith.constant 0 : i32
    return %arg0, %c0_i32 : i32, i32
  }
  func.func @transform_1(%arg0: i32) -> (i32, i32) {
    %c0_i32 = arith.constant 0 : i32
    %c0_i32_0 = arith.constant 0 : i32
    %c0_i32_1 = arith.constant 0 : i32
    return %c0_i32, %c0_i32_0 : i32, i32
  }
  func.func @transform_2(%arg0: i32) -> (i32, i32) {
    %c0_i32 = arith.constant 0 : i32
    %c0_i32_0 = arith.constant 0 : i32
    %c0_i32_1 = arith.constant 0 : i32
    return %c0_i32, %c0_i32_0 : i32, i32
  }
  func.func @transform_3(%arg0: i32) -> (i32, i32) {
    %c0_i32 = arith.constant 0 : i32
    %c0_i32_0 = arith.constant 0 : i32
    return %arg0, %c0_i32 : i32, i32
  }
}

</mosaic_0001>

<bundles_post_ra>
// kernel: gen_nn_ske_to_image.5
= control target key start
LH: loop header
LB: loop body
LE: loop exit
PB: predicated region body
PF: predicated region fallthrough
CT: control target
= control target key end

     0   :  { %8 = vsyncpa [#allocation3], 0  ;;  %s1069_s0 = inlined_call_operand.vmem [shape: bf16[2,26], index: 0, kind: input, shape index: {}]   ;;  %s1070_s1 = inlined_call_operand.hbm [shape: bf16[26,2048], index: 1, kind: input, shape index: {}]   ;;  %s1071_s2 = inlined_call_operand.hbm [shape: f32[1,2048], index: 2, kind: input, shape index: {}]   ;;  %s1072_s3 = inlined_call_operand.vmem [shape: bf16[2,2048], index: 3, kind: output, shape index: {}]  }
   0x1   :  { %9 = vsyncpa [#allocation5], 0  ;;  %s945_s12 = smov [#allocation2]  }
   0x2   :  { %s17_s13 = sshll.u32 %s945_s12, 4  ;;  %s18_s13 = int_to_ptr.vmem [resolvable:$true] %s17_s13 }
   0x3   :  { %s909_s14 = scalar_lea.vmem %s18_s13, 4096  ;;  %p914_p1 = scmp.lt.s32.totalorder %s18_s13, %s18_s13 }
   0x4   :  { %p910_p0 = scmp.ne.s32.totalorder %s18_s13, %s909_s14  ;;  %p915_p2 = scmp.lt.s32.totalorder %s909_s14, %s909_s14 }
   0x6   :  { %p916_p3 = por %p915_p2, %p914_p1 }
   0x8   :  { %p917_p4 = pnand %p916_p3, %p910_p0 }
   0xa   :  { %920 = shalt.err (!%p917_p4)
}
   0xb   :  { %s946_s15 = smov 1024   ;;  %s947_s16 = smov 64  }
   0xc   :  { %23 = dma.hbm_to_vmem [thread:$0]  %s1070_s1, 4096, %s18_s13, [#allocation3], %s946_s15, %s946_s15, %s947_s16  }
   0xd   :  { %s948_s19 = smov [#allocation4]  }
   0xe   :  { %s30_s20 = sshll.u32 %s948_s19, 4  ;;  %s31_s20 = int_to_ptr.vmem [resolvable:$true] %s30_s20 }
   0xf   :  { %s929_s21 = scalar_lea.vmem %s31_s20, 256  ;;  %p934_p6 = scmp.lt.s32.totalorder %s31_s20, %s31_s20 }
  0x10   :  { %p930_p5 = scmp.ne.s32.totalorder %s31_s20, %s929_s21  ;;  %p935_p7 = scmp.lt.s32.totalorder %s929_s21, %s929_s21 }
  0x12   :  { %p936_p8 = por %p935_p7, %p934_p6 }
  0x14   :  { %p937_p9 = pnand %p936_p8, %p930_p5 }
  0x16   :  { %940 = shalt.err (!%p937_p9)
}
  0x17   :  { %33 = dma.hbm_to_vmem [thread:$0]  %s1071_s2, 256, %s31_s20, [#allocation5]  }
  0x18   :  { %941 = dma.done.wait [#allocation3], 4096  }
  0x19   :  { %942 = vsyncadd [#allocation3], 4294963200 }
  0x1a   :  { %943 = dma.done.wait [#allocation5], 256  }
  0x1b   :  { %944 = vsyncadd [#allocation5], 4294967040  ;;  %v949_v0 = vmov 0   ;;  %v58_v1 = vld [vmem:[#allocation2 + $0x80] sm:$0xff]  ;;  %vm306_vm0 = vcmask 1044480   ;;  %v59_v3 = vld [vmem:[#allocation2 + $0x88] sm:$0xff] }
  0x1c   :  { %387 = vmatprep.mubr.bf16.mxu0 %v949_v0  ;;  %428 = vmatprep.mubr.bf16.mxu1 %v949_v0  ;;  %v66_v2 = vld [vmem:[#allocation2 + $0xc0] sm:$0x11]  ;;  %v67_v5 = vld [vmem:[#allocation2 + $0xc8] sm:$0x11]  ;;  %v60_v16 = vld [vmem:[#allocation2 + $0x90] sm:$0xff]  ;;  %vm302_vm1 = vcmask 211968  }
  0x1d   :  { %v856_v4 = vcombine.high %v58_v1, %v66_v2  ;;  %v855_v6 = vcombine.low %v58_v1, %v66_v2  ;;  %v42_v7 = vld [vmem:[#allocation2] sm:$0xff]  ;;  %v858_v9 = vcombine.high %v59_v3, %v67_v5  ;;  %v857_v10 = vcombine.low %v59_v3, %v67_v5  ;;  %v43_v12 = vld [vmem:[#allocation2 + $0x8] sm:$0xff]  ;;  %v68_v17 = vld [vmem:[#allocation2 + $0xd0] sm:$0x11] }
  0x1e   :  { %v50_v8 = vld [vmem:[#allocation2 + $0x40] sm:$0xff]  ;;  %v51_v13 = vld [vmem:[#allocation2 + $0x48] sm:$0xff]  ;;  %v61_v18 = vld [vmem:[#allocation2 + $0x98] sm:$0xff]  ;;  %v860_v23 = vcombine.high %v60_v16, %v68_v17  ;;  %v859_v24 = vcombine.low %v60_v16, %v68_v17 }
  0x1f   :  { %v840_v11 = vcombine.high %v42_v7, %v50_v8  ;;  %871 = vmatprep.subr.msk.bf16.mxu0 %vm306_vm0, %v856_v4  ;;  %v308_v14 = vsel %vm306_vm0, %v855_v6, 0  ;;  %v842_v15 = vcombine.high %v43_v12, %v51_v13  ;;  %873 = vmatprep.subr.msk.bf16.mxu1 %vm306_vm0, %v858_v9  ;;  %v314_v19 = vsel %vm306_vm0, %v857_v10, 0  ;;  %v69_v21 = vld [vmem:[#allocation2 + $0xd8] sm:$0x11]  ;;  %v44_v27 = vld [vmem:[#allocation2 + $0x10] sm:$0xff]  ;;  %v62_v36 = vld [vmem:[#allocation2 + $0xa0] sm:$0xff] }
  0x20   :  { %368 = vmatpush1.bf16.msra.mxu0 %v308_v14  ;;  %v839_v20 = vcombine.low %v42_v7, %v50_v8  ;;  %409 = vmatpush1.bf16.msra.mxu1 %v314_v19  ;;  %v841_v22 = vcombine.low %v43_v12, %v51_v13  ;;  %v862_v25 = vcombine.high %v61_v18, %v69_v21  ;;  %v52_v28 = vld [vmem:[#allocation2 + $0x50] sm:$0xff]  ;;  %v45_v29 = vld [vmem:[#allocation2 + $0x18] sm:$0xff]  ;;  %v986_v31 = vld [vmem:[%s1069_s0] sm:$0x1]  ;;  %v320_v32 = vsel %vm306_vm0, %v859_v24, 0 }
  0x21   :  { %369 = vmatprep.subr.bf16.mxu0 %v840_v11  ;;  %410 = vmatprep.subr.bf16.mxu1 %v842_v15  ;;  %v861_v26 = vcombine.low %v61_v18, %v69_v21  ;;  %v53_v30 = vld [vmem:[#allocation2 + $0x58] sm:$0xff]  ;;  %v844_v33 = vcombine.high %v44_v27, %v52_v28  ;;  %v70_v37 = vld [vmem:[#allocation2 + $0xe0] sm:$0x11]  ;;  %v63_v38 = vld [vmem:[#allocation2 + $0xa8] sm:$0xff]  ;;  %v843_v40 = vcombine.low %v44_v27, %v52_v28  ;;  %v78_v11 = vlaneseq }
  0x22   :  { %v846_v35 = vcombine.high %v45_v29, %v53_v30  ;;  %v71_v39 = vld [vmem:[#allocation2 + $0xe8] sm:$0x11]  ;;  %v845_v41 = vcombine.low %v45_v29, %v53_v30  ;;  %v864_v42 = vcombine.high %v62_v36, %v70_v37  ;;  %v863_v43 = vcombine.low %v62_v36, %v70_v37  ;;  %v46_v46 = vld [vmem:[#allocation2 + $0x20] sm:$0xff]  ;;  %v64_v54 = vld [vmem:[#allocation2 + $0xb0] sm:$0xff] }
  0x23   :  { %v326_v34 = vsel %vm306_vm0, %v861_v26, 0  ;;  %v866_v44 = vcombine.high %v63_v38, %v71_v39  ;;  %v865_v45 = vcombine.low %v63_v38, %v71_v39  ;;  %v54_v47 = vld [vmem:[#allocation2 + $0x60] sm:$0xff]  ;;  %v47_v48 = vld [vmem:[#allocation2 + $0x28] sm:$0xff]  ;;  %v72_v55 = vld [vmem:[#allocation2 + $0xf0] sm:$0x11]  ;;  %v1022_v12 = vshrl.u32 %v78_v11, 7 }
  0x24   :  { %370 = vmatpush1.bf16.msra.mxu0 %v839_v20  ;;  %411 = vmatpush1.bf16.msra.mxu1 %v841_v22  ;;  %v55_v49 = vld [vmem:[#allocation2 + $0x68] sm:$0xff]  ;;  %v332_v50 = vsel %vm306_vm0, %v863_v43, 0  ;;  %v848_v51 = vcombine.high %v46_v46, %v54_v47  ;;  %v65_v56 = vld [vmem:[#allocation2 + $0xb8] sm:$0xff]  ;;  %v847_v58 = vcombine.low %v46_v46, %v54_v47  ;;  %v868_v60 = vcombine.high %v64_v54, %v72_v55  ;;  %v48_v1 = vld [vmem:[#allocation2 + $0x30] sm:$0xff] }
  0x25   :  { %875 = vmatprep.subr.msk.bf16.mxu0 %vm306_vm0, %v860_v23  ;;  %877 = vmatprep.subr.msk.bf16.mxu1 %vm306_vm0, %v862_v25  ;;  %v338_v52 = vsel %vm306_vm0, %v865_v45, 0  ;;  %v850_v53 = vcombine.high %v47_v48, %v55_v49  ;;  %v73_v57 = vld [vmem:[#allocation2 + $0xf8] sm:$0x11]  ;;  %v849_v59 = vcombine.low %v47_v48, %v55_v49  ;;  %v867_v61 = vcombine.low %v64_v54, %v72_v55  ;;  %v56_v2 = vld [vmem:[#allocation2 + $0x70] sm:$0xff] }
  0x26   :  { %v870_v62 = vcombine.high %v65_v56, %v73_v57  ;;  %v869_v63 = vcombine.low %v65_v56, %v73_v57  ;;  %v49_v3 = vld [vmem:[#allocation2 + $0x38] sm:$0xff]  ;;  %v852_v6 = vcombine.high %v48_v1, %v56_v2  ;;  %v851_v9 = vcombine.low %v48_v1, %v56_v2 }
  0x27   :  { %872 = vmatmul.mubr.msk.bf16.vlgmr.msra.gmra.mxu0 %vm302_vm1, %v986_v31  ;;  %874 = vmatmul.mubr.msk.bf16.vlgmr.msra.gmra.mxu1 %vm302_vm1, %v986_v31  ;;  %v57_v4 = vld [vmem:[#allocation2 + $0x78] sm:$0xff]  ;;  %v344_v5 = vsel %vm306_vm0, %v867_v61, 0  ;;  %v84_v13 = vsub.s32 1, %v1022_v12  ;;  %v80_v14 = vsub.s32 0, %v1022_v12  ;;  %v88_v15 = vsub.s32 2, %v1022_v12 }
  0x28   :  { %450 = vmatpush1.bf16.msra.mxu0 %v320_v32  ;;  %491 = vmatpush1.bf16.msra.mxu1 %v326_v34  ;;  %v350_v7 = vsel %vm306_vm0, %v869_v63, 0  ;;  %v854_v8 = vcombine.high %v49_v3, %v57_v4  ;;  %v853_v10 = vcombine.low %v49_v3, %v57_v4  ;;  %v92_v16 = vsub.s32 3, %v1022_v12  ;;  %v75_v63 = vld [vmem:[#allocation4 + $0x8] sm:$0xff] }
  0x29   :  { %451 = vmatprep.subr.bf16.mxu0 %v844_v33  ;;  %492 = vmatprep.subr.bf16.mxu1 %v846_v35  ;;  %v96_v23 = vsub.s32 4, %v1022_v12  ;;  %v950_v25 = vmov 1966171168   ;;  %v104_v27 = vsub.s32 6, %v1022_v12  ;;  %v100_v30 = vsub.s32 5, %v1022_v12 }
  0x2a   :  { %469 = vmatprep.mubr.bf16.mxu0 %v949_v0  ;;  %510 = vmatprep.mubr.bf16.mxu1 %v949_v0  ;;  %v736_v26 = vunpack.c.l.s4 %v950_v25  ;;  %v108_v35 = vsub.s32 7, %v1022_v12 }
  0x2c   :  { %452 = vmatpush1.bf16.msra.mxu0 %v843_v40  ;;  %493 = vmatpush1.bf16.msra.mxu1 %v845_v41  ;;  %v737_v39 = vunpack.c.0.s8 %v736_v26 }
  0x2d   :  { %879 = vmatprep.subr.msk.bf16.mxu0 %vm306_vm0, %v864_v42  ;;  %881 = vmatprep.subr.msk.bf16.mxu1 %vm306_vm0, %v866_v44 }
  0x2f   :  { %876 = vmatmul.mubr.msk.bf16.vlgmr.msra.gmra.mxu0 %vm302_vm1, %v986_v31  ;;  %878 = vmatmul.mubr.msk.bf16.vlgmr.msra.gmra.mxu1 %vm302_vm1, %v986_v31 }
  0x30   :  { %532 = vmatpush1.bf16.msra.mxu0 %v332_v50  ;;  %573 = vmatpush1.bf16.msra.mxu1 %v338_v52  ;;  %v1041_v52 = vsub.s32 %v737_v39, %v1022_v12  ;;  %v133_v39 = vrot.slane %v75_v63, %v100_v30 }
  0x31   :  { %533 = vmatprep.subr.bf16.mxu0 %v848_v51  ;;  %574 = vmatprep.subr.bf16.mxu1 %v850_v53 }
  0x32   :  { %551 = vmatprep.mubr.bf16.mxu0 %v949_v0  ;;  %592 = vmatprep.mubr.bf16.mxu1 %v949_v0 }
  0x34   :  { %534 = vmatpush1.bf16.msra.mxu0 %v847_v58  ;;  %575 = vmatpush1.bf16.msra.mxu1 %v849_v59 }
  0x35   :  { %883 = vmatprep.subr.msk.bf16.mxu0 %vm306_vm0, %v868_v60  ;;  %885 = vmatprep.subr.msk.bf16.mxu1 %vm306_vm0, %v870_v62 }
  0x37   :  { %880 = vmatmul.mubr.msk.bf16.vlgmr.msra.gmra.mxu0 %vm302_vm1, %v986_v31  ;;  %882 = vmatmul.mubr.msk.bf16.vlgmr.msra.gmra.mxu1 %vm302_vm1, %v986_v31 }
  0x38   :  { %614 = vmatpush1.bf16.msra.mxu0 %v344_v5  ;;  %655 = vmatpush1.bf16.msra.mxu1 %v350_v7 }
  0x39   :  { %615 = vmatprep.subr.bf16.mxu0 %v852_v6  ;;  %656 = vmatprep.subr.bf16.mxu1 %v854_v8  ;;  %v117_v8 = vrot.slane %v75_v63, %v84_v13 }
  0x3a   :  { %633 = vmatprep.mubr.bf16.mxu0 %v949_v0  ;;  %674 = vmatprep.mubr.bf16.mxu1 %v949_v0  ;;  %v74_v0 = vld [vmem:[#allocation4] sm:$0xff] }
  0x3b   :  { %v85_v17 = vrot.slane %v74_v0, %v84_v13  ;;  %v81_v18 = vrot.slane %v74_v0, %v80_v14  ;;  %v89_v20 = vrot.slane %v74_v0, %v88_v15  ;;  %v93_v21 = vrot.slane %v74_v0, %v92_v16 }
  0x3c   :  { %616 = vmatpush1.bf16.msra.mxu0 %v851_v9  ;;  %657 = vmatpush1.bf16.msra.mxu1 %v853_v10  ;;  %v97_v37 = vrot.slane %v74_v0, %v96_v23  ;;  %v105_v42 = vrot.slane %v74_v0, %v104_v27  ;;  %v101_v44 = vrot.slane %v74_v0, %v100_v30 }
  0x3d   :  { %v109_v48 = vrot.slane %v74_v0, %v108_v35  ;;  %v113_v10 = vrot.slane %v75_v63, %v80_v14  ;;  %v121_v0 = vrot.slane %v75_v63, %v88_v15  ;;  %v129_v14 = vrot.slane %v75_v63, %v96_v23 }
  0x3e   :  { %v137_v15 = vrot.slane %v75_v63, %v104_v27  ;;  %v141_v23 = vrot.slane %v75_v63, %v108_v35 }
  0x3f   :  { %884 = vmatmul.mubr.msk.bf16.vlgmr.msra.gmra.mxu0 %vm302_vm1, %v986_v31  ;;  %886 = vmatmul.mubr.msk.bf16.vlgmr.msra.gmra.mxu1 %vm302_vm1, %v986_v31 }
  0xe7   :  { %v389_v19 = vpop.f32.mrf.mxu0  ;;  %v430_v22 = vpop.f32.mrf.mxu1 }
  0xe8   :  { %v390_v31 = vadd.f32 %v389_v19, %v81_v18  ;;  %v431_v32 = vadd.f32 %v430_v22, %v89_v20 }
  0xe9   :  { %v391_v24 = vpop.f32.mrf.mxu0  ;;  %v432_v29 = vpop.f32.mrf.mxu1 }
  0xea   :  { %v392_v28 = vadd.f32 %v391_v24, %v85_v17  ;;  %v433_v33 = vadd.f32 %v432_v29, %v93_v21  ;;  %v683_v45 = vmax.f32 %v390_v31, 0.0  ;;  %v685_v46 = vmax.f32 %v431_v32, 0.0 }
  0xeb   :  { %v393_v34 = vpop.f32.mrf.mxu0  ;;  %v434_v36 = vpop.f32.mrf.mxu1  ;;  %v125_v17 = vrot.slane %v75_v63, %v92_v16 }
  0xec   :  { %v684_v38 = vmax.f32 %v392_v28, 0.0  ;;  %v686_v40 = vmax.f32 %v433_v33, 0.0 }
  0xed   :  { %v394_v41 = vpop.f32.mrf.mxu0  ;;  %v435_v43 = vpop.f32.mrf.mxu1 }
  0xee   :  { %v887_v51 = vpack.c.bf16 %v684_v38, %v683_v45  ;;  %v888_v53 = vpack.c.bf16 %v686_v40, %v685_v46 }
  0xef   :  { %v471_v47 = vpop.f32.mrf.mxu0  ;;  %v512_v50 = vpop.f32.mrf.mxu1 }
  0xf0   :  { %v472_v49 = vadd.f32 %v471_v47, %v97_v37  ;;  %v513_v54 = vadd.f32 %v512_v50, %v105_v42  ;;  %v741_v1 = vrot.slane %v887_v51, %v1041_v52  ;;  %v748_v2 = vrot.slane %v888_v53, %v1041_v52 }
  0xf1   :  { %v473_v55 = vpop.f32.mrf.mxu0  ;;  %v514_v57 = vpop.f32.mrf.mxu1 }
  0xf2   :  { %v474_v56 = vadd.f32 %v473_v55, %v101_v44  ;;  %v515_v58 = vadd.f32 %v514_v57, %v109_v48  ;;  %v687_v60 = vmax.f32 %v472_v49, 0.0  ;;  %v689_v3 = vmax.f32 %v513_v54, 0.0 }
  0xf3   :  { %v475_v59 = vpop.f32.mrf.mxu0  ;;  %v516_v62 = vpop.f32.mrf.mxu1  ;;  %v763_v20 = vcombine.low %v741_v1, %v748_v2 }
  0xf4   :  { %v688_v61 = vmax.f32 %v474_v56, 0.0  ;;  %v690_v4 = vmax.f32 %v515_v58, 0.0 }
  0xf5   :  { %v476_v5 = vpop.f32.mrf.mxu0  ;;  %v517_v7 = vpop.f32.mrf.mxu1  ;;  %v771_v16 = vrot.slane %v763_v20, %v1041_v52 }
  0xf6   :  { %v889_v6 = vpack.c.bf16 %v688_v61, %v687_v60  ;;  %v890_v9 = vpack.c.bf16 %v690_v4, %v689_v3 }
  0xf7   :  { %v553_v11 = vpop.f32.mrf.mxu0  ;;  %v594_v19 = vpop.f32.mrf.mxu1 }
  0xf8   :  { %v755_v18 = vrot.slane %v889_v6, %v1041_v52  ;;  %v762_v21 = vrot.slane %v890_v9, %v1041_v52  ;;  %v554_v28 = vadd.f32 %v553_v11, %v113_v10  ;;  %v595_v29 = vadd.f32 %v594_v19, %v121_v0 }
  0xf9   :  { %v555_v22 = vpop.f32.mrf.mxu0  ;;  %v596_v25 = vpop.f32.mrf.mxu1 }
  0xfa   :  { %v556_v24 = vadd.f32 %v555_v22, %v117_v8  ;;  %v764_v26 = vcombine.low %v755_v18, %v762_v21  ;;  %v597_v31 = vadd.f32 %v596_v25, %v125_v17  ;;  %v691_v41 = vmax.f32 %v554_v28, 0.0 }
  0xfb   :  { %v557_v32 = vpop.f32.mrf.mxu0  ;;  %v598_v13 = vpop.f32.mrf.mxu1  ;;  %v693_v42 = vmax.f32 %v595_v29, 0.0 }
  0xfc   :  { %v778_v33 = vrot.slane %v764_v26, %v1041_v52  ;;  %v692_v34 = vmax.f32 %v556_v24, 0.0  ;;  %v694_v36 = vmax.f32 %v597_v31, 0.0 }
  0xfd   :  { %v558_v37 = vpop.f32.mrf.mxu0  ;;  %v599_v38 = vpop.f32.mrf.mxu1 }
  0xfe   :  { %v779_v40 = vcombine.low %v771_v16, %v778_v33  ;;  %v891_v45 = vpack.c.bf16 %v692_v34, %v691_v41  ;;  %v892_v46 = vpack.c.bf16 %v694_v36, %v693_v42 }
  0xff   :  { %v635_v43 = vpop.f32.mrf.mxu0  ;;  %v676_v27 = vpop.f32.mrf.mxu1 }
 0x100   :  { %v636_v44 = vadd.f32 %v635_v43, %v129_v14  ;;  %831 = vst [vmem:[%s1072_s3] sm:$0xff] %v779_v40  ;;  %v677_v47 = vadd.f32 %v676_v27, %v137_v15  ;;  %v790_v12 = vrot.slane %v891_v45, %v1041_v52  ;;  %v797_v35 = vrot.slane %v892_v46, %v1041_v52 }
 0x101   :  { %v637_v48 = vpop.f32.mrf.mxu0  ;;  %v678_v50 = vpop.f32.mrf.mxu1 }
 0x102   :  { %v638_v49 = vadd.f32 %v637_v48, %v133_v39  ;;  %v679_v30 = vadd.f32 %v678_v50, %v141_v23  ;;  %v695_v53 = vmax.f32 %v636_v44, 0.0  ;;  %v697_v56 = vmax.f32 %v677_v47, 0.0 }
 0x103   :  { %v639_v51 = vpop.f32.mrf.mxu0  ;;  %v680_v55 = vpop.f32.mrf.mxu1  ;;  %v812_v63 = vcombine.low %v790_v12, %v797_v35 }
 0x104   :  { %v696_v54 = vmax.f32 %v638_v49, 0.0  ;;  %v698_v57 = vmax.f32 %v679_v30, 0.0 }
 0x105   :  { %v640_v58 = vpop.f32.mrf.mxu0  ;;  %v681_v60 = vpop.f32.mrf.mxu1  ;;  %v820_v3 = vrot.slane %v812_v63, %v1041_v52 }
 0x106   :  { %v893_v59 = vpack.c.bf16 %v696_v54, %v695_v53  ;;  %v894_v61 = vpack.c.bf16 %v698_v57, %v697_v56 }
 0x108   :  { %v804_v62 = vrot.slane %v893_v59, %v1041_v52  ;;  %v811_v1 = vrot.slane %v894_v61, %v1041_v52 }
 0x10a   :  { %v813_v2 = vcombine.low %v804_v62, %v811_v1 }
 0x10c   :  { %v827_v4 = vrot.slane %v813_v2, %v1041_v52 }
 0x10e   :  { %v828_v5 = vcombine.low %v820_v3, %v827_v4 }
 0x110   :  { %832 = vst [vmem:[%s1072_s3 + $0x8] sm:$0xff] %v828_v5 }
 0x111   :  { %837 = vsyncpa [#allocation3], 1 }
 0x112   :  { %838 = vsyncpa [#allocation5], 1 }

// kernel: gen_nn_ske_to_image.6
= control target key start
LH: loop header
LB: loop body
LE: loop exit
PB: predicated region body
PF: predicated region fallthrough
CT: control target
= control target key end

     0   :  { %8 = vsyncpa [#allocation3], 0  ;;  %s1910_s0 = inlined_call_operand.vmem [shape: bf16[32,1152], index: 0, kind: input, shape index: {}]   ;;  %s1911_s1 = inlined_call_operand.hbm [shape: bf16[1152,256], index: 1, kind: input, shape index: {}]   ;;  %s1912_s2 = inlined_call_operand.hbm [shape: f32[1,256], index: 2, kind: input, shape index: {}]   ;;  %s1913_s3 = inlined_call_operand.vmem [shape: bf16[32,256], index: 3, kind: output, shape index: {}]  }
   0x1   :  { %9 = vsyncpa [#allocation5], 0  ;;  %s1813_s12 = smov [#allocation2]  }
   0x2   :  { %s17_s13 = sshll.u32 %s1813_s12, 4  ;;  %s18_s13 = int_to_ptr.vmem [resolvable:$true] %s17_s13 }
   0x3   :  { %s1777_s14 = scalar_lea.vmem %s18_s13, 18432  ;;  %p1782_p1 = scmp.lt.s32.totalorder %s18_s13, %s18_s13 }
   0x4   :  { %p1778_p0 = scmp.ne.s32.totalorder %s18_s13, %s1777_s14  ;;  %p1783_p2 = scmp.lt.s32.totalorder %s1777_s14, %s1777_s14 }
   0x6   :  { %p1784_p3 = por %p1783_p2, %p1782_p1 }
   0x8   :  { %p1785_p4 = pnand %p1784_p3, %p1778_p0 }
   0xa   :  { %1788 = shalt.err (!%p1785_p4)
}
   0xb   :  { %s1814_s15 = smov 128   ;;  %s1815_s16 = smov 8  }
   0xc   :  { %23 = dma.hbm_to_vmem [thread:$0]  %s1911_s1, 18432, %s18_s13, [#allocation3], %s1814_s15, %s1814_s15, %s1815_s16  }
   0xd   :  { %s1816_s19 = smov [#allocation4]  }
   0xe   :  { %s30_s20 = sshll.u32 %s1816_s19, 4  ;;  %s31_s20 = int_to_ptr.vmem [resolvable:$true] %s30_s20 }
   0xf   :  { %s1797_s21 = scalar_lea.vmem %s31_s20, 32  ;;  %p1802_p6 = scmp.lt.s32.totalorder %s31_s20, %s31_s20 }
  0x10   :  { %p1798_p5 = scmp.ne.s32.totalorder %s31_s20, %s1797_s21  ;;  %p1803_p7 = scmp.lt.s32.totalorder %s1797_s21, %s1797_s21 }
  0x12   :  { %p1804_p8 = por %p1803_p7, %p1802_p6 }
  0x14   :  { %p1805_p9 = pnand %p1804_p8, %p1798_p5 }
  0x16   :  { %1808 = shalt.err (!%p1805_p9)
}
  0x17   :  { %33 = dma.hbm_to_vmem [thread:$0]  %s1912_s2, 32, %s31_s20, [#allocation5]  }
  0x18   :  { %1809 = dma.done.wait [#allocation3], 18432  }
  0x19   :  { %1810 = vsyncadd [#allocation3], 4294948864 }
  0x1a   :  { %1811 = dma.done.wait [#allocation5], 32  }
  0x1b   :  { %1812 = vsyncadd [#allocation5], 4294967264  ;;  %v1527_v0 = vld [vmem:[#allocation2 + $0x74] ss:$8 sps:$4 sm:$0xff]   ;;  %v1531_v2 = vld [vmem:[#allocation2 + $0x70] ss:$8 sps:$4 sm:$0xff]  }
  0x1c   :  { %v1529_v1 = vld [vmem:[#allocation2 + $0x174] ss:$8 sps:$4 sm:$0xff]   ;;  %1029 = vmatprep.subr.bf16.mxu0 %v1527_v0  ;;  %v1532_v3 = vld [vmem:[#allocation2 + $0x170] ss:$8 sps:$4 sm:$0xff]   ;;  %v1533_v4 = vld [vmem:[#allocation2 + $0x64] ss:$8 sps:$4 sm:$0xff]  }
  0x1d   :  { %1082 = vmatprep.subr.bf16.mxu1 %v1529_v1  ;;  %1030 = vmatpush1.bf16.msra.mxu0 %v1531_v2  ;;  %v1535_v5 = vld [vmem:[#allocation2 + $0x164] ss:$8 sps:$4 sm:$0xff]   ;;  %v1537_v6 = vld [vmem:[#allocation2 + $0x60] ss:$8 sps:$4 sm:$0xff]   ;;  %v1539_v8 = vld [vmem:[#allocation2 + $0x54] ss:$8 sps:$4 sm:$0xff]  }
  0x1e   :  { %1083 = vmatpush1.bf16.msra.mxu1 %v1532_v3  ;;  %1031 = vmatprep.subr.bf16.mxu0 %v1533_v4  ;;  %v1538_v7 = vld [vmem:[#allocation2 + $0x160] ss:$8 sps:$4 sm:$0xff]   ;;  %v1541_v9 = vld [vmem:[#allocation2 + $0x154] ss:$8 sps:$4 sm:$0xff]   ;;  %v1543_v10 = vld [vmem:[#allocation2 + $0x50] ss:$8 sps:$4 sm:$0xff]  }
  0x1f   :  { %1084 = vmatprep.subr.bf16.mxu1 %v1535_v5  ;;  %v1544_v11 = vld [vmem:[#allocation2 + $0x150] ss:$8 sps:$4 sm:$0xff]   ;;  %v1545_v12 = vld [vmem:[#allocation2 + $0x44] ss:$8 sps:$4 sm:$0xff]   ;;  %v1549_v14 = vld [vmem:[#allocation2 + $0x40] ss:$8 sps:$4 sm:$0xff]  }
  0x20   :  { %v1547_v13 = vld [vmem:[#allocation2 + $0x144] ss:$8 sps:$4 sm:$0xff]   ;;  %v1550_v15 = vld [vmem:[#allocation2 + $0x140] ss:$8 sps:$4 sm:$0xff]   ;;  %v1551_v16 = vld [vmem:[#allocation2 + $0x34] ss:$8 sps:$4 sm:$0xff]  }
  0x21   :  { %1032 = vmatpush1.bf16.msra.mxu0 %v1537_v6  ;;  %v1553_v17 = vld [vmem:[#allocation2 + $0x134] ss:$8 sps:$4 sm:$0xff]   ;;  %v1555_v18 = vld [vmem:[#allocation2 + $0x30] ss:$8 sps:$4 sm:$0xff]   ;;  %v1557_v20 = vld [vmem:[#allocation2 + $0x24] ss:$8 sps:$4 sm:$0xff]  }
  0x22   :  { %1085 = vmatpush1.bf16.msra.mxu1 %v1538_v7  ;;  %1033 = vmatprep.subr.bf16.mxu0 %v1539_v8  ;;  %v1556_v19 = vld [vmem:[#allocation2 + $0x130] ss:$8 sps:$4 sm:$0xff]   ;;  %v1559_v21 = vld [vmem:[#allocation2 + $0x124] ss:$8 sps:$4 sm:$0xff]   ;;  %v1561_v22 = vld [vmem:[#allocation2 + $0x20] ss:$8 sps:$4 sm:$0xff]  }
  0x23   :  { %1086 = vmatprep.subr.bf16.mxu1 %v1541_v9  ;;  %v1562_v23 = vld [vmem:[#allocation2 + $0x120] ss:$8 sps:$4 sm:$0xff]   ;;  %v1563_v24 = vld [vmem:[#allocation2 + $0x14] ss:$8 sps:$4 sm:$0xff]   ;;  %v1567_v26 = vld [vmem:[#allocation2 + $0x10] ss:$8 sps:$4 sm:$0xff]  }
  0x24   :  { %v1565_v25 = vld [vmem:[#allocation2 + $0x114] ss:$8 sps:$4 sm:$0xff]   ;;  %v1568_v27 = vld [vmem:[#allocation2 + $0x110] ss:$8 sps:$4 sm:$0xff]   ;;  %v1569_v28 = vld [vmem:[#allocation2 + $0x4] ss:$8 sps:$4 sm:$0xff]  }
  0x25   :  { %1034 = vmatpush1.bf16.msra.mxu0 %v1543_v10  ;;  %v1571_v29 = vld [vmem:[#allocation2 + $0x104] ss:$8 sps:$4 sm:$0xff]   ;;  %v1573_v30 = vld [vmem:[#allocation2] ss:$8 sps:$4 sm:$0xff]   ;;  %v1575_v32 = vld [vmem:[#allocation2 + $0xf4] ss:$8 sps:$4 sm:$0xff]  }
  0x26   :  { %1087 = vmatpush1.bf16.msra.mxu1 %v1544_v11  ;;  %1035 = vmatprep.subr.bf16.mxu0 %v1545_v12  ;;  %v1574_v31 = vld [vmem:[#allocation2 + $0x100] ss:$8 sps:$4 sm:$0xff]   ;;  %v1577_v33 = vld [vmem:[#allocation2 + $0x1f4] ss:$8 sps:$4 sm:$0xff]   ;;  %v1579_v34 = vld [vmem:[#allocation2 + $0xf0] ss:$8 sps:$4 sm:$0xff]  }
  0x27   :  { %1088 = vmatprep.subr.bf16.mxu1 %v1547_v13  ;;  %v1580_v35 = vld [vmem:[#allocation2 + $0x1f0] ss:$8 sps:$4 sm:$0xff]   ;;  %v1581_v36 = vld [vmem:[#allocation2 + $0xe4] ss:$8 sps:$4 sm:$0xff]   ;;  %v1585_v38 = vld [vmem:[#allocation2 + $0xe0] ss:$8 sps:$4 sm:$0xff]  }
  0x28   :  { %v1583_v37 = vld [vmem:[#allocation2 + $0x1e4] ss:$8 sps:$4 sm:$0xff]   ;;  %v1586_v39 = vld [vmem:[#allocation2 + $0x1e0] ss:$8 sps:$4 sm:$0xff]   ;;  %v1587_v40 = vld [vmem:[#allocation2 + $0xd4] ss:$8 sps:$4 sm:$0xff]  }
  0x29   :  { %1036 = vmatpush1.bf16.msra.mxu0 %v1549_v14  ;;  %v1589_v41 = vld [vmem:[#allocation2 + $0x1d4] ss:$8 sps:$4 sm:$0xff]   ;;  %v1591_v42 = vld [vmem:[#allocation2 + $0xd0] ss:$8 sps:$4 sm:$0xff]   ;;  %v1593_v44 = vld [vmem:[#allocation2 + $0xc4] ss:$8 sps:$4 sm:$0xff]  }
  0x2a   :  { %1089 = vmatpush1.bf16.msra.mxu1 %v1550_v15  ;;  %1037 = vmatprep.subr.bf16.mxu0 %v1551_v16  ;;  %v1592_v43 = vld [vmem:[#allocation2 + $0x1d0] ss:$8 sps:$4 sm:$0xff]   ;;  %v1595_v45 = vld [vmem:[#allocation2 + $0x1c4] ss:$8 sps:$4 sm:$0xff]   ;;  %v1597_v46 = vld [vmem:[#allocation2 + $0xc0] ss:$8 sps:$4 sm:$0xff]  }
  0x2b   :  { %1090 = vmatprep.subr.bf16.mxu1 %v1553_v17  ;;  %v1598_v47 = vld [vmem:[#allocation2 + $0x1c0] ss:$8 sps:$4 sm:$0xff]   ;;  %v1599_v48 = vld [vmem:[#allocation2 + $0xb4] ss:$8 sps:$4 sm:$0xff]   ;;  %v1628_v51 = vld [vmem:[%s1910_s0 + $0xc] ss:$36 sps:$4 sm:$0xff]  }
  0x2c   :  { %v1625_v49 = vld [vmem:[%s1910_s0 + $0x4] ss:$36 sps:$4 sm:$0xff]   ;;  %v1601_v50 = vld [vmem:[#allocation2 + $0x1b4] ss:$8 sps:$4 sm:$0xff]   ;;  %v1603_v52 = vld [vmem:[#allocation2 + $0xb0] ss:$8 sps:$4 sm:$0xff]   ;;  %1114 = vmatprep.mubr.bf16.mxu1 %v1628_v51 }
  0x2d   :  { %1038 = vmatpush1.bf16.msra.mxu0 %v1555_v18  ;;  %1061 = vmatprep.mubr.bf16.mxu0 %v1625_v49  ;;  %v1604_v53 = vld [vmem:[#allocation2 + $0x1b0] ss:$8 sps:$4 sm:$0xff]   ;;  %v1605_v54 = vld [vmem:[#allocation2 + $0xa4] ss:$8 sps:$4 sm:$0xff]   ;;  %v1609_v56 = vld [vmem:[#allocation2 + $0xa0] ss:$8 sps:$4 sm:$0xff]  }
  0x2e   :  { %1091 = vmatpush1.bf16.msra.mxu1 %v1556_v19  ;;  %1039 = vmatprep.subr.bf16.mxu0 %v1557_v20  ;;  %v1607_v55 = vld [vmem:[#allocation2 + $0x1a4] ss:$8 sps:$4 sm:$0xff]   ;;  %v1610_v57 = vld [vmem:[#allocation2 + $0x1a0] ss:$8 sps:$4 sm:$0xff]   ;;  %v1611_v58 = vld [vmem:[#allocation2 + $0x94] ss:$8 sps:$4 sm:$0xff]  }
  0x2f   :  { %1092 = vmatprep.subr.bf16.mxu1 %v1559_v21  ;;  %v1613_v59 = vld [vmem:[#allocation2 + $0x194] ss:$8 sps:$4 sm:$0xff]   ;;  %v1615_v60 = vld [vmem:[#allocation2 + $0x90] ss:$8 sps:$4 sm:$0xff]   ;;  %v1617_v62 = vld [vmem:[#allocation2 + $0x84] ss:$8 sps:$4 sm:$0xff]  }
  0x30   :  { %v1616_v61 = vld [vmem:[#allocation2 + $0x190] ss:$8 sps:$4 sm:$0xff]   ;;  %v1619_v63 = vld [vmem:[#allocation2 + $0x184] ss:$8 sps:$4 sm:$0xff]   ;;  %v1621_v0 = vld [vmem:[#allocation2 + $0x80] ss:$8 sps:$4 sm:$0xff]  }
  0x31   :  { %1040 = vmatpush1.bf16.msra.mxu0 %v1561_v22  ;;  %v1622_v1 = vld [vmem:[#allocation2 + $0x180] ss:$8 sps:$4 sm:$0xff]   ;;  %v1631_v2 = vld [vmem:[#allocation2 + $0x274] ss:$8 sps:$4 sm:$0xff]   ;;  %v1629_v6 = vld [vmem:[#allocation2 + $0x270] ss:$8 sps:$4 sm:$0xff]  }
  0x32   :  { %1093 = vmatpush1.bf16.msra.mxu1 %v1562_v23  ;;  %1041 = vmatprep.subr.bf16.mxu0 %v1563_v24  ;;  %v1634_v3 = vld [vmem:[#allocation2 + $0x374] ss:$8 sps:$4 sm:$0xff]   ;;  %v1623_v4 = vld [vmem:[%s1910_s0] ss:$36 sps:$4 sm:$0xff]   ;;  %v1626_v5 = vld [vmem:[%s1910_s0 + $0x8] ss:$36 sps:$4 sm:$0xff]  }
  0x33   :  { %1094 = vmatprep.subr.bf16.mxu1 %v1565_v25  ;;  %v1632_v7 = vld [vmem:[#allocation2 + $0x370] ss:$8 sps:$4 sm:$0xff]   ;;  %v1637_v8 = vld [vmem:[#allocation2 + $0x264] ss:$8 sps:$4 sm:$0xff]   ;;  %v1635_v10 = vld [vmem:[#allocation2 + $0x260] ss:$8 sps:$4 sm:$0xff]  }
  0x34   :  { %v1640_v9 = vld [vmem:[#allocation2 + $0x364] ss:$8 sps:$4 sm:$0xff]   ;;  %v1638_v11 = vld [vmem:[#allocation2 + $0x360] ss:$8 sps:$4 sm:$0xff]   ;;  %v1643_v12 = vld [vmem:[#allocation2 + $0x254] ss:$8 sps:$4 sm:$0xff]  }
  0x35   :  { %1042 = vmatpush1.bf16.msra.mxu0 %v1567_v26  ;;  %v1646_v13 = vld [vmem:[#allocation2 + $0x354] ss:$8 sps:$4 sm:$0xff]   ;;  %v1641_v14 = vld [vmem:[#allocation2 + $0x250] ss:$8 sps:$4 sm:$0xff]   ;;  %v1649_v16 = vld [vmem:[#allocation2 + $0x244] ss:$8 sps:$4 sm:$0xff]  }
  0x36   :  { %1095 = vmatpush1.bf16.msra.mxu1 %v1568_v27  ;;  %1043 = vmatprep.subr.bf16.mxu0 %v1569_v28  ;;  %v1644_v15 = vld [vmem:[#allocation2 + $0x350] ss:$8 sps:$4 sm:$0xff]   ;;  %v1652_v17 = vld [vmem:[#allocation2 + $0x344] ss:$8 sps:$4 sm:$0xff]   ;;  %v1647_v18 = vld [vmem:[#allocation2 + $0x240] ss:$8 sps:$4 sm:$0xff]  }
  0x37   :  { %1096 = vmatprep.subr.bf16.mxu1 %v1571_v29  ;;  %v1650_v19 = vld [vmem:[#allocation2 + $0x340] ss:$8 sps:$4 sm:$0xff]   ;;  %v1655_v20 = vld [vmem:[#allocation2 + $0x234] ss:$8 sps:$4 sm:$0xff]   ;;  %v1701_v22 = vld [vmem:[%s1910_s0 + $0x4c] ss:$36 sps:$4 sm:$0xff]  }
  0x38   :  { %v1658_v21 = vld [vmem:[#allocation2 + $0x334] ss:$8 sps:$4 sm:$0xff]   ;;  %v1653_v23 = vld [vmem:[#allocation2 + $0x230] ss:$8 sps:$4 sm:$0xff]   ;;  %v1661_v25 = vld [vmem:[#allocation2 + $0x224] ss:$8 sps:$4 sm:$0xff]  }
  0x39   :  { %1044 = vmatpush1.bf16.msra.mxu0 %v1573_v30  ;;  %v1656_v24 = vld [vmem:[#allocation2 + $0x330] ss:$8 sps:$4 sm:$0xff]   ;;  %v1664_v26 = vld [vmem:[#allocation2 + $0x324] ss:$8 sps:$4 sm:$0xff]   ;;  %v1659_v28 = vld [vmem:[#allocation2 + $0x220] ss:$8 sps:$4 sm:$0xff]  }
  0x3a   :  { %1097 = vmatpush1.bf16.msra.mxu1 %v1574_v31  ;;  %1045 = vmatprep.subr.bf16.mxu0 %v1575_v32  ;;  %v1709_v27 = vld [vmem:[%s1910_s0 + $0x48] ss:$36 sps:$4 sm:$0xff]   ;;  %v1710_v29 = vld [vmem:[%s1910_s0 + $0x54] ss:$36 sps:$4 sm:$0xff]  }
  0x3b   :  { %1098 = vmatprep.subr.bf16.mxu1 %v1577_v33  ;;  %v1662_v30 = vld [vmem:[#allocation2 + $0x320] ss:$8 sps:$4 sm:$0xff]   ;;  %v1712_v31 = vld [vmem:[%s1910_s0 + $0x50] ss:$36 sps:$4 sm:$0xff]  }
  0x3c   :  { %v1667_v32 = vld [vmem:[#allocation2 + $0x214] ss:$8 sps:$4 sm:$0xff]   ;;  %v1686_v49 = vld [vmem:[#allocation2 + $0x3e0] ss:$8 sps:$4 sm:$0xff]  }
  0x3d   :  { %1046 = vmatpush2.bf16.msra.mxu0 %v1579_v34  ;;  %v1670_v33 = vld [vmem:[#allocation2 + $0x314] ss:$8 sps:$4 sm:$0xff]   ;;  %v1665_v34 = vld [vmem:[#allocation2 + $0x210] ss:$8 sps:$4 sm:$0xff]  }
  0x3e   :  { %1099 = vmatpush2.bf16.msra.mxu1 %v1580_v35  ;;  %1047 = vmatprep.subr.bf16.mxu0 %v1581_v36  ;;  %v1668_v35 = vld [vmem:[#allocation2 + $0x310] ss:$8 sps:$4 sm:$0xff]   ;;  %v1673_v36 = vld [vmem:[#allocation2 + $0x204] ss:$8 sps:$4 sm:$0xff]   ;;  %v1694_v51 = vld [vmem:[#allocation2 + $0x3d4] ss:$8 sps:$4 sm:$0xff]  }
  0x3f   :  { %1100 = vmatprep.subr.bf16.mxu1 %v1583_v37  ;;  %v1676_v37 = vld [vmem:[#allocation2 + $0x304] ss:$8 sps:$4 sm:$0xff]  }
  0x41   :  { %1048 = vmatpush2.bf16.msra.mxu0 %v1585_v38  ;;  %v1671_v38 = vld [vmem:[#allocation2 + $0x200] ss:$8 sps:$4 sm:$0xff]  }
  0x42   :  { %1101 = vmatpush2.bf16.msra.mxu1 %v1586_v39  ;;  %1049 = vmatprep.subr.bf16.mxu0 %v1587_v40  ;;  %v1674_v39 = vld [vmem:[#allocation2 + $0x300] ss:$8 sps:$4 sm:$0xff]   ;;  %v1679_v40 = vld [vmem:[#allocation2 + $0x2f4] ss:$8 sps:$4 sm:$0xff]  }
  0x43   :  { %1102 = vmatprep.subr.bf16.mxu1 %v1589_v41  ;;  %v1733_v41 = vld [vmem:[%s1910_s0 + $0x14] ss:$36 sps:$4 sm:$0xff]  }
  0x45   :  { %1050 = vmatpush2.bf16.msra.mxu0 %v1591_v42  ;;  %v1682_v42 = vld [vmem:[#allocation2 + $0x3f4] ss:$8 sps:$4 sm:$0xff]  }
  0x46   :  { %1103 = vmatpush2.bf16.msra.mxu1 %v1592_v43  ;;  %1051 = vmatprep.subr.bf16.mxu0 %v1593_v44  ;;  %v1736_v43 = vld [vmem:[%s1910_s0 + $0x1c] ss:$36 sps:$4 sm:$0xff]   ;;  %v1677_v44 = vld [vmem:[#allocation2 + $0x2f0] ss:$8 sps:$4 sm:$0xff]  }
  0x47   :  { %1104 = vmatprep.subr.bf16.mxu1 %v1595_v45  ;;  %v1680_v45 = vld [vmem:[#allocation2 + $0x3f0] ss:$8 sps:$4 sm:$0xff]  }
  0x49   :  { %1052 = vmatpush2.bf16.msra.mxu0 %v1597_v46  ;;  %v1685_v46 = vld [vmem:[#allocation2 + $0x2e4] ss:$8 sps:$4 sm:$0xff]  }
  0x4a   :  { %1105 = vmatpush2.bf16.msra.mxu1 %v1598_v47  ;;  %1053 = vmatprep.subr.bf16.mxu0 %v1599_v48  ;;  %v1688_v47 = vld [vmem:[#allocation2 + $0x3e4] ss:$8 sps:$4 sm:$0xff]   ;;  %v1683_v48 = vld [vmem:[#allocation2 + $0x2e0] ss:$8 sps:$4 sm:$0xff]  }
  0x4b   :  { %1106 = vmatprep.subr.bf16.mxu1 %v1601_v50  ;;  %v1691_v50 = vld [vmem:[#allocation2 + $0x2d4] ss:$8 sps:$4 sm:$0xff]  }
  0x4d   :  { %1054 = vmatpush2.bf16.msra.mxu0 %v1603_v52  ;;  %v1689_v52 = vld [vmem:[#allocation2 + $0x2d0] ss:$8 sps:$4 sm:$0xff]  }
  0x4e   :  { %1107 = vmatpush2.bf16.msra.mxu1 %v1604_v53  ;;  %1055 = vmatprep.subr.bf16.mxu0 %v1605_v54  ;;  %v1692_v53 = vld [vmem:[#allocation2 + $0x3d0] ss:$8 sps:$4 sm:$0xff]   ;;  %v1697_v54 = vld [vmem:[#allocation2 + $0x2c4] ss:$8 sps:$4 sm:$0xff]  }
  0x4f   :  { %1108 = vmatprep.subr.bf16.mxu1 %v1607_v55  ;;  %v1700_v55 = vld [vmem:[#allocation2 + $0x3c4] ss:$8 sps:$4 sm:$0xff]  }
  0x51   :  { %1056 = vmatpush2.bf16.msra.mxu0 %v1609_v56  ;;  %v1695_v56 = vld [vmem:[#allocation2 + $0x2c0] ss:$8 sps:$4 sm:$0xff]  }
  0x52   :  { %1109 = vmatpush2.bf16.msra.mxu1 %v1610_v57  ;;  %1057 = vmatprep.subr.bf16.mxu0 %v1611_v58  ;;  %v1698_v57 = vld [vmem:[#allocation2 + $0x3c0] ss:$8 sps:$4 sm:$0xff]   ;;  %v1705_v58 = vld [vmem:[#allocation2 + $0x2b4] ss:$8 sps:$4 sm:$0xff]  }
  0x53   :  { %1110 = vmatprep.subr.bf16.mxu1 %v1613_v59  ;;  %v1708_v59 = vld [vmem:[#allocation2 + $0x3b4] ss:$8 sps:$4 sm:$0xff]  }
  0x55   :  { %1058 = vmatpush2.bf16.msra.mxu0 %v1615_v60  ;;  %v1703_v60 = vld [vmem:[#allocation2 + $0x2b0] ss:$8 sps:$4 sm:$0xff]  }
  0x56   :  { %1111 = vmatpush2.bf16.msra.mxu1 %v1616_v61  ;;  %1059 = vmatprep.subr.bf16.mxu0 %v1617_v62  ;;  %v1706_v61 = vld [vmem:[#allocation2 + $0x3b0] ss:$8 sps:$4 sm:$0xff]   ;;  %v1715_v62 = vld [vmem:[#allocation2 + $0x2a4] ss:$8 sps:$4 sm:$0xff]  }
  0x57   :  { %1112 = vmatprep.subr.bf16.mxu1 %v1619_v63  ;;  %v1718_v63 = vld [vmem:[#allocation2 + $0x3a4] ss:$8 sps:$4 sm:$0xff]  }
  0x59   :  { %1060 = vmatpush2.bf16.msra.mxu0 %v1621_v0  ;;  %v1713_v0 = vld [vmem:[#allocation2 + $0x2a0] ss:$8 sps:$4 sm:$0xff]  }
  0x5a   :  { %1113 = vmatpush2.bf16.msra.mxu1 %v1622_v1  ;;  %1135 = vmatprep.subr.bf16.mxu0 %v1631_v2  ;;  %v1716_v1 = vld [vmem:[#allocation2 + $0x3a0] ss:$8 sps:$4 sm:$0xff]   ;;  %v1721_v2 = vld [vmem:[#allocation2 + $0x294] ss:$8 sps:$4 sm:$0xff]  }
  0x5b   :  { %1188 = vmatprep.subr.bf16.mxu1 %v1634_v3  ;;  %v1724_v3 = vld [vmem:[#allocation2 + $0x394] ss:$8 sps:$4 sm:$0xff]  }
  0x5c   :  { %1062 = vmatmul.mubr.bf16.vlgmr.msra.gmra.mxu0 %v1623_v4  ;;  %v1719_v4 = vld [vmem:[#allocation2 + $0x290] ss:$8 sps:$4 sm:$0xff]  }
  0x5d   :  { %1115 = vmatmul.mubr.bf16.vlgmr.msra.gmra.mxu1 %v1626_v5  ;;  %1136 = vmatpush1.bf16.msra.mxu0 %v1629_v6  ;;  %v1722_v5 = vld [vmem:[#allocation2 + $0x390] ss:$8 sps:$4 sm:$0xff]   ;;  %v1727_v6 = vld [vmem:[#allocation2 + $0x284] ss:$8 sps:$4 sm:$0xff]  }
  0x5e   :  { %1189 = vmatpush1.bf16.msra.mxu1 %v1632_v7  ;;  %1137 = vmatprep.subr.bf16.mxu0 %v1637_v8  ;;  %v1730_v7 = vld [vmem:[#allocation2 + $0x384] ss:$8 sps:$4 sm:$0xff]   ;;  %v1725_v8 = vld [vmem:[#allocation2 + $0x280] ss:$8 sps:$4 sm:$0xff]  }
  0x5f   :  { %1190 = vmatprep.subr.bf16.mxu1 %v1640_v9  ;;  %1071 = vmatprep.mubr.bf16.mxu0 %v1701_v22  ;;  %v1728_v9 = vld [vmem:[#allocation2 + $0x380] ss:$8 sps:$4 sm:$0xff]   ;;  %v1754_v22 = vld [vmem:[#allocation2 + $0x444] ss:$8 sps:$4 sm:$0xff]  }
  0x60   :  { %1124 = vmatprep.mubr.bf16.mxu1 %v1710_v29  ;;  %v1763_v29 = vld [vmem:[#allocation2 + $0x414] ss:$8 sps:$4 sm:$0xff]  }
  0x61   :  { %1138 = vmatpush1.bf16.msra.mxu0 %v1635_v10  ;;  %v1739_v10 = vld [vmem:[#allocation2 + $0x474] ss:$8 sps:$4 sm:$0xff]  }
  0x62   :  { %1191 = vmatpush1.bf16.msra.mxu1 %v1638_v11  ;;  %1139 = vmatprep.subr.bf16.mxu0 %v1643_v12  ;;  %v1731_v11 = vld [vmem:[%s1910_s0 + $0x10] ss:$36 sps:$4 sm:$0xff]   ;;  %v1734_v12 = vld [vmem:[%s1910_s0 + $0x18] ss:$36 sps:$4 sm:$0xff]  }
  0x63   :  { %1192 = vmatprep.subr.bf16.mxu1 %v1646_v13  ;;  %v1737_v13 = vld [vmem:[#allocation2 + $0x470] ss:$8 sps:$4 sm:$0xff]  }
  0x64   :  { %1072 = vmatmul.mubr.bf16.gmra.mxu0 %v1709_v27  ;;  %v1760_v27 = vld [vmem:[#allocation2 + $0x424] ss:$8 sps:$4 sm:$0xff]  }
  0x65   :  { %1140 = vmatpush1.bf16.msra.mxu0 %v1641_v14  ;;  %1125 = vmatmul.mubr.bf16.gmra.mxu1 %v1712_v31  ;;  %v1742_v14 = vld [vmem:[#allocation2 + $0x464] ss:$8 sps:$4 sm:$0xff]  }
  0x66   :  { %1193 = vmatpush1.bf16.msra.mxu1 %v1644_v15  ;;  %1141 = vmatprep.subr.bf16.mxu0 %v1649_v16  ;;  %v1743_v15 = vld [vmem:[%s1910_s0 + $0x5c] ss:$36 sps:$4 sm:$0xff]   ;;  %v1749_v16 = vld [vmem:[%s1910_s0 + $0x64] ss:$36 sps:$4 sm:$0xff]  }
  0x67   :  { %1194 = vmatprep.subr.bf16.mxu1 %v1652_v17  ;;  %1167 = vmatprep.mubr.bf16.mxu0 %v1733_v41  ;;  %v1740_v17 = vld [vmem:[#allocation2 + $0x460] ss:$8 sps:$4 sm:$0xff]   ;;  %v1766_v31 = vld [vmem:[#allocation2 + $0x404] ss:$8 sps:$4 sm:$0xff]  }
  0x68   :  { %1220 = vmatprep.mubr.bf16.mxu1 %v1736_v43 }
  0x69   :  { %1142 = vmatpush1.bf16.msra.mxu0 %v1647_v18  ;;  %v1748_v18 = vld [vmem:[#allocation2 + $0x454] ss:$8 sps:$4 sm:$0xff]  }
  0x6a   :  { %1195 = vmatpush1.bf16.msra.mxu1 %v1650_v19  ;;  %1143 = vmatprep.subr.bf16.mxu0 %v1655_v20  ;;  %v1745_v19 = vld [vmem:[%s1910_s0 + $0x58] ss:$36 sps:$4 sm:$0xff]   ;;  %v1751_v20 = vld [vmem:[%s1910_s0 + $0x60] ss:$36 sps:$4 sm:$0xff]  }
  0x6b   :  { %1196 = vmatprep.subr.bf16.mxu1 %v1658_v21  ;;  %v1746_v21 = vld [vmem:[#allocation2 + $0x450] ss:$8 sps:$4 sm:$0xff]  }
  0x6d   :  { %1144 = vmatpush1.bf16.msra.mxu0 %v1653_v23  ;;  %v1752_v23 = vld [vmem:[#allocation2 + $0x440] ss:$8 sps:$4 sm:$0xff]  }
  0x6e   :  { %1197 = vmatpush1.bf16.msra.mxu1 %v1656_v24  ;;  %1145 = vmatprep.subr.bf16.mxu0 %v1661_v25  ;;  %v1757_v24 = vld [vmem:[#allocation2 + $0x434] ss:$8 sps:$4 sm:$0xff]   ;;  %v1817_v25 = vmov 0  }
  0x6f   :  { %1198 = vmatprep.subr.bf16.mxu1 %v1664_v26  ;;  %v1755_v26 = vld [vmem:[#allocation2 + $0x430] ss:$8 sps:$4 sm:$0xff]  }
  0x71   :  { %1146 = vmatpush1.bf16.msra.mxu0 %v1659_v28  ;;  %v1758_v28 = vld [vmem:[#allocation2 + $0x420] ss:$8 sps:$4 sm:$0xff]  }
  0x72   :  { %1199 = vmatpush1.bf16.msra.mxu1 %v1662_v30  ;;  %1147 = vmatprep.subr.bf16.mxu0 %v1667_v32  ;;  %v1761_v30 = vld [vmem:[#allocation2 + $0x410] ss:$8 sps:$4 sm:$0xff]   ;;  %v1764_v32 = vld [vmem:[#allocation2 + $0x400] ss:$8 sps:$4 sm:$0xff]  }
  0x73   :  { %1200 = vmatprep.subr.bf16.mxu1 %v1670_v33  ;;  %v1767_v33 = vld [vmem:[%s1910_s0 + $0x20] ss:$36 sps:$4 sm:$0xff]  }
  0x75   :  { %1148 = vmatpush1.bf16.msra.mxu0 %v1665_v34  ;;  %v1768_v34 = vld [vmem:[%s1910_s0 + $0x68] ss:$36 sps:$4 sm:$0xff]  }
  0x76   :  { %1201 = vmatpush1.bf16.msra.mxu1 %v1668_v35  ;;  %1149 = vmatprep.subr.bf16.mxu0 %v1673_v36 }
  0x77   :  { %1202 = vmatprep.subr.bf16.mxu1 %v1676_v37 }
  0x79   :  { %1150 = vmatpush1.bf16.msra.mxu0 %v1671_v38 }
  0x7a   :  { %1203 = vmatpush1.bf16.msra.mxu1 %v1674_v39  ;;  %1151 = vmatprep.subr.bf16.mxu0 %v1679_v40 }
  0x7b   :  { %1204 = vmatprep.subr.bf16.mxu1 %v1682_v42 }
  0x7d   :  { %1152 = vmatpush2.bf16.msra.mxu0 %v1677_v44 }
  0x7e   :  { %1205 = vmatpush2.bf16.msra.mxu1 %v1680_v45  ;;  %1153 = vmatprep.subr.bf16.mxu0 %v1685_v46 }
  0x7f   :  { %1206 = vmatprep.subr.bf16.mxu1 %v1688_v47 }
  0x81   :  { %1154 = vmatpush2.bf16.msra.mxu0 %v1683_v48 }
  0x82   :  { %1207 = vmatpush2.bf16.msra.mxu1 %v1686_v49  ;;  %1155 = vmatprep.subr.bf16.mxu0 %v1691_v50 }
  0x83   :  { %1208 = vmatprep.subr.bf16.mxu1 %v1694_v51 }
  0x85   :  { %1156 = vmatpush2.bf16.msra.mxu0 %v1689_v52 }
  0x86   :  { %1209 = vmatpush2.bf16.msra.mxu1 %v1692_v53  ;;  %1157 = vmatprep.subr.bf16.mxu0 %v1697_v54  ;;  %v207_v53 = vlaneseq }
  0x87   :  { %1210 = vmatprep.subr.bf16.mxu1 %v1700_v55 }
  0x89   :  { %1158 = vmatpush2.bf16.msra.mxu0 %v1695_v56  ;;  %v208_v56 = vshrl.u32 %v207_v53, 7 }
  0x8a   :  { %1211 = vmatpush2.bf16.msra.mxu1 %v1698_v57  ;;  %1159 = vmatprep.subr.bf16.mxu0 %v1705_v58 }
  0x8b   :  { %1212 = vmatprep.subr.bf16.mxu1 %v1708_v59  ;;  %v209_v59 = vsub.s32 0, %v208_v56 }
  0x8d   :  { %1160 = vmatpush2.bf16.msra.mxu0 %v1703_v60  ;;  %v205_v60 = vld [vmem:[#allocation4] sm:$0x3] }
  0x8e   :  { %1213 = vmatpush2.bf16.msra.mxu1 %v1706_v61  ;;  %1161 = vmatprep.subr.bf16.mxu0 %v1715_v62  ;;  %v213_v62 = vsub.s32 1, %v208_v56 }
  0x8f   :  { %1214 = vmatprep.subr.bf16.mxu1 %v1718_v63 }
  0x91   :  { %1162 = vmatpush2.bf16.msra.mxu0 %v1713_v0  ;;  %v210_v0 = vrot.slane %v205_v60, %v209_v59 }
  0x92   :  { %1215 = vmatpush2.bf16.msra.mxu1 %v1716_v1  ;;  %1163 = vmatprep.subr.bf16.mxu0 %v1721_v2 }
  0x93   :  { %1216 = vmatprep.subr.bf16.mxu1 %v1724_v3  ;;  %v214_v3 = vrot.slane %v205_v60, %v213_v62 }
  0x95   :  { %1164 = vmatpush2.bf16.msra.mxu0 %v1719_v4 }
  0x96   :  { %1217 = vmatpush2.bf16.msra.mxu1 %v1722_v5  ;;  %1165 = vmatprep.subr.bf16.mxu0 %v1727_v6 }
  0x97   :  { %1218 = vmatprep.subr.bf16.mxu1 %v1730_v7 }
  0x99   :  { %1166 = vmatpush2.bf16.msra.mxu0 %v1725_v8 }
  0x9a   :  { %1219 = vmatpush2.bf16.msra.mxu1 %v1728_v9  ;;  %1241 = vmatprep.subr.bf16.mxu0 %v1739_v10 }
  0x9b   :  { %1506 = vmatprep.subr.bf16.mxu1 %v1739_v10 }
  0x9c   :  { %1168 = vmatmul.mubr.bf16.vlgmr.msra.gmra.mxu0 %v1731_v11 }
  0x9d   :  { %1221 = vmatmul.mubr.bf16.vlgmr.msra.gmra.mxu1 %v1734_v12  ;;  %1242 = vmatpush1.bf16.msra.mxu0 %v1737_v13 }
  0x9e   :  { %1514 = vmatpush1.bf16.msra.mxu1 %v1737_v13  ;;  %1243 = vmatprep.subr.bf16.mxu0 %v1742_v14 }
  0x9f   :  { %1507 = vmatprep.subr.bf16.mxu1 %v1742_v14  ;;  %1177 = vmatprep.mubr.bf16.mxu0 %v1743_v15 }
  0xa0   :  { %1230 = vmatprep.mubr.bf16.mxu1 %v1749_v16 }
  0xa1   :  { %1244 = vmatpush1.bf16.msra.mxu0 %v1740_v17 }
  0xa2   :  { %1515 = vmatpush1.bf16.msra.mxu1 %v1740_v17  ;;  %1245 = vmatprep.subr.bf16.mxu0 %v1748_v18 }
  0xa3   :  { %1508 = vmatprep.subr.bf16.mxu1 %v1748_v18 }
  0xa4   :  { %1178 = vmatmul.mubr.bf16.gmra.mxu0 %v1745_v19 }
  0xa5   :  { %1231 = vmatmul.mubr.bf16.gmra.mxu1 %v1751_v20  ;;  %1246 = vmatpush1.bf16.msra.mxu0 %v1746_v21 }
  0xa6   :  { %1516 = vmatpush1.bf16.msra.mxu1 %v1746_v21  ;;  %1247 = vmatprep.subr.bf16.mxu0 %v1754_v22 }
  0xa7   :  { %1509 = vmatprep.subr.bf16.mxu1 %v1754_v22  ;;  %1273 = vmatprep.mubr.bf16.mxu0 %v1817_v25 }
  0xa8   :  { %1283 = vmatprep.mubr.bf16.mxu1 %v1817_v25 }
  0xa9   :  { %1248 = vmatpush1.bf16.msra.mxu0 %v1752_v23 }
  0xaa   :  { %1517 = vmatpush1.bf16.msra.mxu1 %v1752_v23  ;;  %1249 = vmatprep.subr.bf16.mxu0 %v1757_v24 }
  0xab   :  { %1510 = vmatprep.subr.bf16.mxu1 %v1757_v24 }
  0xad   :  { %1250 = vmatpush1.bf16.msra.mxu0 %v1755_v26 }
  0xae   :  { %1518 = vmatpush1.bf16.msra.mxu1 %v1755_v26  ;;  %1251 = vmatprep.subr.bf16.mxu0 %v1760_v27 }
  0xaf   :  { %1511 = vmatprep.subr.bf16.mxu1 %v1760_v27 }
  0xb1   :  { %1252 = vmatpush1.bf16.msra.mxu0 %v1758_v28 }
  0xb2   :  { %1519 = vmatpush1.bf16.msra.mxu1 %v1758_v28  ;;  %1253 = vmatprep.subr.bf16.mxu0 %v1763_v29 }
  0xb3   :  { %1512 = vmatprep.subr.bf16.mxu1 %v1763_v29 }
  0xb5   :  { %1254 = vmatpush1.bf16.msra.mxu0 %v1761_v30 }
  0xb6   :  { %1520 = vmatpush1.bf16.msra.mxu1 %v1761_v30  ;;  %1255 = vmatprep.subr.bf16.mxu0 %v1766_v31 }
  0xb7   :  { %1513 = vmatprep.subr.bf16.mxu1 %v1766_v31 }
  0xb9   :  { %1256 = vmatpush1.bf16.msra.mxu0 %v1764_v32 }
  0xba   :  { %1521 = vmatpush1.bf16.msra.mxu1 %v1764_v32 }
  0xbc   :  { %1274 = vmatmul.mubr.bf16.vlgmr.msra.gmra.mxu0 %v1767_v33 }
  0xbd   :  { %1284 = vmatmul.mubr.bf16.vlgmr.msra.gmra.mxu1 %v1768_v34 }
 0x11c   :  { %v1063_v35 = vpop.f32.mrf.mxu0 }
 0x11d   :  { %v1116_v36 = vpop.f32.mrf.mxu1  ;;  %v1064_v4 = vadd.f32 %v1063_v35, %v210_v0 }
 0x11e   :  { %v1065_v37 = vpop.f32.mrf.mxu0 }
 0x11f   :  { %v1118_v38 = vpop.f32.mrf.mxu1  ;;  %v1066_v8 = vadd.f32 %v1065_v37, %v214_v3  ;;  %v1117_v10 = vadd.f32 %v1116_v36, %v1064_v4 }
 0x120   :  { %v1067_v39 = vpop.f32.mrf.mxu0 }
 0x121   :  { %v1120_v40 = vpop.f32.mrf.mxu1  ;;  %v1068_v12 = vadd.f32 %v1067_v39, %v210_v0  ;;  %v1119_v16 = vadd.f32 %v1118_v38, %v1066_v8 }
 0x122   :  { %v1069_v41 = vpop.f32.mrf.mxu0 }
 0x123   :  { %v1122_v42 = vpop.f32.mrf.mxu1  ;;  %v1070_v20 = vadd.f32 %v1069_v41, %v214_v3  ;;  %v1121_v24 = vadd.f32 %v1120_v40, %v1068_v12 }
 0x124   :  { %v1073_v43 = vpop.f32.mrf.mxu0 }
 0x125   :  { %v1126_v44 = vpop.f32.mrf.mxu1  ;;  %v1074_v5 = vadd.f32 %v1073_v43, %v210_v0  ;;  %v1123_v30 = vadd.f32 %v1122_v42, %v1070_v20 }
 0x126   :  { %v1075_v45 = vpop.f32.mrf.mxu0 }
 0x127   :  { %v1128_v46 = vpop.f32.mrf.mxu1  ;;  %v1076_v9 = vadd.f32 %v1075_v45, %v214_v3  ;;  %v1127_v11 = vadd.f32 %v1126_v44, %v1074_v5 }
 0x128   :  { %v1077_v47 = vpop.f32.mrf.mxu0 }
 0x129   :  { %v1130_v48 = vpop.f32.mrf.mxu1  ;;  %v1078_v13 = vadd.f32 %v1077_v47, %v210_v0  ;;  %v1129_v17 = vadd.f32 %v1128_v46, %v1076_v9 }
 0x12a   :  { %v1079_v49 = vpop.f32.mrf.mxu0 }
 0x12b   :  { %v1132_v50 = vpop.f32.mrf.mxu1  ;;  %v1080_v21 = vadd.f32 %v1079_v49, %v214_v3  ;;  %v1131_v25 = vadd.f32 %v1130_v48, %v1078_v13 }
 0x12d   :  { %v1133_v31 = vadd.f32 %v1132_v50, %v1080_v21 }
 0x15c   :  { %v1169_v51 = vpop.f32.mrf.mxu0 }
 0x15d   :  { %v1222_v52 = vpop.f32.mrf.mxu1  ;;  %v1170_v18 = vadd.f32 %v1169_v51, %v1117_v10 }
 0x15e   :  { %v1171_v54 = vpop.f32.mrf.mxu0 }
 0x15f   :  { %v1224_v55 = vpop.f32.mrf.mxu1  ;;  %v1172_v22 = vadd.f32 %v1171_v54, %v1119_v16  ;;  %v1223_v28 = vadd.f32 %v1222_v52, %v1170_v18 }
 0x160   :  { %v1173_v57 = vpop.f32.mrf.mxu0 }
 0x161   :  { %v1226_v58 = vpop.f32.mrf.mxu1  ;;  %v1174_v32 = vadd.f32 %v1173_v57, %v1121_v24  ;;  %v1225_v36 = vadd.f32 %v1224_v55, %v1172_v22 }
 0x162   :  { %v1175_v61 = vpop.f32.mrf.mxu0 }
 0x163   :  { %v1228_v63 = vpop.f32.mrf.mxu1  ;;  %v1176_v41 = vadd.f32 %v1175_v61, %v1123_v30  ;;  %v1227_v47 = vadd.f32 %v1226_v58, %v1174_v32 }
 0x164   :  { %v1179_v1 = vpop.f32.mrf.mxu0 }
 0x165   :  { %v1232_v2 = vpop.f32.mrf.mxu1  ;;  %v1180_v19 = vadd.f32 %v1179_v1, %v1127_v11  ;;  %v1229_v54 = vadd.f32 %v1228_v63, %v1176_v41 }
 0x166   :  { %v1181_v6 = vpop.f32.mrf.mxu0 }
 0x167   :  { %v1234_v7 = vpop.f32.mrf.mxu1  ;;  %v1182_v23 = vadd.f32 %v1181_v6, %v1129_v17  ;;  %v1233_v29 = vadd.f32 %v1232_v2, %v1180_v19 }
 0x168   :  { %v1183_v14 = vpop.f32.mrf.mxu0 }
 0x169   :  { %v1236_v15 = vpop.f32.mrf.mxu1  ;;  %v1184_v33 = vadd.f32 %v1183_v14, %v1131_v25  ;;  %v1235_v37 = vadd.f32 %v1234_v7, %v1182_v23 }
 0x16a   :  { %v1185_v26 = vpop.f32.mrf.mxu0 }
 0x16b   :  { %v1238_v27 = vpop.f32.mrf.mxu1  ;;  %v1186_v43 = vadd.f32 %v1185_v26, %v1133_v31  ;;  %v1237_v48 = vadd.f32 %v1236_v15, %v1184_v33 }
 0x16d   :  { %v1239_v56 = vadd.f32 %v1238_v27, %v1186_v43 }
 0x17c   :  { %v1275_v34 = vpop.f32.mrf.mxu0 }
 0x17d   :  { %v1285_v35 = vpop.f32.mrf.mxu1  ;;  %v1276_v38 = vadd.f32 %v1275_v34, %v1223_v28 }
 0x17e   :  { %v1286_v39 = vadd.f32 %v1285_v35, %v1233_v29  ;;  %v1277_v44 = vpop.f32.mrf.mxu0 }
 0x17f   :  { %v1287_v45 = vpop.f32.mrf.mxu1  ;;  %v1278_v40 = vadd.f32 %v1277_v44, %v1225_v36  ;;  %v1294_v42 = vmax.f32 %v1276_v38, 0.0 }
 0x180   :  { %v1288_v46 = vadd.f32 %v1287_v45, %v1235_v37  ;;  %v1279_v49 = vpop.f32.mrf.mxu0  ;;  %v1298_v50 = vmax.f32 %v1286_v39, 0.0 }
 0x181   :  { %v1289_v51 = vpop.f32.mrf.mxu1  ;;  %v1295_v52 = vmax.f32 %v1278_v40, 0.0  ;;  %v1280_v55 = vadd.f32 %v1279_v49, %v1227_v47 }
 0x182   :  { %v1299_v53 = vmax.f32 %v1288_v46, 0.0  ;;  %v1290_v57 = vadd.f32 %v1289_v51, %v1237_v48  ;;  %v1281_v59 = vpop.f32.mrf.mxu0 }
 0x183   :  { %v1291_v60 = vpop.f32.mrf.mxu1  ;;  %v1502_v61 = vpack.c.bf16 %v1295_v52, %v1294_v42  ;;  %v1282_v0 = vadd.f32 %v1281_v59, %v1229_v54  ;;  %v1296_v58 = vmax.f32 %v1280_v55, 0.0 }
 0x184   :  { %v1504_v62 = vpack.c.bf16 %v1299_v53, %v1298_v50  ;;  %v1292_v1 = vadd.f32 %v1291_v60, %v1239_v56  ;;  %v1300_v2 = vmax.f32 %v1290_v57, 0.0 }
 0x185   :  { %1326 = vst [vmem:[%s1913_s3] sm:$0xff] %v1502_v61  ;;  %v1297_v63 = vmax.f32 %v1282_v0, 0.0 }
 0x186   :  { %1328 = vst [vmem:[%s1913_s3 + $0x10] sm:$0xff] %v1504_v62  ;;  %v1301_v3 = vmax.f32 %v1292_v1, 0.0 }
 0x187   :  { %v1503_v4 = vpack.c.bf16 %v1297_v63, %v1296_v58 }
 0x188   :  { %v1505_v5 = vpack.c.bf16 %v1301_v3, %v1300_v2 }
 0x189   :  { %1327 = vst [vmem:[%s1913_s3 + $0x8] sm:$0xff] %v1503_v4 }
 0x18a   :  { %1329 = vst [vmem:[%s1913_s3 + $0x18] sm:$0xff] %v1505_v5 }
 0x18b   :  { %1334 = vsyncpa [#allocation3], 1 }
 0x18c   :  { %1335 = vsyncpa [#allocation5], 1 }

// kernel: gen_nn_ske_to_image.7
= control target key start
LH: loop header
LB: loop body
LE: loop exit
PB: predicated region body
PF: predicated region fallthrough
CT: control target
= control target key end

     0   :  { %vm558_vm0 = vcmask 523264   ;;  %s1757_s1 = inlined_call_operand.vmem [shape: bf16[576,128], index: 1, kind: input, shape index: {}]   ;;  %s1758_s0 = inlined_call_operand.vmem [shape: bf16[128,576], index: 0, kind: input, shape index: {}]   ;;  %s1759_s2 = inlined_call_operand.vmem [shape: f32[1,128], index: 2, kind: input, shape index: {}]   ;;  %s1760_s3 = inlined_call_operand.vmem [shape: bf16[128,128], index: 3, kind: output, shape index: {}]  }
   0x1   :  { %v1310_v0 = vld [vmem:[%s1757_s1 + $0x78] sm:$0xff]   ;;  %v1314_v4 = vld [vmem:[%s1757_s1 + $0x70] sm:$0xff]   ;;  %v1318_v8 = vld [vmem:[%s1757_s1 + $0x68] sm:$0xff]  }
   0x2   :  { %v1311_v1 = vld [vmem:[%s1757_s1 + $0xf8] sm:$0xff]   ;;  %1138 = vmatprep.subr.bf16.mxu0 %v1310_v0  ;;  %v1315_v5 = vld [vmem:[%s1757_s1 + $0xf0] sm:$0xff]   ;;  %v1319_v9 = vld [vmem:[%s1757_s1 + $0xe8] sm:$0xff]  }
   0x3   :  { %v1312_v2 = vld [vmem:[%s1757_s1 + $0x38] sm:$0xff]   ;;  %1202 = vmatprep.subr.bf16.mxu1 %v1311_v1  ;;  %v1316_v6 = vld [vmem:[%s1757_s1 + $0x30] sm:$0xff]   ;;  %v1320_v10 = vld [vmem:[%s1757_s1 + $0x28] sm:$0xff]  }
   0x4   :  { %v1313_v3 = vld [vmem:[%s1757_s1 + $0xb8] sm:$0xff]   ;;  %1139 = vmatpush3.bf16.msra.mxu0 %v1312_v2  ;;  %v1317_v7 = vld [vmem:[%s1757_s1 + $0xb0] sm:$0xff]   ;;  %v1321_v11 = vld [vmem:[%s1757_s1 + $0xa8] sm:$0xff]  }
   0x5   :  { %1203 = vmatpush3.bf16.msra.mxu1 %v1313_v3  ;;  %1140 = vmatprep.subr.bf16.mxu0 %v1314_v4  ;;  %v1322_v12 = vld [vmem:[%s1757_s1 + $0x60] sm:$0xff]   ;;  %v1326_v16 = vld [vmem:[%s1757_s1 + $0x58] sm:$0xff]   ;;  %v1330_v20 = vld [vmem:[%s1757_s1 + $0x50] sm:$0xff]  }
   0x6   :  { %1204 = vmatprep.subr.bf16.mxu1 %v1315_v5  ;;  %v1323_v13 = vld [vmem:[%s1757_s1 + $0xe0] sm:$0xff]   ;;  %v1327_v17 = vld [vmem:[%s1757_s1 + $0xd8] sm:$0xff]   ;;  %v1331_v21 = vld [vmem:[%s1757_s1 + $0xd0] sm:$0xff]  }
   0x7   :  { %v1324_v14 = vld [vmem:[%s1757_s1 + $0x20] sm:$0xff]   ;;  %v1328_v18 = vld [vmem:[%s1757_s1 + $0x18] sm:$0xff]   ;;  %v1332_v22 = vld [vmem:[%s1757_s1 + $0x10] sm:$0xff]  }
   0x8   :  { %1141 = vmatpush3.bf16.msra.mxu0 %v1316_v6  ;;  %v1325_v15 = vld [vmem:[%s1757_s1 + $0xa0] sm:$0xff]   ;;  %v1329_v19 = vld [vmem:[%s1757_s1 + $0x98] sm:$0xff]   ;;  %v1333_v23 = vld [vmem:[%s1757_s1 + $0x90] sm:$0xff]  }
   0x9   :  { %1205 = vmatpush3.bf16.msra.mxu1 %v1317_v7  ;;  %1142 = vmatprep.subr.bf16.mxu0 %v1318_v8  ;;  %v1334_v24 = vld [vmem:[%s1757_s1 + $0x48] sm:$0xff]   ;;  %v1338_v28 = vld [vmem:[%s1757_s1 + $0x40] sm:$0xff]   ;;  %v1348_v36 = vld [vmem:[%s1757_s1 + $0x118] sm:$0xff]  }
   0xa   :  { %1206 = vmatprep.subr.bf16.mxu1 %v1319_v9  ;;  %v1335_v25 = vld [vmem:[%s1757_s1 + $0xc8] sm:$0xff]   ;;  %v1339_v29 = vld [vmem:[%s1757_s1 + $0xc0] sm:$0xff]   ;;  %v1361_v42 = vld [vmem:[%s1757_s1 + $0x110] sm:$0xff]  }
   0xb   :  { %v1336_v26 = vld [vmem:[%s1757_s1 + $0x8] sm:$0xff]   ;;  %v1340_v30 = vld [vmem:[%s1757_s1] sm:$0xff]   ;;  %v1357_v43 = vld [vmem:[%s1758_s0 + $0x5c] ss:$20 sps:$4 sm:$0xff]  }
   0xc   :  { %1143 = vmatpush3.bf16.msra.mxu0 %v1320_v10  ;;  %v1337_v27 = vld [vmem:[%s1757_s1 + $0x88] sm:$0xff]   ;;  %v1341_v31 = vld [vmem:[%s1757_s1 + $0x80] sm:$0xff]   ;;  %v1362_v47 = vld [vmem:[%s1758_s0 + $0x7c] ss:$20 sps:$4 sm:$0xff]  }
   0xd   :  { %1207 = vmatpush3.bf16.msra.mxu1 %v1321_v11  ;;  %1144 = vmatprep.subr.bf16.mxu0 %v1322_v12  ;;  %v1342_v32 = vld [vmem:[%s1758_s0] ss:$20 sps:$4 sm:$0xff]   ;;  %v1344_v33 = vld [vmem:[%s1758_s0 + $0x4] ss:$20 sps:$4 sm:$0xff]   ;;  %v1345_v34 = vld [vmem:[%s1758_s0 + $0x8] ss:$20 sps:$4 sm:$0xff]  }
   0xe   :  { %1208 = vmatprep.subr.bf16.mxu1 %v1323_v13  ;;  %v1347_v35 = vld [vmem:[%s1758_s0 + $0xc] ss:$20 sps:$4 sm:$0xff]   ;;  %615 = vmatprep.mubr.bf16.mxu0 %v1344_v33  ;;  %v1351_v38 = vld [vmem:[%s1758_s0 + $0x34] ss:$20 sps:$4 sm:$0xff]   ;;  %v1354_v40 = vld [vmem:[%s1758_s0 + $0x30] ss:$20 sps:$4 sm:$0xff]  }
   0xf   :  { %712 = vmatprep.mubr.bf16.mxu1 %v1347_v35  ;;  %v1349_v37 = vld [vmem:[%s1758_s0 + $0x2c] ss:$20 sps:$4 sm:$0xff]   ;;  %v1353_v39 = vld [vmem:[%s1758_s0 + $0x28] ss:$20 sps:$4 sm:$0xff]   ;;  %v1359_v44 = vld [vmem:[%s1758_s0 + $0x50] ss:$20 sps:$4 sm:$0xff]  }
  0x10   :  { %1145 = vmatpush3.bf16.msra.mxu0 %v1324_v14  ;;  %v1355_v41 = vld [vmem:[%s1758_s0 + $0x54] ss:$20 sps:$4 sm:$0xff]   ;;  %v1360_v45 = vld [vmem:[%s1758_s0 + $0x58] ss:$20 sps:$4 sm:$0xff]   ;;  %v1387_v49 = vld [vmem:[%s1757_s1 + $0x100] sm:$0xff]  }
  0x11   :  { %1209 = vmatpush3.bf16.msra.mxu1 %v1325_v15  ;;  %1146 = vmatprep.subr.bf16.mxu0 %v1326_v16  ;;  %v1374_v46 = vld [vmem:[%s1757_s1 + $0x108] sm:$0xff]   ;;  %v1364_v48 = vld [vmem:[%s1758_s0 + $0x84] ss:$20 sps:$4 sm:$0xff]   ;;  %v1367_v51 = vld [vmem:[%s1758_s0 + $0x80] ss:$20 sps:$4 sm:$0xff]  }
  0x12   :  { %1210 = vmatprep.subr.bf16.mxu1 %v1327_v17  ;;  %v1366_v50 = vld [vmem:[%s1758_s0 + $0x78] ss:$20 sps:$4 sm:$0xff]   ;;  %v1372_v54 = vld [vmem:[%s1758_s0 + $0xa0] ss:$20 sps:$4 sm:$0xff]   ;;  %v1373_v55 = vld [vmem:[%s1758_s0 + $0xa8] ss:$20 sps:$4 sm:$0xff]  }
  0x13   :  { %v1368_v52 = vld [vmem:[%s1758_s0 + $0xa4] ss:$20 sps:$4 sm:$0xff]   ;;  %v1370_v53 = vld [vmem:[%s1758_s0 + $0xac] ss:$20 sps:$4 sm:$0xff]   ;;  %v1377_v57 = vld [vmem:[%s1758_s0 + $0xd4] ss:$20 sps:$4 sm:$0xff]  }
  0x14   :  { %1147 = vmatpush3.bf16.msra.mxu0 %v1328_v18  ;;  %v1375_v56 = vld [vmem:[%s1758_s0 + $0xcc] ss:$20 sps:$4 sm:$0xff]   ;;  %v1379_v58 = vld [vmem:[%s1758_s0 + $0xc8] ss:$20 sps:$4 sm:$0xff]   ;;  %v1380_v59 = vld [vmem:[%s1758_s0 + $0xd0] ss:$20 sps:$4 sm:$0xff]  }
  0x15   :  { %1211 = vmatpush3.bf16.msra.mxu1 %v1329_v19  ;;  %1148 = vmatprep.subr.bf16.mxu0 %v1330_v20  ;;  %v1381_v60 = vld [vmem:[%s1758_s0 + $0xf4] ss:$20 sps:$4 sm:$0xff]   ;;  %v1383_v61 = vld [vmem:[%s1758_s0 + $0xfc] ss:$20 sps:$4 sm:$0xff]   ;;  %v1386_v63 = vld [vmem:[%s1758_s0 + $0xf8] ss:$20 sps:$4 sm:$0xff]  }
  0x16   :  { %1212 = vmatprep.subr.bf16.mxu1 %v1331_v21  ;;  %v1385_v62 = vld [vmem:[%s1758_s0 + $0xf0] ss:$20 sps:$4 sm:$0xff]   ;;  %v1392_v2 = vld [vmem:[%s1758_s0 + $0x118] ss:$20 sps:$4 sm:$0xff]   ;;  %v1393_v3 = vld [vmem:[%s1758_s0 + $0x120] ss:$20 sps:$4 sm:$0xff]  }
  0x17   :  { %v1388_v0 = vld [vmem:[%s1758_s0 + $0x11c] ss:$20 sps:$4 sm:$0xff]   ;;  %v1390_v1 = vld [vmem:[%s1758_s0 + $0x124] ss:$20 sps:$4 sm:$0xff]   ;;  %v1398_v8 = vld [vmem:[%s1758_s0 + $0x60] ss:$20 sps:$4 sm:$0xff]  }
  0x18   :  { %1149 = vmatpush3.bf16.msra.mxu0 %v1332_v22  ;;  %v1394_v4 = vld [vmem:[%s1758_s0 + $0x10] ss:$20 sps:$4 sm:$0xff]   ;;  %v1396_v6 = vld [vmem:[%s1758_s0 + $0x38] ss:$20 sps:$4 sm:$0xff]   ;;  %v1399_v9 = vld [vmem:[%s1758_s0 + $0x100] ss:$20 sps:$4 sm:$0xff]  }
  0x19   :  { %1213 = vmatpush3.bf16.msra.mxu1 %v1333_v23  ;;  %1150 = vmatprep.subr.bf16.mxu0 %v1334_v24  ;;  %v1395_v5 = vld [vmem:[%s1758_s0 + $0xb0] ss:$20 sps:$4 sm:$0xff]   ;;  %v1397_v7 = vld [vmem:[%s1758_s0 + $0xd8] ss:$20 sps:$4 sm:$0xff]   ;;  %v1400_v10 = vld [vmem:[%s1758_s0 + $0x88] ss:$20 sps:$4 sm:$0xff]  }
  0x1a   :  { %1214 = vmatprep.subr.bf16.mxu1 %v1335_v25  ;;  %v1401_v11 = vld [vmem:[%s1758_s0 + $0x128] ss:$20 sps:$4 sm:$0xff]   ;;  %v1661_v14 = vld [vmem:[%s1759_s2] ss:$0 sm:$0xff] }
  0x1c   :  { %1151 = vmatpush3.bf16.msra.mxu0 %v1336_v26 }
  0x1d   :  { %1215 = vmatpush3.bf16.msra.mxu1 %v1337_v27  ;;  %1152 = vmatprep.subr.bf16.mxu0 %v1338_v28 }
  0x1e   :  { %1216 = vmatprep.subr.bf16.mxu1 %v1339_v29 }
  0x20   :  { %1153 = vmatpush3.bf16.msra.mxu0 %v1340_v30 }
  0x21   :  { %1217 = vmatpush3.bf16.msra.mxu1 %v1341_v31  ;;  %1278 = vmatprep.subr.bf16.mxu0 %v1348_v36 }
  0x22   :  { %1302 = vmatprep.subr.bf16.mxu1 %v1348_v36 }
  0x23   :  { %616 = vmatmul.mubr.bf16.vlgmr.msra.gmra.mxu0 %v1342_v32 }
  0x24   :  { %713 = vmatmul.mubr.bf16.vlgmr.msra.gmra.mxu1 %v1345_v34  ;;  %1279 = vmatpush3.bf16.msra.mxu0 %v1348_v36 }
  0x25   :  { %1306 = vmatpush3.bf16.msra.mxu1 %v1348_v36  ;;  %623 = vmatprep.mubr.bf16.mxu0 %v1349_v37 }
  0x26   :  { %720 = vmatprep.mubr.bf16.mxu1 %v1351_v38  ;;  %1280 = vmatprep.subr.bf16.mxu0 %v1361_v42 }
  0x27   :  { %1303 = vmatprep.subr.bf16.mxu1 %v1361_v42 }
  0x28   :  { %1281 = vmatpush3.bf16.msra.mxu0 %v1361_v42 }
  0x29   :  { %1307 = vmatpush3.bf16.msra.mxu1 %v1361_v42  ;;  %1282 = vmatprep.subr.bf16.mxu0 %v1374_v46 }
  0x2a   :  { %1304 = vmatprep.subr.bf16.mxu1 %v1374_v46 }
  0x2b   :  { %624 = vmatmul.mubr.bf16.gmra.mxu0 %v1353_v39 }
  0x2c   :  { %721 = vmatmul.mubr.bf16.gmra.mxu1 %v1354_v40  ;;  %631 = vmatprep.mubr.bf16.mxu0 %v1355_v41 }
  0x2d   :  { %728 = vmatprep.mubr.bf16.mxu1 %v1357_v43  ;;  %1283 = vmatpush3.bf16.msra.mxu0 %v1374_v46 }
  0x2e   :  { %1308 = vmatpush3.bf16.msra.mxu1 %v1374_v46  ;;  %1284 = vmatprep.subr.bf16.mxu0 %v1387_v49 }
  0x2f   :  { %1305 = vmatprep.subr.bf16.mxu1 %v1387_v49 }
  0x31   :  { %1285 = vmatpush3.bf16.msra.mxu0 %v1387_v49 }
  0x32   :  { %1309 = vmatpush3.bf16.msra.mxu1 %v1387_v49 }
  0x33   :  { %632 = vmatmul.mubr.bf16.gmra.mxu0 %v1359_v44 }
  0x34   :  { %729 = vmatmul.mubr.bf16.gmra.mxu1 %v1360_v45  ;;  %639 = vmatprep.mubr.bf16.mxu0 %v1362_v47 }
  0x35   :  { %736 = vmatprep.mubr.bf16.mxu1 %v1364_v48 }
  0x3b   :  { %640 = vmatmul.mubr.bf16.gmra.mxu0 %v1366_v50 }
  0x3c   :  { %737 = vmatmul.mubr.bf16.gmra.mxu1 %v1367_v51  ;;  %647 = vmatprep.mubr.bf16.mxu0 %v1368_v52 }
  0x3d   :  { %744 = vmatprep.mubr.bf16.mxu1 %v1370_v53 }
  0x43   :  { %648 = vmatmul.mubr.bf16.gmra.mxu0 %v1372_v54 }
  0x44   :  { %745 = vmatmul.mubr.bf16.gmra.mxu1 %v1373_v55  ;;  %655 = vmatprep.mubr.bf16.mxu0 %v1375_v56 }
  0x45   :  { %752 = vmatprep.mubr.bf16.mxu1 %v1377_v57 }
  0x4b   :  { %656 = vmatmul.mubr.bf16.gmra.mxu0 %v1379_v58 }
  0x4c   :  { %753 = vmatmul.mubr.bf16.gmra.mxu1 %v1380_v59  ;;  %663 = vmatprep.mubr.bf16.mxu0 %v1381_v60 }
  0x4d   :  { %760 = vmatprep.mubr.bf16.mxu1 %v1383_v61 }
  0x53   :  { %664 = vmatmul.mubr.bf16.gmra.mxu0 %v1385_v62 }
  0x54   :  { %761 = vmatmul.mubr.bf16.gmra.mxu1 %v1386_v63  ;;  %671 = vmatprep.mubr.bf16.mxu0 %v1388_v0 }
  0x55   :  { %768 = vmatprep.mubr.bf16.mxu1 %v1390_v1 }
  0x5b   :  { %672 = vmatmul.mubr.bf16.gmra.mxu0 %v1392_v2 }
  0x5c   :  { %769 = vmatmul.mubr.bf16.gmra.mxu1 %v1393_v3  ;;  %1286 = vmatprep.mubr.msk.bf16.mxu0 %vm558_vm0, %v1394_v4 }
  0x5d   :  { %1294 = vmatprep.mubr.msk.bf16.mxu1 %vm558_vm0, %v1395_v5 }
  0x63   :  { %1287 = vmatmul.mubr.msk.bf16.vlgmr.msra.gmra.mxu0 %vm558_vm0, %v1396_v6 }
  0x64   :  { %1295 = vmatmul.mubr.msk.bf16.vlgmr.msra.gmra.mxu1 %vm558_vm0, %v1397_v7  ;;  %1290 = vmatprep.mubr.msk.bf16.mxu0 %vm558_vm0, %v1398_v8 }
  0x65   :  { %1298 = vmatprep.mubr.msk.bf16.mxu1 %vm558_vm0, %v1399_v9 }
  0x6b   :  { %1291 = vmatmul.mubr.msk.bf16.gmra.mxu0 %vm558_vm0, %v1400_v10 }
  0x6c   :  { %1299 = vmatmul.mubr.msk.bf16.gmra.mxu1 %vm558_vm0, %v1401_v11 }
  0xe3   :  { %v1154_v12 = vpop.f32.mrf.mxu0 }
  0xe4   :  { %v1218_v13 = vpop.f32.mrf.mxu1 }
  0xe5   :  { %v1155_v15 = vpop.f32.mrf.mxu0 }
  0xe6   :  { %v1156_v16 = vadd.f32 %v1155_v15, %v1154_v12  ;;  %v1219_v17 = vpop.f32.mrf.mxu1 }
  0xe7   :  { %v1157_v18 = vpop.f32.mrf.mxu0  ;;  %v1220_v20 = vadd.f32 %v1219_v17, %v1218_v13 }
  0xe8   :  { %v618_v19 = vadd.f32 %v1156_v16, %v1661_v14  ;;  %v1664_v21 = vpop.f32.mrf.mxu1 }
  0xe9   :  { %v1158_v22 = vpop.f32.mrf.mxu0 }
  0xea   :  { %v1666_v23 = vpop.f32.mrf.mxu1  ;;  %v1668_v24 = vadd.f32 %v1220_v20, %v618_v19  ;;  %v1159_v6 = vadd.f32 %v1158_v22, %v1157_v18 }
  0xeb   :  { %v1160_v25 = vpop.f32.mrf.mxu0 }
  0xec   :  { %1761 = vst [vmem:[#allocation2_spill] sm:$0xff] %v1668_v24  ;;  %v1224_v26 = vpop.f32.mrf.mxu1  ;;  %v621_v15 = vadd.f32 %v1159_v6, %v1661_v14 }
  0xed   :  { %v1161_v27 = vpop.f32.mrf.mxu0 }
  0xee   :  { %v1225_v28 = vpop.f32.mrf.mxu1  ;;  %v1162_v8 = vadd.f32 %v1161_v27, %v1160_v25  ;;  %v1223_v25 = vadd.f32 %v1666_v23, %v1664_v21 }
  0xef   :  { %v1163_v29 = vpop.f32.mrf.mxu0  ;;  %v1226_v27 = vadd.f32 %v1225_v28, %v1224_v26 }
  0xf0   :  { %v1227_v30 = vpop.f32.mrf.mxu1  ;;  %v626_v19 = vadd.f32 %v1162_v8, %v1661_v14 }
  0xf1   :  { %v1164_v31 = vpop.f32.mrf.mxu0 }
  0xf2   :  { %v1228_v32 = vpop.f32.mrf.mxu1  ;;  %v1165_v9 = vadd.f32 %v1164_v31, %v1163_v29 }
  0xf3   :  { %v1166_v33 = vpop.f32.mrf.mxu0  ;;  %v1229_v29 = vadd.f32 %v1228_v32, %v1227_v30 }
  0xf4   :  { %v1230_v34 = vpop.f32.mrf.mxu1  ;;  %v629_v20 = vadd.f32 %v1165_v9, %v1661_v14  ;;  %v718_v9 = vadd.f32 %v1223_v25, %v621_v15 }
  0xf5   :  { %v1167_v35 = vpop.f32.mrf.mxu0 }
  0xf6   :  { %v1231_v36 = vpop.f32.mrf.mxu1  ;;  %v1168_v10 = vadd.f32 %v1167_v35, %v1166_v33  ;;  %v726_v24 = vadd.f32 %v1229_v29, %v629_v20 }
  0xf7   :  { %v1169_v37 = vpop.f32.mrf.mxu0  ;;  %v1232_v35 = vadd.f32 %v1231_v36, %v1230_v34 }
  0xf8   :  { %v1670_v38 = vpop.f32.mrf.mxu1  ;;  %v634_v18 = vadd.f32 %v1168_v10, %v1661_v14  ;;  %v723_v10 = vadd.f32 %v1226_v27, %v626_v19 }
  0xf9   :  { %v1170_v39 = vpop.f32.mrf.mxu0 }
  0xfa   :  { %v1672_v40 = vpop.f32.mrf.mxu1  ;;  %v1171_v6 = vadd.f32 %v1170_v39, %v1169_v37  ;;  %v1702_v21 = vadd.f32 %v1232_v35, %v634_v18 }
  0xfb   :  { %v1172_v41 = vpop.f32.mrf.mxu0  ;;  %v1706_v23 = vadd.f32 %v1672_v40, %v1670_v38 }
  0xfc   :  { %v1674_v42 = vpop.f32.mrf.mxu1  ;;  %v1711_v34 = vadd.f32 %v1171_v6, %v1661_v14 }
  0xfd   :  { %v1173_v43 = vpop.f32.mrf.mxu0 }
  0xfe   :  { %v1237_v44 = vpop.f32.mrf.mxu1  ;;  %v1174_v16 = vadd.f32 %v1173_v43, %v1172_v41 }
  0xff   :  { %v1175_v45 = vpop.f32.mrf.mxu0  ;;  %v1238_v26 = vadd.f32 %v1237_v44, %v1674_v42 }
 0x100   :  { %v1676_v46 = vpop.f32.mrf.mxu1  ;;  %v642_v8 = vadd.f32 %v1174_v16, %v1661_v14 }
 0x101   :  { %v1176_v47 = vpop.f32.mrf.mxu0 }
 0x102   :  { %v1678_v48 = vpop.f32.mrf.mxu1  ;;  %v1177_v28 = vadd.f32 %v1176_v47, %v1175_v45 }
 0x103   :  { %v1178_v49 = vpop.f32.mrf.mxu0  ;;  %v1241_v15 = vadd.f32 %v1678_v48, %v1676_v46 }
 0x104   :  { %v1680_v50 = vpop.f32.mrf.mxu1 }
 0x105   :  { %v1179_v51 = vpop.f32.mrf.mxu0 }
 0x106   :  { %v1243_v52 = vpop.f32.mrf.mxu1  ;;  %v1180_v31 = vadd.f32 %v1179_v51, %v1178_v49 }
 0x107   :  { %v1181_v53 = vpop.f32.mrf.mxu0  ;;  %v1244_v51 = vadd.f32 %v1243_v52, %v1680_v50 }
 0x108   :  { %v1245_v54 = vpop.f32.mrf.mxu1  ;;  %v650_v30 = vadd.f32 %v1180_v31, %v1661_v14 }
 0x109   :  { %v1182_v55 = vpop.f32.mrf.mxu0 }
 0x10a   :  { %v1246_v56 = vpop.f32.mrf.mxu1  ;;  %v1183_v41 = vadd.f32 %v1182_v55, %v1181_v53  ;;  %v739_v55 = vadd.f32 %v1238_v26, %v642_v8 }
 0x10b   :  { %v1184_v57 = vpop.f32.mrf.mxu0  ;;  %v1247_v53 = vadd.f32 %v1246_v56, %v1245_v54 }
 0x10c   :  { %v1248_v58 = vpop.f32.mrf.mxu1  ;;  %v653_v36 = vadd.f32 %v1183_v41, %v1661_v14 }
 0x10d   :  { %v1185_v59 = vpop.f32.mrf.mxu0 }
 0x10e   :  { %v1249_v60 = vpop.f32.mrf.mxu1  ;;  %v1186_v22 = vadd.f32 %v1185_v59, %v1184_v57  ;;  %v750_v54 = vadd.f32 %v1247_v53, %v653_v36 }
 0x10f   :  { %v1187_v61 = vpop.f32.mrf.mxu0  ;;  %v1250_v37 = vadd.f32 %v1249_v60, %v1248_v58  ;;  %v747_v60 = vadd.f32 %v1244_v51, %v650_v30 }
 0x110   :  { %v1251_v62 = vpop.f32.mrf.mxu1  ;;  %v658_v57 = vadd.f32 %v1186_v22, %v1661_v14 }
 0x111   :  { %v1188_v63 = vpop.f32.mrf.mxu0 }
 0x112   :  { %v1252_v0 = vpop.f32.mrf.mxu1  ;;  %v1189_v43 = vadd.f32 %v1188_v63, %v1187_v61  ;;  %v755_v47 = vadd.f32 %v1250_v37, %v658_v57  ;;  %v645_v63 = vadd.f32 %v1177_v28, %v1661_v14 }
 0x113   :  { %v1190_v1 = vpop.f32.mrf.mxu0  ;;  %v1253_v42 = vadd.f32 %v1252_v0, %v1251_v62  ;;  %v1765_v0 = vld [vmem:[#allocation2_spill] sm:$0xff] }
 0x114   :  { %v1682_v2 = vpop.f32.mrf.mxu1  ;;  %v661_v39 = vadd.f32 %v1189_v43, %v1661_v14  ;;  %v742_v37 = vadd.f32 %v1241_v15, %v645_v63 }
 0x115   :  { %v1191_v3 = vpop.f32.mrf.mxu0 }
 0x116   :  { %v1684_v4 = vpop.f32.mrf.mxu1  ;;  %v1192_v44 = vadd.f32 %v1191_v3, %v1190_v1  ;;  %v758_v52 = vadd.f32 %v1253_v42, %v661_v39 }
 0x117   :  { %v1193_v5 = vpop.f32.mrf.mxu0  ;;  %v1256_v56 = vadd.f32 %v1684_v4, %v1682_v2 }
 0x118   :  { %v1686_v7 = vpop.f32.mrf.mxu1 }
 0x119   :  { %1762 = vst [vmem:[#allocation3_spill] sm:$0xff] %v1686_v7  ;;  %v1194_v11 = vpop.f32.mrf.mxu0 }
 0x11a   :  { %v1688_v12 = vpop.f32.mrf.mxu1  ;;  %v1195_v45 = vadd.f32 %v1194_v11, %v1193_v5 }
 0x11b   :  { %1763 = vst [vmem:[#allocation4_spill] sm:$0xff] %v1688_v12  ;;  %v1196_v13 = vpop.f32.mrf.mxu0 }
 0x11c   :  { %v1691_v17 = vpop.f32.mrf.mxu1  ;;  %v669_v46 = vadd.f32 %v1195_v45, %v1661_v14 }
 0x11d   :  { %1764 = vst [vmem:[#allocation5_spill] sm:$0xff] %v1691_v17  ;;  %v1197_v7 = vpop.f32.mrf.mxu0 }
 0x11e   :  { %v1261_v33 = vpop.f32.mrf.mxu1  ;;  %v1198_v38 = vadd.f32 %v1197_v7, %v1196_v13  ;;  %v666_v7 = vadd.f32 %v1192_v44, %v1661_v14  ;;  %v734_v44 = vadd.f32 %v1706_v23, %v1711_v34 }
 0x11f   :  { %v1199_v12 = vpop.f32.mrf.mxu0 }
 0x120   :  { %v1699_v17 = vpop.f32.mrf.mxu1  ;;  %v674_v62 = vadd.f32 %v1198_v38, %v1661_v14  ;;  %v763_v30 = vadd.f32 %v1256_v56, %v666_v7  ;;  %v1767_v39 = vld [vmem:[#allocation3_spill] sm:$0xff] }
 0x121   :  { %v1200_v59 = vpop.f32.mrf.mxu0 }
 0x122   :  { %v1264_v32 = vpop.f32.mrf.mxu1  ;;  %v1201_v19 = vadd.f32 %v1200_v59, %v1199_v12 }
 0x123   :  { %v1288_v49 = vpop.f32.mrf.mxu0  ;;  %v1265_v59 = vadd.f32 %v1264_v32, %v1699_v17 }
 0x124   :  { %v1296_v40 = vpop.f32.mrf.mxu1  ;;  %v820_v58 = vadd.f32 %v1288_v49, %v723_v10  ;;  %v1766_v13 = vld [vmem:[#allocation5_spill] sm:$0xff]  ;;  %v677_v2 = vadd.f32 %v1201_v19, %v1661_v14  ;;  %v1768_v49 = vld [vmem:[#allocation4_spill] sm:$0xff] }
 0x125   :  { %v811_v61 = vpop.f32.mrf.mxu0  ;;  %v852_v20 = vadd.f32 %v1296_v40, %v755_v47  ;;  %v1262_v18 = vadd.f32 %v1261_v33, %v1766_v13  ;;  %v1259_v51 = vadd.f32 %v1768_v49, %v1767_v39 }
 0x126   :  { %v843_v16 = vpop.f32.mrf.mxu1  ;;  %v812_v1 = vadd.f32 %v811_v61, %v1765_v0  ;;  %v876_v22 = vmax.f32 %v820_v58, 0.0  ;;  %v774_v38 = vadd.f32 %v1265_v59, %v677_v2 }
 0x127   :  { %v1289_v50 = vpop.f32.mrf.mxu0  ;;  %v844_v48 = vadd.f32 %v843_v16, %v747_v60  ;;  %v884_v4 = vmax.f32 %v852_v20, 0.0  ;;  %v771_v8 = vadd.f32 %v1262_v18, %v674_v62  ;;  %v766_v63 = vadd.f32 %v1259_v51, %v669_v46 }
 0x128   :  { %v823_v3 = vadd.f32 %v1289_v50, %v726_v24  ;;  %v1297_v5 = vpop.f32.mrf.mxu1  ;;  %v874_v6 = vmax.f32 %v812_v1, 0.0 }
 0x129   :  { %v855_v11 = vadd.f32 %v1297_v5, %v758_v52  ;;  %v814_v12 = vpop.f32.mrf.mxu0  ;;  %v882_v10 = vmax.f32 %v844_v48, 0.0 }
 0x12a   :  { %v877_v25 = vmax.f32 %v823_v3, 0.0  ;;  %v815_v27 = vadd.f32 %v814_v12, %v718_v9  ;;  %v846_v29 = vpop.f32.mrf.mxu1 }
 0x12b   :  { %v885_v31 = vmax.f32 %v855_v11, 0.0  ;;  %v847_v35 = vadd.f32 %v846_v29, %v750_v54  ;;  %v1292_v24 = vpop.f32.mrf.mxu0 }
 0x12c   :  { %v1099_v41 = vpack.c.bf16 %v877_v25, %v876_v22  ;;  %v875_v43 = vmax.f32 %v815_v27, 0.0  ;;  %v1300_v57 = vpop.f32.mrf.mxu1  ;;  %v836_v9 = vadd.f32 %v1292_v24, %v739_v55 }
 0x12d   :  { %v1119_v26 = vpack.c.bf16 %v885_v31, %v884_v4  ;;  %v883_v33 = vmax.f32 %v847_v35, 0.0  ;;  %v827_v28 = vpop.f32.mrf.mxu0  ;;  %v868_v32 = vadd.f32 %v1300_v57, %v771_v8 }
 0x12e   :  { %1131 = vst [vmem:[%s1760_s3 + $0x8] sm:$0xff] %v1099_v41   ;;  %v1094_v14 = vpack.c.bf16 %v875_v43, %v874_v6  ;;  %v859_v36 = vpop.f32.mrf.mxu1  ;;  %v828_v40 = vadd.f32 %v827_v28, %v1702_v21  ;;  %v880_v15 = vmax.f32 %v836_v9, 0.0 }
 0x12f   :  { %1135 = vst [vmem:[%s1760_s3 + $0x28] sm:$0xff] %v1119_v26   ;;  %v1114_v17 = vpack.c.bf16 %v883_v33, %v882_v10  ;;  %v1293_v53 = vpop.f32.mrf.mxu0  ;;  %v860_v45 = vadd.f32 %v859_v36, %v763_v30  ;;  %v888_v19 = vmax.f32 %v868_v32, 0.0 }
 0x130   :  { %1095 = vst [vmem:[%s1760_s3] sm:$0xff] %v1094_v14   ;;  %v839_v55 = vadd.f32 %v1293_v53, %v742_v37  ;;  %v1301_v42 = vpop.f32.mrf.mxu1  ;;  %v878_v50 = vmax.f32 %v828_v40, 0.0 }
 0x131   :  { %1134 = vst [vmem:[%s1760_s3 + $0x20] sm:$0xff] %v1114_v17   ;;  %v871_v47 = vadd.f32 %v1301_v42, %v774_v38  ;;  %v830_v61 = vpop.f32.mrf.mxu0  ;;  %v886_v56 = vmax.f32 %v860_v45, 0.0 }
 0x132   :  { %v881_v58 = vmax.f32 %v839_v55, 0.0  ;;  %v831_v60 = vadd.f32 %v830_v61, %v734_v44  ;;  %v862_v16 = vpop.f32.mrf.mxu1 }
 0x133   :  { %v889_v20 = vmax.f32 %v871_v47, 0.0  ;;  %v863_v21 = vadd.f32 %v862_v16, %v766_v63 }
 0x134   :  { %v1109_v52 = vpack.c.bf16 %v881_v58, %v880_v15  ;;  %v879_v54 = vmax.f32 %v831_v60, 0.0 }
 0x135   :  { %v1129_v23 = vpack.c.bf16 %v889_v20, %v888_v19  ;;  %v887_v34 = vmax.f32 %v863_v21, 0.0 }
 0x136   :  { %1133 = vst [vmem:[%s1760_s3 + $0x18] sm:$0xff] %v1109_v52   ;;  %v1104_v62 = vpack.c.bf16 %v879_v54, %v878_v50 }
 0x137   :  { %1137 = vst [vmem:[%s1760_s3 + $0x38] sm:$0xff] %v1129_v23   ;;  %v1124_v0 = vpack.c.bf16 %v887_v34, %v886_v56 }
 0x138   :  { %1132 = vst [vmem:[%s1760_s3 + $0x10] sm:$0xff] %v1104_v62  }
 0x139   :  { %1136 = vst [vmem:[%s1760_s3 + $0x30] sm:$0xff] %v1124_v0  }

// kernel: gen_nn_ske_to_image.8
= control target key start
LH: loop header
LB: loop body
LE: loop exit
PB: predicated region body
PF: predicated region fallthrough
CT: control target
= control target key end

     0   :  { %s1806_s12 = smov 0   ;;  %s2038_s0 = inlined_call_operand.vmem [shape: bf16[512,288], index: 0, kind: input, shape index: {}]   ;;  %s2039_s1 = inlined_call_operand.vmem [shape: bf16[288,128], index: 1, kind: input, shape index: {}]   ;;  %s2040_s2 = inlined_call_operand.vmem [shape: f32[1,128], index: 2, kind: input, shape index: {}]   ;;  %s2041_s3 = inlined_call_operand.vmem [shape: bf16[512,128], index: 3, kind: output, shape index: {}]  }
   0x1 LB: > { %s1252_s13 = sadd.s32 4294967295, %s1784_s12   ;;  %p1256_p0 = scmp.ge.s32.totalorder %s1784_s12, 1  ;;  %s1784_s12 = sphi %s1806_s12, %s13_s12  }
   0x2   : > { %p139_p1 = scmp.lt.s32.totalorder %s1784_s12, 3 }
   0x4   : > { %p140_p2 = pnand %p1256_p0, %p139_p1 }
   0x5   : > { %s1257_s16 = sshll.u32 (!%p140_p2), %s1252_s13, 5 }
   0x6   : > { %143 = sbr.rel (%p140_p2) target bundleno = 342 (0x156), region = 32  ;;  %p165_p3 = scmp.lt.s32.totalorder (!%p140_p2), %s1257_s16, 63 }
   0xb   : > { %v1696_v0 = vld [vmem:[%s2039_s1 + $0x78] sm:$0xff]   ;;  %v1698_v2 = vld [vmem:[%s2039_s1 + $0x70] sm:$0xff]   ;;  %v1700_v4 = vld [vmem:[%s2039_s1 + $0x68] sm:$0xff]   ;;  %s2043_s16 = smov (!%p165_p3, %s1257_s16), 63  ;;  %vm633_vm0 = vcmask 261120  }
   0xc   : > { %v1697_v1 = vld [vmem:[%s2039_s1 + $0x38] sm:$0xff]   ;;  %1505 = vmatprep.subr.bf16.mxu0 %v1696_v0  ;;  %1671 = vmatprep.subr.bf16.mxu1 %v1696_v0  ;;  %v1699_v3 = vld [vmem:[%s2039_s1 + $0x30] sm:$0xff]   ;;  %v1701_v5 = vld [vmem:[%s2039_s1 + $0x28] sm:$0xff]   ;;  %s1687_s29 = smul.u32 12, %s2043_s16  ;;  %s1260_s5 = sshll.u32 %s2043_s16, 2 }
   0xd   : > { %1506 = vmatpush3.bf16.msra.mxu0 %v1697_v1  ;;  %1679 = vmatpush3.bf16.msra.mxu1 %v1697_v1  ;;  %v1702_v6 = vld [vmem:[%s2039_s1 + $0x60] sm:$0xff]   ;;  %v1704_v8 = vld [vmem:[%s2039_s1 + $0x58] sm:$0xff]   ;;  %v1706_v10 = vld [vmem:[%s2039_s1 + $0x50] sm:$0xff]   ;;  %s1973_s8 = scalar_lea.vmem %s2041_s3, %s1260_s5 }
   0xe   : > { %1507 = vmatprep.subr.bf16.mxu0 %v1698_v2  ;;  %1672 = vmatprep.subr.bf16.mxu1 %v1698_v2  ;;  %v1703_v7 = vld [vmem:[%s2039_s1 + $0x20] sm:$0xff]   ;;  %s1847_s9 = scalar_lea.vmem %s2038_s0, %s1687_s29  ;;  %v1705_v9 = vld [vmem:[%s2039_s1 + $0x18] sm:$0xff]   ;;  %v1707_v13 = vld [vmem:[%s2039_s1 + $0x10] sm:$0xff]  }
   0xf   : > { %v1714_v11 = vld [vmem:[%s1847_s9 + $0x4] ss:$12 sps:$4 sm:$0xff]   ;;  %v1708_v14 = vld [vmem:[%s2039_s1 + $0x48] sm:$0xff]   ;;  %v1725_v26 = vld [vmem:[%s1847_s9 + $0x34] ss:$12 sps:$4 sm:$0xff]  }
  0x10   : > { %v1717_v12 = vld [vmem:[%s1847_s9 + $0x124] ss:$12 sps:$4 sm:$0xff]   ;;  %714 = vmatprep.mubr.bf16.mxu0 %v1714_v11  ;;  %v1709_v15 = vld [vmem:[%s2039_s1 + $0x8] sm:$0xff]   ;;  %v1727_v27 = vld [vmem:[%s1847_s9 + $0x154] ss:$12 sps:$4 sm:$0xff]  }
  0x11   : > { %1508 = vmatpush3.bf16.msra.mxu0 %v1699_v3  ;;  %1680 = vmatpush3.bf16.msra.mxu1 %v1699_v3  ;;  %v1710_v16 = vld [vmem:[%s2039_s1 + $0x40] sm:$0xff]   ;;  %v1718_v18 = vld [vmem:[%s2039_s1 + $0x88] sm:$0xff]   ;;  %v1729_v28 = vld [vmem:[%s1847_s9 + $0x30] ss:$12 sps:$4 sm:$0xff]  }
  0x12   : > { %1509 = vmatprep.subr.bf16.mxu0 %v1700_v4  ;;  %1673 = vmatprep.subr.bf16.mxu1 %v1700_v4  ;;  %v1711_v17 = vld [vmem:[%s2039_s1] sm:$0xff]   ;;  %v1719_v21 = vld [vmem:[%s1847_s9 + $0x1c] ss:$12 sps:$4 sm:$0xff]   ;;  %v1732_v30 = vld [vmem:[%s1847_s9 + $0x4c] ss:$12 sps:$4 sm:$0xff]  }
  0x13   : > { %810 = vmatprep.mubr.bf16.mxu1 %v1717_v12  ;;  %v1712_v19 = vld [vmem:[%s1847_s9] ss:$12 sps:$4 sm:$0xff]   ;;  %v1721_v22 = vld [vmem:[%s1847_s9 + $0x13c] ss:$12 sps:$4 sm:$0xff]   ;;  %v1723_v24 = vld [vmem:[%s1847_s9 + $0x18] ss:$12 sps:$4 sm:$0xff]  }
  0x14   : > { %v1715_v20 = vld [vmem:[%s1847_s9 + $0x120] ss:$12 sps:$4 sm:$0xff]   ;;  %v1724_v25 = vld [vmem:[%s1847_s9 + $0x138] ss:$12 sps:$4 sm:$0xff]   ;;  %v1730_v29 = vld [vmem:[%s1847_s9 + $0x150] ss:$12 sps:$4 sm:$0xff]  }
  0x15   : > { %1510 = vmatpush3.bf16.msra.mxu0 %v1701_v5  ;;  %1681 = vmatpush3.bf16.msra.mxu1 %v1701_v5  ;;  %v1731_v23 = vld [vmem:[%s2039_s1 + $0x80] sm:$0xff]   ;;  %v1734_v31 = vld [vmem:[%s1847_s9 + $0x16c] ss:$12 sps:$4 sm:$0xff]   ;;  %v1736_v32 = vld [vmem:[%s1847_s9 + $0x48] ss:$12 sps:$4 sm:$0xff]  }
  0x16   : > { %1511 = vmatprep.subr.bf16.mxu0 %v1702_v6  ;;  %1674 = vmatprep.subr.bf16.mxu1 %v1702_v6  ;;  %v1737_v33 = vld [vmem:[%s1847_s9 + $0x168] ss:$12 sps:$4 sm:$0xff]   ;;  %v1738_v34 = vld [vmem:[%s1847_s9 + $0x64] ss:$12 sps:$4 sm:$0xff]   ;;  %v1741_v36 = vld [vmem:[%s1847_s9 + $0x60] ss:$12 sps:$4 sm:$0xff]  }
  0x17   : > { %v1740_v35 = vld [vmem:[%s1847_s9 + $0x8] ss:$12 sps:$4 sm:$0xff]   ;;  %v1742_v37 = vld [vmem:[%s1847_s9 + $0x20] ss:$12 sps:$4 sm:$0xff]   ;;  %v1745_v39 = vld [vmem:[%s1847_s9 + $0x38] ss:$12 sps:$4 sm:$0xff]  }
  0x18   : > { %v1743_v38 = vld [vmem:[%s1847_s9 + $0x7c] ss:$12 sps:$4 sm:$0xff]   ;;  %v1746_v40 = vld [vmem:[%s1847_s9 + $0x78] ss:$12 sps:$4 sm:$0xff]   ;;  %v1748_v42 = vld [vmem:[%s1847_s9 + $0x94] ss:$12 sps:$4 sm:$0xff]  }
  0x19   : > { %1512 = vmatpush3.bf16.msra.mxu0 %v1703_v7  ;;  %1682 = vmatpush3.bf16.msra.mxu1 %v1703_v7  ;;  %v1747_v41 = vld [vmem:[%s1847_s9 + $0x50] ss:$12 sps:$4 sm:$0xff]   ;;  %v1750_v43 = vld [vmem:[%s1847_s9 + $0x68] ss:$12 sps:$4 sm:$0xff]   ;;  %v1752_v45 = vld [vmem:[%s1847_s9 + $0x80] ss:$12 sps:$4 sm:$0xff]  }
  0x1a   : > { %1513 = vmatprep.subr.bf16.mxu0 %v1704_v8  ;;  %1675 = vmatprep.subr.bf16.mxu1 %v1704_v8  ;;  %v1751_v44 = vld [vmem:[%s1847_s9 + $0x90] ss:$12 sps:$4 sm:$0xff]   ;;  %v1753_v46 = vld [vmem:[%s1847_s9 + $0xac] ss:$12 sps:$4 sm:$0xff]   ;;  %v1756_v48 = vld [vmem:[%s1847_s9 + $0xa8] ss:$12 sps:$4 sm:$0xff]  }
  0x1b   : > { %v1755_v47 = vld [vmem:[%s1847_s9 + $0x98] ss:$12 sps:$4 sm:$0xff]   ;;  %v1757_v49 = vld [vmem:[%s1847_s9 + $0xb0] ss:$12 sps:$4 sm:$0xff]   ;;  %v1760_v51 = vld [vmem:[%s1847_s9 + $0xc8] ss:$12 sps:$4 sm:$0xff]  }
  0x1c   : > { %v1758_v50 = vld [vmem:[%s1847_s9 + $0xc4] ss:$12 sps:$4 sm:$0xff]   ;;  %v1761_v52 = vld [vmem:[%s1847_s9 + $0xc0] ss:$12 sps:$4 sm:$0xff]   ;;  %v1763_v54 = vld [vmem:[%s1847_s9 + $0xdc] ss:$12 sps:$4 sm:$0xff]  }
  0x1d   : > { %1514 = vmatpush3.bf16.msra.mxu0 %v1705_v9  ;;  %1683 = vmatpush3.bf16.msra.mxu1 %v1705_v9  ;;  %v1762_v53 = vld [vmem:[%s1847_s9 + $0xe0] ss:$12 sps:$4 sm:$0xff]   ;;  %v1765_v55 = vld [vmem:[%s1847_s9 + $0xf8] ss:$12 sps:$4 sm:$0xff]   ;;  %v1767_v57 = vld [vmem:[%s1847_s9 + $0x110] ss:$12 sps:$4 sm:$0xff]  }
  0x1e   : > { %1515 = vmatprep.subr.bf16.mxu0 %v1706_v10  ;;  %1676 = vmatprep.subr.bf16.mxu1 %v1706_v10  ;;  %v1766_v56 = vld [vmem:[%s1847_s9 + $0xd8] ss:$12 sps:$4 sm:$0xff]   ;;  %v1768_v58 = vld [vmem:[%s1847_s9 + $0xf4] ss:$12 sps:$4 sm:$0xff]   ;;  %v1771_v60 = vld [vmem:[%s1847_s9 + $0xf0] ss:$12 sps:$4 sm:$0xff]  }
  0x1f   : > { %v1770_v59 = vld [vmem:[%s1847_s9 + $0x128] ss:$12 sps:$4 sm:$0xff]   ;;  %v1772_v61 = vld [vmem:[%s1847_s9 + $0x140] ss:$12 sps:$4 sm:$0xff]   ;;  %v1775_v63 = vld [vmem:[%s1847_s9 + $0x158] ss:$12 sps:$4 sm:$0xff]  }
  0x20   : > { %v1773_v62 = vld [vmem:[%s1847_s9 + $0x10c] ss:$12 sps:$4 sm:$0xff]   ;;  %v1776_v0 = vld [vmem:[%s1847_s9 + $0x108] ss:$12 sps:$4 sm:$0xff]   ;;  %v1777_v1 = vld [vmem:[%s1847_s9 + $0x170] ss:$12 sps:$4 sm:$0xff]  }
  0x21   : > { %1516 = vmatpush3.bf16.msra.mxu0 %v1707_v13  ;;  %1684 = vmatpush3.bf16.msra.mxu1 %v1707_v13 }
  0x22   : > { %1517 = vmatprep.subr.bf16.mxu0 %v1708_v14  ;;  %1677 = vmatprep.subr.bf16.mxu1 %v1708_v14 }
  0x25   : > { %1518 = vmatpush3.bf16.msra.mxu0 %v1709_v15  ;;  %1685 = vmatpush3.bf16.msra.mxu1 %v1709_v15 }
  0x26   : > { %1519 = vmatprep.subr.bf16.mxu0 %v1710_v16  ;;  %1678 = vmatprep.subr.bf16.mxu1 %v1710_v16 }
  0x29   : > { %1520 = vmatpush3.bf16.msra.mxu0 %v1711_v17  ;;  %1686 = vmatpush3.bf16.msra.mxu1 %v1711_v17 }
  0x2a   : > { %1635 = vmatprep.subr.bf16.mxu1 %v1718_v18 }
  0x2c   : > { %715 = vmatmul.mubr.bf16.vlgmr.msra.gmra.mxu0 %v1712_v19  ;;  %811 = vmatmul.mubr.bf16.vlgmr.msra.gmra.mxu1 %v1715_v20 }
  0x2d   : > { %1636 = vmatpush3.bf16.msra.mxu1 %v1718_v18  ;;  %722 = vmatprep.mubr.bf16.mxu0 %v1719_v21 }
  0x2e   : > { %818 = vmatprep.mubr.bf16.mxu1 %v1721_v22  ;;  %1637 = vmatprep.subr.bf16.mxu1 %v1731_v23 }
  0x31   : > { %1638 = vmatpush3.bf16.msra.mxu1 %v1731_v23 }
  0x34   : > { %723 = vmatmul.mubr.bf16.gmra.mxu0 %v1723_v24  ;;  %819 = vmatmul.mubr.bf16.gmra.mxu1 %v1724_v25 }
  0x35   : > { %730 = vmatprep.mubr.bf16.mxu0 %v1725_v26  ;;  %826 = vmatprep.mubr.bf16.mxu1 %v1727_v27 }
  0x3c   : > { %731 = vmatmul.mubr.bf16.gmra.mxu0 %v1729_v28  ;;  %827 = vmatmul.mubr.bf16.gmra.mxu1 %v1730_v29 }
  0x3d   : > { %738 = vmatprep.mubr.bf16.mxu0 %v1732_v30  ;;  %834 = vmatprep.mubr.bf16.mxu1 %v1734_v31 }
  0x44   : > { %739 = vmatmul.mubr.bf16.gmra.mxu0 %v1736_v32  ;;  %835 = vmatmul.mubr.bf16.gmra.mxu1 %v1737_v33 }
  0x45   : > { %746 = vmatprep.mubr.bf16.mxu0 %v1738_v34  ;;  %1639 = vmatprep.mubr.msk.bf16.mxu1 %vm633_vm0, %v1740_v35 }
  0x4c   : > { %747 = vmatmul.mubr.bf16.gmra.mxu0 %v1741_v36  ;;  %1640 = vmatmul.mubr.msk.bf16.vlgmr.msra.gmra.mxu1 %vm633_vm0, %v1742_v37 }
  0x4d   : > { %754 = vmatprep.mubr.bf16.mxu0 %v1743_v38  ;;  %1643 = vmatprep.mubr.msk.bf16.mxu1 %vm633_vm0, %v1745_v39 }
  0x54   : > { %755 = vmatmul.mubr.bf16.gmra.mxu0 %v1746_v40  ;;  %1644 = vmatmul.mubr.msk.bf16.gmra.mxu1 %vm633_vm0, %v1747_v41 }
  0x55   : > { %762 = vmatprep.mubr.bf16.mxu0 %v1748_v42  ;;  %1647 = vmatprep.mubr.msk.bf16.mxu1 %vm633_vm0, %v1750_v43 }
  0x5c   : > { %763 = vmatmul.mubr.bf16.gmra.mxu0 %v1751_v44  ;;  %1648 = vmatmul.mubr.msk.bf16.gmra.mxu1 %vm633_vm0, %v1752_v45  ;;  %v1963_v44 = vld [vmem:[%s2040_s2] ss:$0 sm:$0xff] }
  0x5d   : > { %770 = vmatprep.mubr.bf16.mxu0 %v1753_v46  ;;  %1651 = vmatprep.mubr.msk.bf16.mxu1 %vm633_vm0, %v1755_v47 }
  0x64   : > { %771 = vmatmul.mubr.bf16.gmra.mxu0 %v1756_v48  ;;  %1652 = vmatmul.mubr.msk.bf16.gmra.mxu1 %vm633_vm0, %v1757_v49 }
  0x65   : > { %778 = vmatprep.mubr.bf16.mxu0 %v1758_v50  ;;  %1655 = vmatprep.mubr.msk.bf16.mxu1 %vm633_vm0, %v1760_v51 }
  0x6c   : > { %779 = vmatmul.mubr.bf16.gmra.mxu0 %v1761_v52  ;;  %1656 = vmatmul.mubr.msk.bf16.gmra.mxu1 %vm633_vm0, %v1762_v53 }
  0x6d   : > { %786 = vmatprep.mubr.bf16.mxu0 %v1763_v54  ;;  %1659 = vmatprep.mubr.msk.bf16.mxu1 %vm633_vm0, %v1765_v55 }
  0x74   : > { %787 = vmatmul.mubr.bf16.gmra.mxu0 %v1766_v56  ;;  %1660 = vmatmul.mubr.msk.bf16.gmra.mxu1 %vm633_vm0, %v1767_v57 }
  0x75   : > { %794 = vmatprep.mubr.bf16.mxu0 %v1768_v58  ;;  %1663 = vmatprep.mubr.msk.bf16.mxu1 %vm633_vm0, %v1770_v59 }
  0x7c   : > { %795 = vmatmul.mubr.bf16.gmra.mxu0 %v1771_v60  ;;  %1664 = vmatmul.mubr.msk.bf16.gmra.mxu1 %vm633_vm0, %v1772_v61 }
  0x7d   : > { %802 = vmatprep.mubr.bf16.mxu0 %v1773_v62  ;;  %1667 = vmatprep.mubr.msk.bf16.mxu1 %vm633_vm0, %v1775_v63 }
  0x84   : > { %803 = vmatmul.mubr.bf16.gmra.mxu0 %v1776_v0  ;;  %1668 = vmatmul.mubr.msk.bf16.gmra.mxu1 %vm633_vm0, %v1777_v1 }
  0xec   : > { %v1521_v2 = vpop.f32.mrf.mxu0  ;;  %v1593_v3 = vpop.f32.mrf.mxu1 }
  0xee   : > { %v1522_v4 = vpop.f32.mrf.mxu0  ;;  %v1594_v5 = vpop.f32.mrf.mxu1 }
  0xef   : > { %v1940_v6 = vadd.f32 %v1594_v5, %v1593_v3  ;;  %v1523_v41 = vadd.f32 %v1522_v4, %v1521_v2 }
  0xf0   : > { %v1524_v7 = vpop.f32.mrf.mxu0  ;;  %v1596_v8 = vpop.f32.mrf.mxu1 }
  0xf1   : > { %v717_v51 = vadd.f32 %v1523_v41, %v1963_v44 }
  0xf2   : > { %v1525_v9 = vpop.f32.mrf.mxu0  ;;  %v1597_v10 = vpop.f32.mrf.mxu1 }
  0xf3   : > { %v1942_v11 = vadd.f32 %v1597_v10, %v1596_v8  ;;  %v1526_v46 = vadd.f32 %v1525_v9, %v1524_v7 }
  0xf4   : > { %v1527_v12 = vpop.f32.mrf.mxu0  ;;  %v1599_v13 = vpop.f32.mrf.mxu1 }
  0xf5   : > { %v720_v58 = vadd.f32 %v1526_v46, %v1963_v44 }
  0xf6   : > { %v1528_v14 = vpop.f32.mrf.mxu0  ;;  %v1600_v15 = vpop.f32.mrf.mxu1 }
  0xf7   : > { %v1944_v16 = vadd.f32 %v1600_v15, %v1599_v13  ;;  %v1529_v38 = vadd.f32 %v1528_v14, %v1527_v12 }
  0xf8   : > { %v1530_v17 = vpop.f32.mrf.mxu0  ;;  %v1602_v18 = vpop.f32.mrf.mxu1 }
  0xf9   : > { %v725_v47 = vadd.f32 %v1529_v38, %v1963_v44 }
  0xfa   : > { %v1531_v19 = vpop.f32.mrf.mxu0  ;;  %v1603_v20 = vpop.f32.mrf.mxu1 }
  0xfb   : > { %v1946_v21 = vadd.f32 %v1603_v20, %v1602_v18  ;;  %v1532_v42 = vadd.f32 %v1531_v19, %v1530_v17 }
  0xfc   : > { %v1533_v22 = vpop.f32.mrf.mxu0  ;;  %v1605_v23 = vpop.f32.mrf.mxu1 }
  0xfd   : > { %v728_v52 = vadd.f32 %v1532_v42, %v1963_v44 }
  0xfe   : > { %v1534_v24 = vpop.f32.mrf.mxu0  ;;  %v1606_v25 = vpop.f32.mrf.mxu1 }
  0xff   : > { %v1948_v26 = vadd.f32 %v1606_v25, %v1605_v23  ;;  %v1535_v59 = vadd.f32 %v1534_v24, %v1533_v22 }
 0x100   : > { %v1536_v27 = vpop.f32.mrf.mxu0  ;;  %v1608_v28 = vpop.f32.mrf.mxu1 }
 0x101   : > { %v733_v15 = vadd.f32 %v1535_v59, %v1963_v44 }
 0x102   : > { %v1537_v29 = vpop.f32.mrf.mxu0  ;;  %v1609_v30 = vpop.f32.mrf.mxu1 }
 0x103   : > { %v1950_v31 = vadd.f32 %v1609_v30, %v1608_v28  ;;  %v1538_v2 = vadd.f32 %v1537_v29, %v1536_v27 }
 0x104   : > { %v1539_v32 = vpop.f32.mrf.mxu0  ;;  %v1952_v33 = vpop.f32.mrf.mxu1 }
 0x105   : > { %v736_v24 = vadd.f32 %v1538_v2, %v1963_v44 }
 0x106   : > { %v1540_v34 = vpop.f32.mrf.mxu0  ;;  %v1954_v35 = vpop.f32.mrf.mxu1 }
 0x107   : > { %v1541_v55 = vadd.f32 %v1540_v34, %v1539_v32 }
 0x108   : > { %v1542_v36 = vpop.f32.mrf.mxu0  ;;  %v1956_v37 = vpop.f32.mrf.mxu1 }
 0x109   : > { %v741_v9 = vadd.f32 %v1541_v55, %v1963_v44 }
 0x10a   : > { %v1543_v39 = vpop.f32.mrf.mxu0  ;;  %v1958_v40 = vpop.f32.mrf.mxu1 }
 0x10b   : > { %v1544_v62 = vadd.f32 %v1543_v39, %v1542_v36 }
 0x10c   : > { %v1545_v43 = vpop.f32.mrf.mxu0  ;;  %v1641_v45 = vpop.f32.mrf.mxu1 }
 0x10d   : > { %v886_v50 = vadd.f32 %v1641_v45, %v725_v47  ;;  %v744_v17 = vadd.f32 %v1544_v62, %v1963_v44 }
 0x10e   : > { %v1546_v48 = vpop.f32.mrf.mxu0  ;;  %v877_v49 = vpop.f32.mrf.mxu1 }
 0x10f   : > { %v878_v56 = vadd.f32 %v877_v49, %v717_v51  ;;  %v1006_v63 = vmax.f32 %v886_v50, 0.0  ;;  %v1547_v25 = vadd.f32 %v1546_v48, %v1545_v43 }
 0x110   : > { %v1548_v53 = vpop.f32.mrf.mxu0  ;;  %v1642_v54 = vpop.f32.mrf.mxu1 }
 0x111   : > { %v889_v57 = vadd.f32 %v1642_v54, %v728_v52  ;;  %v1004_v5 = vmax.f32 %v878_v56, 0.0  ;;  %v749_v50 = vadd.f32 %v1547_v25, %v1963_v44 }
 0x112   : > { %v1549_v60 = vpop.f32.mrf.mxu0  ;;  %v880_v61 = vpop.f32.mrf.mxu1 }
 0x113   : > { %v1007_v0 = vmax.f32 %v889_v57, 0.0  ;;  %v881_v1 = vadd.f32 %v880_v61, %v720_v58  ;;  %v1550_v36 = vadd.f32 %v1549_v60, %v1548_v53 }
 0x114   : > { %v1551_v3 = vpop.f32.mrf.mxu0  ;;  %v1645_v4 = vpop.f32.mrf.mxu1 }
 0x115   : > { %v1418_v7 = vpack.c.bf16 %v1007_v0, %v1006_v63  ;;  %v1005_v8 = vmax.f32 %v881_v1, 0.0  ;;  %v902_v14 = vadd.f32 %v1645_v4, %v741_v9  ;;  %v752_v56 = vadd.f32 %v1550_v36, %v1963_v44 }
 0x116   : > { %v1552_v10 = vpop.f32.mrf.mxu0  ;;  %v893_v12 = vpop.f32.mrf.mxu1 }
 0x117   : > { %1490 = vst [vmem:[%s1973_s8 + $0x8] sm:$0xff] %v1418_v7   ;;  %v1413_v13 = vpack.c.bf16 %v1005_v8, %v1004_v5  ;;  %v1553_v20 = vadd.f32 %v1552_v10, %v1551_v3  ;;  %v894_v22 = vadd.f32 %v893_v12, %v733_v15  ;;  %v1010_v29 = vmax.f32 %v902_v14, 0.0 }
 0x118   : > { %v1554_v18 = vpop.f32.mrf.mxu0  ;;  %v1646_v19 = vpop.f32.mrf.mxu1 }
 0x119   : > { %1414 = vst [vmem:[%s1973_s8] sm:$0xff] %v1413_v13   ;;  %v905_v23 = vadd.f32 %v1646_v19, %v744_v17  ;;  %v1008_v41 = vmax.f32 %v894_v22, 0.0  ;;  %v757_v46 = vadd.f32 %v1553_v20, %v1963_v44 }
 0x11a   : > { %v1555_v27 = vpop.f32.mrf.mxu0  ;;  %v896_v28 = vpop.f32.mrf.mxu1 }
 0x11b   : > { %v1011_v30 = vmax.f32 %v905_v23, 0.0  ;;  %v1556_v32 = vadd.f32 %v1555_v27, %v1554_v18  ;;  %v897_v34 = vadd.f32 %v896_v28, %v736_v24 }
 0x11c   : > { %v1557_v38 = vpop.f32.mrf.mxu0  ;;  %v1649_v39 = vpop.f32.mrf.mxu1 }
 0x11d   : > { %v1428_v42 = vpack.c.bf16 %v1011_v30, %v1010_v29  ;;  %v1009_v45 = vmax.f32 %v897_v34, 0.0  ;;  %v918_v48 = vadd.f32 %v1649_v39, %v757_v46  ;;  %v760_v51 = vadd.f32 %v1556_v32, %v1963_v44 }
 0x11e   : > { %v1558_v47 = vpop.f32.mrf.mxu0  ;;  %v909_v49 = vpop.f32.mrf.mxu1 }
 0x11f   : > { %1492 = vst [vmem:[%s1973_s8 + $0x18] sm:$0xff] %v1428_v42   ;;  %v1423_v43 = vpack.c.bf16 %v1009_v45, %v1008_v41  ;;  %v910_v53 = vadd.f32 %v909_v49, %v749_v50  ;;  %v1014_v59 = vmax.f32 %v918_v48, 0.0  ;;  %v1559_v60 = vadd.f32 %v1558_v47, %v1557_v38 }
 0x120   : > { %v1560_v52 = vpop.f32.mrf.mxu0  ;;  %v1650_v54 = vpop.f32.mrf.mxu1 }
 0x121   : > { %1491 = vst [vmem:[%s1973_s8 + $0x10] sm:$0xff] %v1423_v43   ;;  %v921_v55 = vadd.f32 %v1650_v54, %v760_v51  ;;  %v1012_v1 = vmax.f32 %v910_v53, 0.0  ;;  %v765_v10 = vadd.f32 %v1559_v60, %v1963_v44 }
 0x122   : > { %v1561_v57 = vpop.f32.mrf.mxu0  ;;  %v912_v58 = vpop.f32.mrf.mxu1 }
 0x123   : > { %v1015_v61 = vmax.f32 %v921_v55, 0.0  ;;  %v913_v62 = vadd.f32 %v912_v58, %v752_v56  ;;  %v1562_v3 = vadd.f32 %v1561_v57, %v1560_v52 }
 0x124   : > { %v1563_v63 = vpop.f32.mrf.mxu0  ;;  %v1653_v0 = vpop.f32.mrf.mxu1 }
 0x125   : > { %v1438_v2 = vpack.c.bf16 %v1015_v61, %v1014_v59  ;;  %v1013_v4 = vmax.f32 %v913_v62, 0.0  ;;  %v768_v17 = vadd.f32 %v1562_v3, %v1963_v44 }
 0x126   : > { %v1564_v5 = vpop.f32.mrf.mxu0  ;;  %v925_v7 = vpop.f32.mrf.mxu1 }
 0x127   : > { %1494 = vst [vmem:[%s1973_s8 + $0x28] sm:$0xff] %v1438_v2   ;;  %v1433_v8 = vpack.c.bf16 %v1013_v4, %v1012_v1  ;;  %v1565_v9 = vadd.f32 %v1564_v5, %v1563_v63  ;;  %v926_v15 = vadd.f32 %v925_v7, %v765_v10 }
 0x128   : > { %v1566_v12 = vpop.f32.mrf.mxu0  ;;  %v1654_v13 = vpop.f32.mrf.mxu1 }
 0x129   : > { %1493 = vst [vmem:[%s1973_s8 + $0x20] sm:$0xff] %v1433_v8   ;;  %v773_v14 = vadd.f32 %v1565_v9, %v1963_v44  ;;  %v1016_v27 = vmax.f32 %v926_v15, 0.0  ;;  %v821_v8 = vadd.f32 %v1944_v16, %v1963_v44  ;;  %v824_v15 = vadd.f32 %v1946_v21, %v1963_v44 }
 0x12a   : > { %v1567_v18 = vpop.f32.mrf.mxu0  ;;  %v928_v19 = vpop.f32.mrf.mxu1  ;;  %v816_v21 = vadd.f32 %v1942_v11, %v1963_v44 }
 0x12b   : > { %v1568_v20 = vadd.f32 %v1567_v18, %v1566_v12  ;;  %v929_v22 = vadd.f32 %v928_v19, %v768_v17  ;;  %v934_v25 = vadd.f32 %v1653_v0, %v773_v14  ;;  %v1613_v17 = vadd.f32 %v1954_v35, %v1952_v33 }
 0x12c   : > { %v1569_v23 = vpop.f32.mrf.mxu0  ;;  %v1657_v24 = vpop.f32.mrf.mxu1  ;;  %v813_v18 = vadd.f32 %v1940_v6, %v1963_v44 }
 0x12d   : > { %v776_v28 = vadd.f32 %v1568_v20, %v1963_v44  ;;  %v1017_v29 = vmax.f32 %v929_v22, 0.0  ;;  %v1018_v42 = vmax.f32 %v934_v25, 0.0  ;;  %v1616_v25 = vadd.f32 %v1958_v40, %v1956_v37 }
 0x12e   : > { %v1570_v30 = vpop.f32.mrf.mxu0  ;;  %v941_v32 = vpop.f32.mrf.mxu1  ;;  %v837_v37 = vadd.f32 %v1613_v17, %v1963_v44 }
 0x12f   : > { %v937_v34 = vadd.f32 %v1654_v13, %v776_v28  ;;  %v1443_v36 = vpack.c.bf16 %v1017_v29, %v1016_v27  ;;  %v1571_v38 = vadd.f32 %v1570_v30, %v1569_v23 }
 0x130   : > { %v1572_v39 = vpop.f32.mrf.mxu0  ;;  %v1658_v41 = vpop.f32.mrf.mxu1 }
 0x131   : > { %v1019_v45 = vmax.f32 %v937_v34, 0.0  ;;  %1495 = vst [vmem:[%s1973_s8 + $0x30] sm:$0xff] %v1443_v36   ;;  %v781_v46 = vadd.f32 %v1571_v38, %v1963_v44 }
 0x132   : > { %v1573_v47 = vpop.f32.mrf.mxu0  ;;  %v944_v49 = vpop.f32.mrf.mxu1 }
 0x133   : > { %v1448_v43 = vpack.c.bf16 %v1019_v45, %v1018_v42  ;;  %v1574_v48 = vadd.f32 %v1573_v47, %v1572_v39  ;;  %v942_v52 = vadd.f32 %v941_v32, %v781_v46 }
 0x134   : > { %v1575_v50 = vpop.f32.mrf.mxu0  ;;  %v1995_v51 = vpop.f32.mrf.mxu1 }
 0x135   : > { %1496 = vst [vmem:[%s1973_s8 + $0x38] sm:$0xff] %v1448_v43   ;;  %v784_v54 = vadd.f32 %v1574_v48, %v1963_v44  ;;  %v1020_v60 = vmax.f32 %v942_v52, 0.0  ;;  %v840_v43 = vadd.f32 %v1616_v25, %v1963_v44 }
 0x136   : > { %v1576_v53 = vpop.f32.mrf.mxu0  ;;  %v957_v55 = vpop.f32.mrf.mxu1 }
 0x137   : > { %v945_v56 = vadd.f32 %v944_v49, %v784_v54  ;;  %v1577_v57 = vadd.f32 %v1576_v53, %v1575_v50  ;;  %v829_v50 = vadd.f32 %v1948_v26, %v1963_v44 }
 0x138   : > { %v1578_v58 = vpop.f32.mrf.mxu0  ;;  %v1999_v59 = vpop.f32.mrf.mxu1 }
 0x139   : > { %v1021_v61 = vmax.f32 %v945_v56, 0.0  ;;  %v789_v62 = vadd.f32 %v1577_v57, %v1963_v44 }
 0x13a   : > { %v1579_v63 = vpop.f32.mrf.mxu0  ;;  %v960_v0 = vpop.f32.mrf.mxu1 }
 0x13b   : > { %v1453_v1 = vpack.c.bf16 %v1021_v61, %v1020_v60  ;;  %v1580_v2 = vadd.f32 %v1579_v63, %v1578_v58  ;;  %v950_v5 = vadd.f32 %v1657_v24, %v789_v62  ;;  %v832_v61 = vadd.f32 %v1950_v31, %v1963_v44 }
 0x13c   : > { %v1581_v3 = vpop.f32.mrf.mxu0  ;;  %v1665_v4 = vpop.f32.mrf.mxu1 }
 0x13d   : > { %1497 = vst [vmem:[%s1973_s8 + $0x40] sm:$0xff] %v1453_v1   ;;  %v792_v7 = vadd.f32 %v1580_v2, %v1963_v44  ;;  %v982_v13 = vadd.f32 %v1665_v4, %v821_v8  ;;  %v1022_v22 = vmax.f32 %v950_v5, 0.0 }
 0x13e   : > { %v1582_v9 = vpop.f32.mrf.mxu0  ;;  %v973_v10 = vpop.f32.mrf.mxu1 }
 0x13f   : > { %v953_v12 = vadd.f32 %v1658_v41, %v792_v7  ;;  %v1583_v14 = vadd.f32 %v1582_v9, %v1581_v3  ;;  %v974_v27 = vadd.f32 %v973_v10, %v813_v18  ;;  %v1030_v6 = vmax.f32 %v982_v13, 0.0 }
 0x140   : > { %v1584_v19 = vpop.f32.mrf.mxu0  ;;  %v1666_v20 = vpop.f32.mrf.mxu1 }
 0x141   : > { %v1023_v23 = vmax.f32 %v953_v12, 0.0  ;;  %v797_v16 = vadd.f32 %v1583_v14, %v1963_v44  ;;  %v985_v24 = vadd.f32 %v1666_v20, %v824_v15  ;;  %v1028_v40 = vmax.f32 %v974_v27, 0.0 }
 0x142   : > { %v1585_v28 = vpop.f32.mrf.mxu0  ;;  %v976_v33 = vpop.f32.mrf.mxu1 }
 0x143   : > { %v1458_v35 = vpack.c.bf16 %v1023_v23, %v1022_v22  ;;  %v1031_v29 = vmax.f32 %v985_v24, 0.0  ;;  %v1586_v30 = vadd.f32 %v1585_v28, %v1584_v19  ;;  %v977_v32 = vadd.f32 %v976_v33, %v816_v21 }
 0x144   : > { %v1587_v34 = vpop.f32.mrf.mxu0  ;;  %v1669_v36 = vpop.f32.mrf.mxu1  ;;  %v958_v38 = vadd.f32 %v957_v55, %v797_v16 }
 0x145   : > { %1498 = vst [vmem:[%s1973_s8 + $0x48] sm:$0xff] %v1458_v35   ;;  %v1478_v39 = vpack.c.bf16 %v1031_v29, %v1030_v6  ;;  %v800_v41 = vadd.f32 %v1586_v30, %v1963_v44  ;;  %v1029_v42 = vmax.f32 %v977_v32, 0.0  ;;  %v998_v47 = vadd.f32 %v1669_v36, %v837_v37 }
 0x146   : > { %v1588_v11 = vpop.f32.mrf.mxu0  ;;  %v989_v45 = vpop.f32.mrf.mxu1  ;;  %v1024_v53 = vmax.f32 %v958_v38, 0.0 }
 0x147   : > { %1502 = vst [vmem:[%s1973_s8 + $0x68] sm:$0xff] %v1478_v39   ;;  %v961_v46 = vadd.f32 %v960_v0, %v800_v41  ;;  %v1589_v49 = vadd.f32 %v1588_v11, %v1587_v34  ;;  %v1473_v48 = vpack.c.bf16 %v1029_v42, %v1028_v40  ;;  %v990_v58 = vadd.f32 %v989_v45, %v829_v50 }
 0x148   : > { %v1590_v52 = vpop.f32.mrf.mxu0  ;;  %v1670_v54 = vpop.f32.mrf.mxu1  ;;  %v1034_v0 = vmax.f32 %v998_v47, 0.0 }
 0x149   : > { %v1025_v55 = vmax.f32 %v961_v46, 0.0  ;;  %v805_v56 = vadd.f32 %v1589_v49, %v1963_v44  ;;  %v1001_v57 = vadd.f32 %v1670_v54, %v840_v43  ;;  %1501 = vst [vmem:[%s1973_s8 + $0x60] sm:$0xff] %v1473_v48   ;;  %v1032_v7 = vmax.f32 %v990_v58, 0.0 }
 0x14a   : > { %v1591_v60 = vpop.f32.mrf.mxu0  ;;  %v992_v62 = vpop.f32.mrf.mxu1 }
 0x14b   : > { %v1463_v63 = vpack.c.bf16 %v1025_v55, %v1024_v53  ;;  %v1035_v26 = vmax.f32 %v1001_v57, 0.0  ;;  %v1592_v1 = vadd.f32 %v1591_v60, %v1590_v52  ;;  %v993_v2 = vadd.f32 %v992_v62, %v832_v61 }
 0x14c   : > { %v966_v3 = vadd.f32 %v1995_v51, %v805_v56 }
 0x14d   : > { %1499 = vst [vmem:[%s1973_s8 + $0x50] sm:$0xff] %v1463_v63   ;;  %v1488_v4 = vpack.c.bf16 %v1035_v26, %v1034_v0  ;;  %v808_v5 = vadd.f32 %v1592_v1, %v1963_v44  ;;  %v1033_v8 = vmax.f32 %v993_v2, 0.0 }
 0x14e   : > { %v1026_v10 = vmax.f32 %v966_v3, 0.0 }
 0x14f   : > { %1504 = vst [vmem:[%s1973_s8 + $0x78] sm:$0xff] %v1488_v4   ;;  %v969_v9 = vadd.f32 %v1999_v59, %v808_v5  ;;  %v1483_v31 = vpack.c.bf16 %v1033_v8, %v1032_v7 }
 0x151   : > { %v1027_v12 = vmax.f32 %v969_v9, 0.0  ;;  %1503 = vst [vmem:[%s1973_s8 + $0x70] sm:$0xff] %v1483_v31  }
 0x153   : > { %v1468_v13 = vpack.c.bf16 %v1027_v12, %v1026_v10 }
 0x155   : > { %1500 = vst [vmem:[%s1973_s8 + $0x58] sm:$0xff] %v1468_v13  }
 0x156 PF: > { %s13_s12 = sadd.s32 1, %s1784_s12  }
 0x157   : > { %p10_p4 = scmp.ge.s32.totalorder %s13_s12, 4  }
 0x159   :  { %12 = sbr.rel (!%p10_p4) target bundleno = 1 (0x1), region = 62 }

// kernel: gen_nn_ske_to_image.9
= control target key start
LH: loop header
LB: loop body
LE: loop exit
PB: predicated region body
PF: predicated region fallthrough
CT: control target
= control target key end

     0   :  { %s2356_s12 = smov 0   ;;  %s2853_s0 = inlined_call_operand.vmem [shape: bf16[2048,144], index: 0, kind: input, shape index: {}]   ;;  %s2854_s1 = inlined_call_operand.vmem [shape: bf16[144,128], index: 1, kind: input, shape index: {}]   ;;  %s2855_s2 = inlined_call_operand.vmem [shape: f32[1,128], index: 2, kind: input, shape index: {}]   ;;  %s2856_s3 = inlined_call_operand.vmem [shape: f32[2048,128], index: 3, kind: output, shape index: {}]  }
   0x1 LB: > { %s1883_s13 = sadd.s32 4294967295, %s2333_s12   ;;  %p1887_p0 = scmp.ge.s32.totalorder %s2333_s12, 1  ;;  %s2333_s12 = sphi %s2356_s12, %s13_s12  }
   0x2   : > { %p139_p1 = scmp.lt.s32.totalorder %s2333_s12, 3 }
   0x4   : > { %p140_p2 = pnand %p1887_p0, %p139_p1 }
   0x5   : > { %s1888_s16 = sshll.u32 (!%p140_p2), %s1883_s13, 7 }
   0x6   : > { %143 = sbr.rel (%p140_p2) target bundleno = 496 (0x1f0), region = 32  ;;  %p165_p3 = scmp.lt.s32.totalorder (!%p140_p2), %s1888_s16, 255 }
   0xb   : > { %v2125_v0 = vld [vmem:[%s2854_s1 + $0x38] sm:$0xff]   ;;  %v2335_v1 = vmov 0   ;;  %v2126_v2 = vld [vmem:[%s2854_s1 + $0x30] sm:$0xff]   ;;  %s2858_s16 = smov (!%p165_p3, %s1888_s16), 255  ;;  %v2127_v3 = vld [vmem:[%s2854_s1 + $0x28] sm:$0xff]   ;;  %vm961_vm0 = vcmask 130048  }
   0xc   : > { %1154 = vmatprep.subr.bf16.mxu0 %v2335_v1  ;;  %2098 = vmatprep.subr.bf16.mxu1 %v2335_v1  ;;  %s2097_s21 = sshll.u32 %s2858_s16, 3  ;;  %v2128_v4 = vld [vmem:[%s2854_s1 + $0x20] sm:$0xff]   ;;  %v2129_v7 = vld [vmem:[%s2854_s1 + $0x18] sm:$0xff]   ;;  %v2130_v8 = vld [vmem:[%s2854_s1 + $0x10] sm:$0xff]  }
   0xd   : > { %1155 = vmatpush1.bf16.msra.mxu0 %v2125_v0  ;;  %2107 = vmatpush1.bf16.msra.mxu1 %v2125_v0  ;;  %s2381_s24 = scalar_lea.vmem %s2853_s0, %s2097_s21  ;;  %v2131_v9 = vld [vmem:[%s2854_s1 + $0x8] sm:$0xff]   ;;  %v2132_v10 = vld [vmem:[%s2854_s1] sm:$0xff]   ;;  %s2563_s15 = scalar_lea.vmem %s2856_s3, %s2097_s21 }
   0xe   : > { %1156 = vmatprep.subr.bf16.mxu0 %v2335_v1  ;;  %2099 = vmatprep.subr.bf16.mxu1 %v2335_v1  ;;  %v2136_v5 = vld [vmem:[%s2381_s24 + $0x4] ss:$8 sps:$4 sm:$0xff]   ;;  %v2134_v12 = vld [vmem:[%s2381_s24] ss:$8 sps:$4 sm:$0xff]   ;;  %v2140_v14 = vld [vmem:[%s2381_s24 + $0x14] ss:$8 sps:$4 sm:$0xff]  }
   0xf   : > { %v2139_v6 = vld [vmem:[%s2381_s24 + $0x204] ss:$8 sps:$4 sm:$0xff]   ;;  %2031 = vmatprep.mubr.msk.bf16.mxu0 %vm961_vm0, %v2136_v5  ;;  %v2137_v13 = vld [vmem:[%s2381_s24 + $0x200] ss:$8 sps:$4 sm:$0xff]   ;;  %v2142_v15 = vld [vmem:[%s2381_s24 + $0x214] ss:$8 sps:$4 sm:$0xff]  }
  0x10   : > { %2063 = vmatprep.mubr.msk.bf16.mxu1 %vm961_vm0, %v2139_v6  ;;  %v2133_v11 = vld [vmem:[%s2854_s1 + $0x40] sm:$0xff]   ;;  %v2144_v16 = vld [vmem:[%s2381_s24 + $0x10] ss:$8 sps:$4 sm:$0xff]   ;;  %v2152_v22 = vld [vmem:[%s2381_s24 + $0x34] ss:$8 sps:$4 sm:$0xff]  }
  0x11   : > { %1157 = vmatpush1.bf16.msra.mxu0 %v2126_v2  ;;  %2108 = vmatpush1.bf16.msra.mxu1 %v2126_v2  ;;  %v2145_v17 = vld [vmem:[%s2381_s24 + $0x210] ss:$8 sps:$4 sm:$0xff]   ;;  %v2146_v18 = vld [vmem:[%s2381_s24 + $0x24] ss:$8 sps:$4 sm:$0xff]   ;;  %v2150_v20 = vld [vmem:[%s2381_s24 + $0x20] ss:$8 sps:$4 sm:$0xff]  }
  0x12   : > { %1158 = vmatprep.subr.bf16.mxu0 %v2335_v1  ;;  %2100 = vmatprep.subr.bf16.mxu1 %v2335_v1  ;;  %v2148_v19 = vld [vmem:[%s2381_s24 + $0x224] ss:$8 sps:$4 sm:$0xff]   ;;  %v2151_v21 = vld [vmem:[%s2381_s24 + $0x220] ss:$8 sps:$4 sm:$0xff]   ;;  %v2154_v23 = vld [vmem:[%s2381_s24 + $0x234] ss:$8 sps:$4 sm:$0xff]  }
  0x13   : > { %v2156_v24 = vld [vmem:[%s2381_s24 + $0x30] ss:$8 sps:$4 sm:$0xff]   ;;  %v2158_v26 = vld [vmem:[%s2381_s24 + $0x44] ss:$8 sps:$4 sm:$0xff]   ;;  %v2162_v28 = vld [vmem:[%s2381_s24 + $0x40] ss:$8 sps:$4 sm:$0xff]  }
  0x14   : > { %v2157_v25 = vld [vmem:[%s2381_s24 + $0x230] ss:$8 sps:$4 sm:$0xff]   ;;  %v2160_v27 = vld [vmem:[%s2381_s24 + $0x244] ss:$8 sps:$4 sm:$0xff]   ;;  %v2163_v29 = vld [vmem:[%s2381_s24 + $0x240] ss:$8 sps:$4 sm:$0xff]  }
  0x15   : > { %1159 = vmatpush1.bf16.msra.mxu0 %v2127_v3  ;;  %2109 = vmatpush1.bf16.msra.mxu1 %v2127_v3  ;;  %v2164_v30 = vld [vmem:[%s2381_s24 + $0x54] ss:$8 sps:$4 sm:$0xff]   ;;  %v2168_v32 = vld [vmem:[%s2381_s24 + $0x50] ss:$8 sps:$4 sm:$0xff]   ;;  %v2170_v34 = vld [vmem:[%s2381_s24 + $0x64] ss:$8 sps:$4 sm:$0xff]  }
  0x16   : > { %1160 = vmatprep.subr.bf16.mxu0 %v2335_v1  ;;  %2101 = vmatprep.subr.bf16.mxu1 %v2335_v1  ;;  %v2166_v31 = vld [vmem:[%s2381_s24 + $0x254] ss:$8 sps:$4 sm:$0xff]   ;;  %v2169_v33 = vld [vmem:[%s2381_s24 + $0x250] ss:$8 sps:$4 sm:$0xff]   ;;  %v2172_v35 = vld [vmem:[%s2381_s24 + $0x264] ss:$8 sps:$4 sm:$0xff]  }
  0x17   : > { %v2174_v36 = vld [vmem:[%s2381_s24 + $0x60] ss:$8 sps:$4 sm:$0xff]   ;;  %v2176_v38 = vld [vmem:[%s2381_s24 + $0x74] ss:$8 sps:$4 sm:$0xff]   ;;  %v2180_v40 = vld [vmem:[%s2381_s24 + $0x70] ss:$8 sps:$4 sm:$0xff]  }
  0x18   : > { %v2175_v37 = vld [vmem:[%s2381_s24 + $0x260] ss:$8 sps:$4 sm:$0xff]   ;;  %v2178_v39 = vld [vmem:[%s2381_s24 + $0x274] ss:$8 sps:$4 sm:$0xff]   ;;  %v2181_v41 = vld [vmem:[%s2381_s24 + $0x270] ss:$8 sps:$4 sm:$0xff]  }
  0x19   : > { %1161 = vmatpush1.bf16.msra.mxu0 %v2128_v4  ;;  %2110 = vmatpush1.bf16.msra.mxu1 %v2128_v4  ;;  %v2182_v42 = vld [vmem:[%s2381_s24 + $0x84] ss:$8 sps:$4 sm:$0xff]   ;;  %v2186_v44 = vld [vmem:[%s2381_s24 + $0x80] ss:$8 sps:$4 sm:$0xff]   ;;  %v2188_v46 = vld [vmem:[%s2381_s24 + $0x94] ss:$8 sps:$4 sm:$0xff]  }
  0x1a   : > { %1162 = vmatprep.subr.bf16.mxu0 %v2335_v1  ;;  %2102 = vmatprep.subr.bf16.mxu1 %v2335_v1  ;;  %v2184_v43 = vld [vmem:[%s2381_s24 + $0x284] ss:$8 sps:$4 sm:$0xff]   ;;  %v2187_v45 = vld [vmem:[%s2381_s24 + $0x280] ss:$8 sps:$4 sm:$0xff]   ;;  %v2190_v47 = vld [vmem:[%s2381_s24 + $0x294] ss:$8 sps:$4 sm:$0xff]  }
  0x1b   : > { %v2192_v48 = vld [vmem:[%s2381_s24 + $0x90] ss:$8 sps:$4 sm:$0xff]   ;;  %v2194_v50 = vld [vmem:[%s2381_s24 + $0xa4] ss:$8 sps:$4 sm:$0xff]   ;;  %v2198_v52 = vld [vmem:[%s2381_s24 + $0xa0] ss:$8 sps:$4 sm:$0xff]  }
  0x1c   : > { %v2193_v49 = vld [vmem:[%s2381_s24 + $0x290] ss:$8 sps:$4 sm:$0xff]   ;;  %v2196_v51 = vld [vmem:[%s2381_s24 + $0x2a4] ss:$8 sps:$4 sm:$0xff]   ;;  %v2199_v53 = vld [vmem:[%s2381_s24 + $0x2a0] ss:$8 sps:$4 sm:$0xff]  }
  0x1d   : > { %1163 = vmatpush1.bf16.msra.mxu0 %v2129_v7  ;;  %2111 = vmatpush1.bf16.msra.mxu1 %v2129_v7  ;;  %v2200_v54 = vld [vmem:[%s2381_s24 + $0xb4] ss:$8 sps:$4 sm:$0xff]   ;;  %v2204_v56 = vld [vmem:[%s2381_s24 + $0xb0] ss:$8 sps:$4 sm:$0xff]   ;;  %v2206_v58 = vld [vmem:[%s2381_s24 + $0xc4] ss:$8 sps:$4 sm:$0xff]  }
  0x1e   : > { %1164 = vmatprep.subr.bf16.mxu0 %v2335_v1  ;;  %2103 = vmatprep.subr.bf16.mxu1 %v2335_v1  ;;  %v2202_v55 = vld [vmem:[%s2381_s24 + $0x2b4] ss:$8 sps:$4 sm:$0xff]   ;;  %v2205_v57 = vld [vmem:[%s2381_s24 + $0x2b0] ss:$8 sps:$4 sm:$0xff]   ;;  %v2208_v59 = vld [vmem:[%s2381_s24 + $0x2c4] ss:$8 sps:$4 sm:$0xff]  }
  0x1f   : > { %v2210_v60 = vld [vmem:[%s2381_s24 + $0xc0] ss:$8 sps:$4 sm:$0xff]   ;;  %v2212_v62 = vld [vmem:[%s2381_s24 + $0xd4] ss:$8 sps:$4 sm:$0xff]   ;;  %v2216_v0 = vld [vmem:[%s2381_s24 + $0xd0] ss:$8 sps:$4 sm:$0xff]  }
  0x20   : > { %v2211_v61 = vld [vmem:[%s2381_s24 + $0x2c0] ss:$8 sps:$4 sm:$0xff]   ;;  %v2214_v63 = vld [vmem:[%s2381_s24 + $0x2d4] ss:$8 sps:$4 sm:$0xff]   ;;  %v2218_v2 = vld [vmem:[%s2381_s24 + $0xe4] ss:$8 sps:$4 sm:$0xff]  }
  0x21   : > { %1165 = vmatpush1.bf16.msra.mxu0 %v2130_v8  ;;  %2112 = vmatpush1.bf16.msra.mxu1 %v2130_v8  ;;  %v2220_v3 = vld [vmem:[%s2381_s24 + $0x2e4] ss:$8 sps:$4 sm:$0xff]   ;;  %v2222_v4 = vld [vmem:[%s2381_s24 + $0xe0] ss:$8 sps:$4 sm:$0xff]   ;;  %v2224_v6 = vld [vmem:[%s2381_s24 + $0xf4] ss:$8 sps:$4 sm:$0xff]  }
  0x22   : > { %1166 = vmatprep.subr.bf16.mxu0 %v2335_v1  ;;  %2104 = vmatprep.subr.bf16.mxu1 %v2335_v1  ;;  %v2223_v5 = vld [vmem:[%s2381_s24 + $0x2e0] ss:$8 sps:$4 sm:$0xff]   ;;  %v2226_v7 = vld [vmem:[%s2381_s24 + $0x2f4] ss:$8 sps:$4 sm:$0xff]   ;;  %v2228_v8 = vld [vmem:[%s2381_s24 + $0xf0] ss:$8 sps:$4 sm:$0xff]  }
  0x25   : > { %1167 = vmatpush1.bf16.msra.mxu0 %v2131_v9  ;;  %2113 = vmatpush1.bf16.msra.mxu1 %v2131_v9  ;;  %v2229_v9 = vld [vmem:[%s2381_s24 + $0x2f0] ss:$8 sps:$4 sm:$0xff]  }
  0x26   : > { %1168 = vmatprep.subr.bf16.mxu0 %v2335_v1  ;;  %2105 = vmatprep.subr.bf16.mxu1 %v2335_v1 }
  0x29   : > { %1169 = vmatpush1.bf16.msra.mxu0 %v2132_v10  ;;  %2114 = vmatpush1.bf16.msra.mxu1 %v2132_v10  ;;  %v2230_v10 = vld [vmem:[%s2381_s24 + $0x104] ss:$8 sps:$4 sm:$0xff]  }
  0x2a   : > { %1184 = vmatprep.subr.bf16.mxu0 %v2335_v1  ;;  %2106 = vmatprep.subr.bf16.mxu1 %v2335_v1  ;;  %v2217_v1 = vld [vmem:[%s2381_s24 + $0x2d0] ss:$8 sps:$4 sm:$0xff]  }
  0x2d   : > { %1185 = vmatpush2.bf16.msra.mxu0 %v2133_v11  ;;  %2115 = vmatpush2.bf16.msra.mxu1 %v2133_v11  ;;  %v2232_v11 = vld [vmem:[%s2381_s24 + $0x304] ss:$8 sps:$4 sm:$0xff]  }
  0x30   : > { %1187 = vmatmul.mubr.bf16.vlgmr.msra.gmra.mxu0 %v2134_v12  ;;  %1443 = vmatmul.mubr.bf16.vlgmr.msra.gmra.mxu1 %v2137_v13  ;;  %v2234_v12 = vld [vmem:[%s2381_s24 + $0x100] ss:$8 sps:$4 sm:$0xff]  }
  0x31   : > { %2032 = vmatprep.mubr.msk.bf16.mxu0 %vm961_vm0, %v2140_v14  ;;  %2064 = vmatprep.mubr.msk.bf16.mxu1 %vm961_vm0, %v2142_v15  ;;  %v2235_v13 = vld [vmem:[%s2381_s24 + $0x300] ss:$8 sps:$4 sm:$0xff]   ;;  %v2236_v14 = vld [vmem:[%s2381_s24 + $0x114] ss:$8 sps:$4 sm:$0xff]  }
  0x32   : > { %v2238_v15 = vld [vmem:[%s2381_s24 + $0x314] ss:$8 sps:$4 sm:$0xff]  }
  0x38   : > { %1195 = vmatmul.mubr.bf16.gmra.mxu0 %v2144_v16  ;;  %1451 = vmatmul.mubr.bf16.gmra.mxu1 %v2145_v17  ;;  %v2240_v16 = vld [vmem:[%s2381_s24 + $0x110] ss:$8 sps:$4 sm:$0xff]  }
  0x39   : > { %2033 = vmatprep.mubr.msk.bf16.mxu0 %vm961_vm0, %v2146_v18  ;;  %2065 = vmatprep.mubr.msk.bf16.mxu1 %vm961_vm0, %v2148_v19  ;;  %v2241_v17 = vld [vmem:[%s2381_s24 + $0x310] ss:$8 sps:$4 sm:$0xff]   ;;  %v2242_v18 = vld [vmem:[%s2381_s24 + $0x124] ss:$8 sps:$4 sm:$0xff]  }
  0x3a   : > { %v2244_v19 = vld [vmem:[%s2381_s24 + $0x324] ss:$8 sps:$4 sm:$0xff]  }
  0x40   : > { %1203 = vmatmul.mubr.bf16.gmra.mxu0 %v2150_v20  ;;  %1459 = vmatmul.mubr.bf16.gmra.mxu1 %v2151_v21  ;;  %v2246_v20 = vld [vmem:[%s2381_s24 + $0x120] ss:$8 sps:$4 sm:$0xff]  }
  0x41   : > { %2034 = vmatprep.mubr.msk.bf16.mxu0 %vm961_vm0, %v2152_v22  ;;  %2066 = vmatprep.mubr.msk.bf16.mxu1 %vm961_vm0, %v2154_v23  ;;  %v2247_v21 = vld [vmem:[%s2381_s24 + $0x320] ss:$8 sps:$4 sm:$0xff]   ;;  %v2248_v22 = vld [vmem:[%s2381_s24 + $0x134] ss:$8 sps:$4 sm:$0xff]  }
  0x42   : > { %v2250_v23 = vld [vmem:[%s2381_s24 + $0x334] ss:$8 sps:$4 sm:$0xff]  }
  0x48   : > { %1211 = vmatmul.mubr.bf16.gmra.mxu0 %v2156_v24  ;;  %1467 = vmatmul.mubr.bf16.gmra.mxu1 %v2157_v25  ;;  %v2252_v24 = vld [vmem:[%s2381_s24 + $0x130] ss:$8 sps:$4 sm:$0xff]  }
  0x49   : > { %2035 = vmatprep.mubr.msk.bf16.mxu0 %vm961_vm0, %v2158_v26  ;;  %2067 = vmatprep.mubr.msk.bf16.mxu1 %vm961_vm0, %v2160_v27  ;;  %v2253_v25 = vld [vmem:[%s2381_s24 + $0x330] ss:$8 sps:$4 sm:$0xff]   ;;  %v2254_v26 = vld [vmem:[%s2381_s24 + $0x144] ss:$8 sps:$4 sm:$0xff]  }
  0x4a   : > { %v2256_v27 = vld [vmem:[%s2381_s24 + $0x344] ss:$8 sps:$4 sm:$0xff]  }
  0x50   : > { %1219 = vmatmul.mubr.bf16.gmra.mxu0 %v2162_v28  ;;  %1475 = vmatmul.mubr.bf16.gmra.mxu1 %v2163_v29  ;;  %v2258_v28 = vld [vmem:[%s2381_s24 + $0x140] ss:$8 sps:$4 sm:$0xff]  }
  0x51   : > { %2036 = vmatprep.mubr.msk.bf16.mxu0 %vm961_vm0, %v2164_v30  ;;  %2068 = vmatprep.mubr.msk.bf16.mxu1 %vm961_vm0, %v2166_v31  ;;  %v2259_v29 = vld [vmem:[%s2381_s24 + $0x340] ss:$8 sps:$4 sm:$0xff]   ;;  %v2260_v30 = vld [vmem:[%s2381_s24 + $0x154] ss:$8 sps:$4 sm:$0xff]  }
  0x52   : > { %v2262_v31 = vld [vmem:[%s2381_s24 + $0x354] ss:$8 sps:$4 sm:$0xff]  }
  0x58   : > { %1227 = vmatmul.mubr.bf16.gmra.mxu0 %v2168_v32  ;;  %1483 = vmatmul.mubr.bf16.gmra.mxu1 %v2169_v33  ;;  %v2264_v32 = vld [vmem:[%s2381_s24 + $0x150] ss:$8 sps:$4 sm:$0xff]  }
  0x59   : > { %2037 = vmatprep.mubr.msk.bf16.mxu0 %vm961_vm0, %v2170_v34  ;;  %2069 = vmatprep.mubr.msk.bf16.mxu1 %vm961_vm0, %v2172_v35  ;;  %v2265_v33 = vld [vmem:[%s2381_s24 + $0x350] ss:$8 sps:$4 sm:$0xff]   ;;  %v2266_v34 = vld [vmem:[%s2381_s24 + $0x164] ss:$8 sps:$4 sm:$0xff]  }
  0x5a   : > { %v2268_v35 = vld [vmem:[%s2381_s24 + $0x364] ss:$8 sps:$4 sm:$0xff]  }
  0x60   : > { %1235 = vmatmul.mubr.bf16.gmra.mxu0 %v2174_v36  ;;  %1491 = vmatmul.mubr.bf16.gmra.mxu1 %v2175_v37  ;;  %v2270_v36 = vld [vmem:[%s2381_s24 + $0x160] ss:$8 sps:$4 sm:$0xff]  }
  0x61   : > { %2038 = vmatprep.mubr.msk.bf16.mxu0 %vm961_vm0, %v2176_v38  ;;  %2070 = vmatprep.mubr.msk.bf16.mxu1 %vm961_vm0, %v2178_v39  ;;  %v2271_v37 = vld [vmem:[%s2381_s24 + $0x360] ss:$8 sps:$4 sm:$0xff]   ;;  %v2272_v38 = vld [vmem:[%s2381_s24 + $0x174] ss:$8 sps:$4 sm:$0xff]  }
  0x62   : > { %v2274_v39 = vld [vmem:[%s2381_s24 + $0x374] ss:$8 sps:$4 sm:$0xff]  }
  0x68   : > { %1243 = vmatmul.mubr.bf16.gmra.mxu0 %v2180_v40  ;;  %1499 = vmatmul.mubr.bf16.gmra.mxu1 %v2181_v41  ;;  %v2276_v40 = vld [vmem:[%s2381_s24 + $0x170] ss:$8 sps:$4 sm:$0xff]  }
  0x69   : > { %2039 = vmatprep.mubr.msk.bf16.mxu0 %vm961_vm0, %v2182_v42  ;;  %2071 = vmatprep.mubr.msk.bf16.mxu1 %vm961_vm0, %v2184_v43  ;;  %v2277_v41 = vld [vmem:[%s2381_s24 + $0x370] ss:$8 sps:$4 sm:$0xff]   ;;  %v2278_v42 = vld [vmem:[%s2381_s24 + $0x184] ss:$8 sps:$4 sm:$0xff]  }
  0x6a   : > { %v2280_v43 = vld [vmem:[%s2381_s24 + $0x384] ss:$8 sps:$4 sm:$0xff]  }
  0x70   : > { %1251 = vmatmul.mubr.bf16.gmra.mxu0 %v2186_v44  ;;  %1507 = vmatmul.mubr.bf16.gmra.mxu1 %v2187_v45  ;;  %v2282_v44 = vld [vmem:[%s2381_s24 + $0x180] ss:$8 sps:$4 sm:$0xff]  }
  0x71   : > { %2040 = vmatprep.mubr.msk.bf16.mxu0 %vm961_vm0, %v2188_v46  ;;  %2072 = vmatprep.mubr.msk.bf16.mxu1 %vm961_vm0, %v2190_v47  ;;  %v2283_v45 = vld [vmem:[%s2381_s24 + $0x380] ss:$8 sps:$4 sm:$0xff]   ;;  %v2284_v46 = vld [vmem:[%s2381_s24 + $0x194] ss:$8 sps:$4 sm:$0xff]  }
  0x72   : > { %v2286_v47 = vld [vmem:[%s2381_s24 + $0x394] ss:$8 sps:$4 sm:$0xff]  }
  0x78   : > { %1259 = vmatmul.mubr.bf16.gmra.mxu0 %v2192_v48  ;;  %1515 = vmatmul.mubr.bf16.gmra.mxu1 %v2193_v49  ;;  %v2556_v48 = vld [vmem:[%s2855_s2] ss:$0 sm:$0xff] }
  0x79   : > { %2041 = vmatprep.mubr.msk.bf16.mxu0 %vm961_vm0, %v2194_v50  ;;  %2073 = vmatprep.mubr.msk.bf16.mxu1 %vm961_vm0, %v2196_v51 }
  0x80   : > { %1267 = vmatmul.mubr.bf16.gmra.mxu0 %v2198_v52  ;;  %1523 = vmatmul.mubr.bf16.gmra.mxu1 %v2199_v53 }
  0x81   : > { %2042 = vmatprep.mubr.msk.bf16.mxu0 %vm961_vm0, %v2200_v54  ;;  %2074 = vmatprep.mubr.msk.bf16.mxu1 %vm961_vm0, %v2202_v55 }
  0x88   : > { %1275 = vmatmul.mubr.bf16.gmra.mxu0 %v2204_v56  ;;  %1531 = vmatmul.mubr.bf16.gmra.mxu1 %v2205_v57  ;;  %v2288_v57 = vld [vmem:[%s2381_s24 + $0x190] ss:$8 sps:$4 sm:$0xff]  }
  0x89   : > { %2043 = vmatprep.mubr.msk.bf16.mxu0 %vm961_vm0, %v2206_v58  ;;  %2075 = vmatprep.mubr.msk.bf16.mxu1 %vm961_vm0, %v2208_v59  ;;  %v2289_v58 = vld [vmem:[%s2381_s24 + $0x390] ss:$8 sps:$4 sm:$0xff]  }
  0x90   : > { %1283 = vmatmul.mubr.bf16.gmra.mxu0 %v2210_v60  ;;  %1539 = vmatmul.mubr.bf16.gmra.mxu1 %v2211_v61  ;;  %v2290_v61 = vld [vmem:[%s2381_s24 + $0x1a4] ss:$8 sps:$4 sm:$0xff]  }
  0x91   : > { %2044 = vmatprep.mubr.msk.bf16.mxu0 %vm961_vm0, %v2212_v62  ;;  %2076 = vmatprep.mubr.msk.bf16.mxu1 %vm961_vm0, %v2214_v63  ;;  %v2292_v62 = vld [vmem:[%s2381_s24 + $0x3a4] ss:$8 sps:$4 sm:$0xff]  }
  0x98   : > { %1291 = vmatmul.mubr.bf16.gmra.mxu0 %v2216_v0  ;;  %1547 = vmatmul.mubr.bf16.gmra.mxu1 %v2217_v1 }
  0x99   : > { %2045 = vmatprep.mubr.msk.bf16.mxu0 %vm961_vm0, %v2218_v2  ;;  %2077 = vmatprep.mubr.msk.bf16.mxu1 %vm961_vm0, %v2220_v3 }
  0xa0   : > { %1299 = vmatmul.mubr.bf16.gmra.mxu0 %v2222_v4  ;;  %1555 = vmatmul.mubr.bf16.gmra.mxu1 %v2223_v5 }
  0xa1   : > { %2046 = vmatprep.mubr.msk.bf16.mxu0 %vm961_vm0, %v2224_v6  ;;  %2078 = vmatprep.mubr.msk.bf16.mxu1 %vm961_vm0, %v2226_v7 }
  0xa8   : > { %1307 = vmatmul.mubr.bf16.gmra.mxu0 %v2228_v8  ;;  %1563 = vmatmul.mubr.bf16.gmra.mxu1 %v2229_v9  ;;  %v2294_v9 = vld [vmem:[%s2381_s24 + $0x1a0] ss:$8 sps:$4 sm:$0xff]  }
  0xa9   : > { %2047 = vmatprep.mubr.msk.bf16.mxu0 %vm961_vm0, %v2230_v10  ;;  %2079 = vmatprep.mubr.msk.bf16.mxu1 %vm961_vm0, %v2232_v11  ;;  %v2295_v10 = vld [vmem:[%s2381_s24 + $0x3a0] ss:$8 sps:$4 sm:$0xff]  }
  0xb0   : > { %1315 = vmatmul.mubr.bf16.gmra.mxu0 %v2234_v12  ;;  %1571 = vmatmul.mubr.bf16.gmra.mxu1 %v2235_v13  ;;  %v2296_v13 = vld [vmem:[%s2381_s24 + $0x1b4] ss:$8 sps:$4 sm:$0xff]  }
  0xb1   : > { %2048 = vmatprep.mubr.msk.bf16.mxu0 %vm961_vm0, %v2236_v14  ;;  %2080 = vmatprep.mubr.msk.bf16.mxu1 %vm961_vm0, %v2238_v15  ;;  %v2298_v14 = vld [vmem:[%s2381_s24 + $0x3b4] ss:$8 sps:$4 sm:$0xff]  }
  0xb8   : > { %1323 = vmatmul.mubr.bf16.gmra.mxu0 %v2240_v16  ;;  %1579 = vmatmul.mubr.bf16.gmra.mxu1 %v2241_v17 }
  0xb9   : > { %2049 = vmatprep.mubr.msk.bf16.mxu0 %vm961_vm0, %v2242_v18  ;;  %2081 = vmatprep.mubr.msk.bf16.mxu1 %vm961_vm0, %v2244_v19 }
  0xc0   : > { %1331 = vmatmul.mubr.bf16.gmra.mxu0 %v2246_v20  ;;  %1587 = vmatmul.mubr.bf16.gmra.mxu1 %v2247_v21 }
  0xc1   : > { %2050 = vmatprep.mubr.msk.bf16.mxu0 %vm961_vm0, %v2248_v22  ;;  %2082 = vmatprep.mubr.msk.bf16.mxu1 %vm961_vm0, %v2250_v23 }
  0xc8   : > { %1339 = vmatmul.mubr.bf16.gmra.mxu0 %v2252_v24  ;;  %1595 = vmatmul.mubr.bf16.gmra.mxu1 %v2253_v25  ;;  %v2300_v25 = vld [vmem:[%s2381_s24 + $0x1b0] ss:$8 sps:$4 sm:$0xff]  }
  0xc9   : > { %2051 = vmatprep.mubr.msk.bf16.mxu0 %vm961_vm0, %v2254_v26  ;;  %2083 = vmatprep.mubr.msk.bf16.mxu1 %vm961_vm0, %v2256_v27  ;;  %v2301_v26 = vld [vmem:[%s2381_s24 + $0x3b0] ss:$8 sps:$4 sm:$0xff]  }
  0xd0   : > { %1347 = vmatmul.mubr.bf16.gmra.mxu0 %v2258_v28  ;;  %1603 = vmatmul.mubr.bf16.gmra.mxu1 %v2259_v29  ;;  %v2302_v29 = vld [vmem:[%s2381_s24 + $0x1c4] ss:$8 sps:$4 sm:$0xff]  }
  0xd1   : > { %2052 = vmatprep.mubr.msk.bf16.mxu0 %vm961_vm0, %v2260_v30  ;;  %2084 = vmatprep.mubr.msk.bf16.mxu1 %vm961_vm0, %v2262_v31  ;;  %v2304_v30 = vld [vmem:[%s2381_s24 + $0x3c4] ss:$8 sps:$4 sm:$0xff]  }
  0xd8   : > { %1355 = vmatmul.mubr.bf16.gmra.mxu0 %v2264_v32  ;;  %1611 = vmatmul.mubr.bf16.gmra.mxu1 %v2265_v33 }
  0xd9   : > { %2053 = vmatprep.mubr.msk.bf16.mxu0 %vm961_vm0, %v2266_v34  ;;  %2085 = vmatprep.mubr.msk.bf16.mxu1 %vm961_vm0, %v2268_v35 }
  0xe0   : > { %1363 = vmatmul.mubr.bf16.gmra.mxu0 %v2270_v36  ;;  %1619 = vmatmul.mubr.bf16.gmra.mxu1 %v2271_v37 }
  0xe1   : > { %2054 = vmatprep.mubr.msk.bf16.mxu0 %vm961_vm0, %v2272_v38  ;;  %2086 = vmatprep.mubr.msk.bf16.mxu1 %vm961_vm0, %v2274_v39 }
  0xe8   : > { %1371 = vmatmul.mubr.bf16.gmra.mxu0 %v2276_v40  ;;  %1627 = vmatmul.mubr.bf16.gmra.mxu1 %v2277_v41  ;;  %v2306_v41 = vld [vmem:[%s2381_s24 + $0x1c0] ss:$8 sps:$4 sm:$0xff]  }
  0xe9   : > { %2055 = vmatprep.mubr.msk.bf16.mxu0 %vm961_vm0, %v2278_v42  ;;  %2087 = vmatprep.mubr.msk.bf16.mxu1 %vm961_vm0, %v2280_v43  ;;  %v2307_v42 = vld [vmem:[%s2381_s24 + $0x3c0] ss:$8 sps:$4 sm:$0xff]  }
  0xf0   : > { %v1188_v49 = vpop.f32.mrf.mxu0  ;;  %1379 = vmatmul.mubr.bf16.gmra.mxu0 %v2282_v44  ;;  %v1444_v50 = vpop.f32.mrf.mxu1  ;;  %1635 = vmatmul.mubr.bf16.gmra.mxu1 %v2283_v45  ;;  %v2308_v45 = vld [vmem:[%s2381_s24 + $0x1d4] ss:$8 sps:$4 sm:$0xff]  }
  0xf1   : > { %v1189_v51 = vadd.f32 %v2556_v48, %v1188_v49  ;;  %v1445_v52 = vadd.f32 %v2556_v48, %v1444_v50  ;;  %2056 = vmatprep.mubr.msk.bf16.mxu0 %vm961_vm0, %v2284_v46  ;;  %2088 = vmatprep.mubr.msk.bf16.mxu1 %vm961_vm0, %v2286_v47  ;;  %v2310_v46 = vld [vmem:[%s2381_s24 + $0x3d4] ss:$8 sps:$4 sm:$0xff]  }
  0xf2   : > { %v1190_v53 = vpop.f32.mrf.mxu0  ;;  %v1446_v54 = vpop.f32.mrf.mxu1 }
  0xf3   : > { %1699 = vst [vmem:[%s2563_s15] sm:$0xff] %v1189_v51  ;;  %1763 = vst [vmem:[%s2563_s15 + $0x200] sm:$0xff] %v1445_v52 }
  0xf4   : > { %v1191_v55 = vpop.f32.mrf.mxu0  ;;  %v1447_v56 = vpop.f32.mrf.mxu1 }
  0xf5   : > { %v1192_v59 = vadd.f32 %v2556_v48, %v1191_v55  ;;  %v1448_v60 = vadd.f32 %v2556_v48, %v1447_v56 }
  0xf6   : > { %v1193_v63 = vpop.f32.mrf.mxu0  ;;  %v1449_v0 = vpop.f32.mrf.mxu1 }
  0xf7   : > { %1700 = vst [vmem:[%s2563_s15 + $0x8] sm:$0xff] %v1192_v59  ;;  %1764 = vst [vmem:[%s2563_s15 + $0x208] sm:$0xff] %v1448_v60  ;;  %v2313_v59 = vld [vmem:[%s2381_s24 + $0x3d0] ss:$8 sps:$4 sm:$0xff]   ;;  %v2316_v63 = vld [vmem:[%s2381_s24 + $0x3e4] ss:$8 sps:$4 sm:$0xff]  }
  0xf8   : > { %v1196_v1 = vpop.f32.mrf.mxu0  ;;  %1387 = vmatmul.mubr.bf16.gmra.mxu0 %v2288_v57  ;;  %v1452_v2 = vpop.f32.mrf.mxu1  ;;  %1643 = vmatmul.mubr.bf16.gmra.mxu1 %v2289_v58  ;;  %v2312_v58 = vld [vmem:[%s2381_s24 + $0x1d0] ss:$8 sps:$4 sm:$0xff]  }
  0xf9   : > { %v1197_v3 = vadd.f32 %v2556_v48, %v1196_v1  ;;  %v1453_v4 = vadd.f32 %v2556_v48, %v1452_v2  ;;  %2057 = vmatprep.mubr.msk.bf16.mxu0 %vm961_vm0, %v2290_v61  ;;  %2089 = vmatprep.mubr.msk.bf16.mxu1 %vm961_vm0, %v2292_v62  ;;  %v2314_v62 = vld [vmem:[%s2381_s24 + $0x1e4] ss:$8 sps:$4 sm:$0xff]  }
  0xfa   : > { %v1198_v5 = vpop.f32.mrf.mxu0  ;;  %v1454_v6 = vpop.f32.mrf.mxu1 }
  0xfb   : > { %1701 = vst [vmem:[%s2563_s15 + $0x10] sm:$0xff] %v1197_v3  ;;  %1765 = vst [vmem:[%s2563_s15 + $0x210] sm:$0xff] %v1453_v4 }
  0xfc   : > { %v1199_v7 = vpop.f32.mrf.mxu0  ;;  %v1455_v8 = vpop.f32.mrf.mxu1 }
  0xfd   : > { %v1200_v11 = vadd.f32 %v2556_v48, %v1199_v7  ;;  %v1456_v12 = vadd.f32 %v2556_v48, %v1455_v8 }
  0xfe   : > { %v1201_v15 = vpop.f32.mrf.mxu0  ;;  %v1457_v16 = vpop.f32.mrf.mxu1 }
  0xff   : > { %1702 = vst [vmem:[%s2563_s15 + $0x18] sm:$0xff] %v1200_v11  ;;  %1766 = vst [vmem:[%s2563_s15 + $0x218] sm:$0xff] %v1456_v12  ;;  %v2319_v11 = vld [vmem:[%s2381_s24 + $0x3e0] ss:$8 sps:$4 sm:$0xff]   ;;  %v2322_v15 = vld [vmem:[%s2381_s24 + $0x3f4] ss:$8 sps:$4 sm:$0xff]  }
 0x100   : > { %v1204_v17 = vpop.f32.mrf.mxu0  ;;  %1395 = vmatmul.mubr.bf16.gmra.mxu0 %v2294_v9  ;;  %v1460_v18 = vpop.f32.mrf.mxu1  ;;  %1651 = vmatmul.mubr.bf16.gmra.mxu1 %v2295_v10  ;;  %v2318_v10 = vld [vmem:[%s2381_s24 + $0x1e0] ss:$8 sps:$4 sm:$0xff]  }
 0x101   : > { %v1205_v19 = vadd.f32 %v2556_v48, %v1204_v17  ;;  %v1461_v20 = vadd.f32 %v2556_v48, %v1460_v18  ;;  %2058 = vmatprep.mubr.msk.bf16.mxu0 %vm961_vm0, %v2296_v13  ;;  %2090 = vmatprep.mubr.msk.bf16.mxu1 %vm961_vm0, %v2298_v14  ;;  %v2320_v14 = vld [vmem:[%s2381_s24 + $0x1f4] ss:$8 sps:$4 sm:$0xff]  }
 0x102   : > { %v1206_v21 = vpop.f32.mrf.mxu0  ;;  %v1462_v22 = vpop.f32.mrf.mxu1 }
 0x103   : > { %1703 = vst [vmem:[%s2563_s15 + $0x20] sm:$0xff] %v1205_v19  ;;  %1767 = vst [vmem:[%s2563_s15 + $0x220] sm:$0xff] %v1461_v20 }
 0x104   : > { %v1207_v23 = vpop.f32.mrf.mxu0  ;;  %v1463_v24 = vpop.f32.mrf.mxu1 }
 0x105   : > { %v1208_v27 = vadd.f32 %v2556_v48, %v1207_v23  ;;  %v1464_v28 = vadd.f32 %v2556_v48, %v1463_v24 }
 0x106   : > { %v1209_v31 = vpop.f32.mrf.mxu0  ;;  %v1465_v32 = vpop.f32.mrf.mxu1 }
 0x107   : > { %1704 = vst [vmem:[%s2563_s15 + $0x28] sm:$0xff] %v1208_v27  ;;  %1768 = vst [vmem:[%s2563_s15 + $0x228] sm:$0xff] %v1464_v28  ;;  %v2325_v27 = vld [vmem:[%s2381_s24 + $0x3f0] ss:$8 sps:$4 sm:$0xff]  }
 0x108   : > { %v1212_v33 = vpop.f32.mrf.mxu0  ;;  %1403 = vmatmul.mubr.bf16.gmra.mxu0 %v2300_v25  ;;  %v1468_v34 = vpop.f32.mrf.mxu1  ;;  %1659 = vmatmul.mubr.bf16.gmra.mxu1 %v2301_v26  ;;  %v2324_v26 = vld [vmem:[%s2381_s24 + $0x1f0] ss:$8 sps:$4 sm:$0xff]  }
 0x109   : > { %v1213_v35 = vadd.f32 %v2556_v48, %v1212_v33  ;;  %v1469_v36 = vadd.f32 %v2556_v48, %v1468_v34  ;;  %2059 = vmatprep.mubr.msk.bf16.mxu0 %vm961_vm0, %v2302_v29  ;;  %2091 = vmatprep.mubr.msk.bf16.mxu1 %vm961_vm0, %v2304_v30 }
 0x10a   : > { %v1214_v37 = vpop.f32.mrf.mxu0  ;;  %v1470_v38 = vpop.f32.mrf.mxu1 }
 0x10b   : > { %1705 = vst [vmem:[%s2563_s15 + $0x30] sm:$0xff] %v1213_v35  ;;  %1769 = vst [vmem:[%s2563_s15 + $0x230] sm:$0xff] %v1469_v36 }
 0x10c   : > { %v1215_v39 = vpop.f32.mrf.mxu0  ;;  %v1471_v40 = vpop.f32.mrf.mxu1 }
 0x10d   : > { %v1216_v43 = vadd.f32 %v2556_v48, %v1215_v39  ;;  %v1472_v44 = vadd.f32 %v2556_v48, %v1471_v40 }
 0x10e   : > { %v1217_v47 = vpop.f32.mrf.mxu0  ;;  %v1473_v49 = vpop.f32.mrf.mxu1 }
 0x10f   : > { %1706 = vst [vmem:[%s2563_s15 + $0x38] sm:$0xff] %v1216_v43  ;;  %1770 = vst [vmem:[%s2563_s15 + $0x238] sm:$0xff] %v1472_v44 }
 0x110   : > { %v1220_v50 = vpop.f32.mrf.mxu0  ;;  %1411 = vmatmul.mubr.bf16.gmra.mxu0 %v2306_v41  ;;  %v1476_v51 = vpop.f32.mrf.mxu1  ;;  %1667 = vmatmul.mubr.bf16.gmra.mxu1 %v2307_v42 }
 0x111   : > { %v1221_v52 = vadd.f32 %v2556_v48, %v1220_v50  ;;  %v1477_v53 = vadd.f32 %v2556_v48, %v1476_v51  ;;  %2060 = vmatprep.mubr.msk.bf16.mxu0 %vm961_vm0, %v2308_v45  ;;  %2092 = vmatprep.mubr.msk.bf16.mxu1 %vm961_vm0, %v2310_v46 }
 0x112   : > { %v1222_v54 = vpop.f32.mrf.mxu0  ;;  %v1478_v55 = vpop.f32.mrf.mxu1 }
 0x113   : > { %1707 = vst [vmem:[%s2563_s15 + $0x40] sm:$0xff] %v1221_v52  ;;  %1771 = vst [vmem:[%s2563_s15 + $0x240] sm:$0xff] %v1477_v53 }
 0x114   : > { %v1223_v56 = vpop.f32.mrf.mxu0  ;;  %v1479_v57 = vpop.f32.mrf.mxu1 }
 0x115   : > { %v1224_v60 = vadd.f32 %v2556_v48, %v1223_v56  ;;  %v1480_v61 = vadd.f32 %v2556_v48, %v1479_v57 }
 0x116   : > { %v1225_v0 = vpop.f32.mrf.mxu0  ;;  %v1481_v1 = vpop.f32.mrf.mxu1 }
 0x117   : > { %1708 = vst [vmem:[%s2563_s15 + $0x48] sm:$0xff] %v1224_v60  ;;  %1772 = vst [vmem:[%s2563_s15 + $0x248] sm:$0xff] %v1480_v61 }
 0x118   : > { %v1228_v2 = vpop.f32.mrf.mxu0  ;;  %1419 = vmatmul.mubr.bf16.gmra.mxu0 %v2312_v58  ;;  %v1484_v3 = vpop.f32.mrf.mxu1  ;;  %1675 = vmatmul.mubr.bf16.gmra.mxu1 %v2313_v59 }
 0x119   : > { %v1229_v4 = vadd.f32 %v2556_v48, %v1228_v2  ;;  %v1485_v5 = vadd.f32 %v2556_v48, %v1484_v3  ;;  %2061 = vmatprep.mubr.msk.bf16.mxu0 %vm961_vm0, %v2314_v62  ;;  %2093 = vmatprep.mubr.msk.bf16.mxu1 %vm961_vm0, %v2316_v63 }
 0x11a   : > { %v1230_v6 = vpop.f32.mrf.mxu0  ;;  %v1486_v7 = vpop.f32.mrf.mxu1 }
 0x11b   : > { %1709 = vst [vmem:[%s2563_s15 + $0x50] sm:$0xff] %v1229_v4  ;;  %1773 = vst [vmem:[%s2563_s15 + $0x250] sm:$0xff] %v1485_v5 }
 0x11c   : > { %v1231_v8 = vpop.f32.mrf.mxu0  ;;  %v1487_v9 = vpop.f32.mrf.mxu1 }
 0x11d   : > { %v1232_v12 = vadd.f32 %v2556_v48, %v1231_v8  ;;  %v1488_v13 = vadd.f32 %v2556_v48, %v1487_v9 }
 0x11e   : > { %v1233_v16 = vpop.f32.mrf.mxu0  ;;  %v1489_v17 = vpop.f32.mrf.mxu1 }
 0x11f   : > { %1710 = vst [vmem:[%s2563_s15 + $0x58] sm:$0xff] %v1232_v12  ;;  %1774 = vst [vmem:[%s2563_s15 + $0x258] sm:$0xff] %v1488_v13 }
 0x120   : > { %v1236_v18 = vpop.f32.mrf.mxu0  ;;  %1427 = vmatmul.mubr.bf16.gmra.mxu0 %v2318_v10  ;;  %v1492_v19 = vpop.f32.mrf.mxu1  ;;  %1683 = vmatmul.mubr.bf16.gmra.mxu1 %v2319_v11 }
 0x121   : > { %v1237_v20 = vadd.f32 %v2556_v48, %v1236_v18  ;;  %v1493_v21 = vadd.f32 %v2556_v48, %v1492_v19  ;;  %2062 = vmatprep.mubr.msk.bf16.mxu0 %vm961_vm0, %v2320_v14  ;;  %2094 = vmatprep.mubr.msk.bf16.mxu1 %vm961_vm0, %v2322_v15 }
 0x122   : > { %v1238_v22 = vpop.f32.mrf.mxu0  ;;  %v1494_v23 = vpop.f32.mrf.mxu1 }
 0x123   : > { %1711 = vst [vmem:[%s2563_s15 + $0x60] sm:$0xff] %v1237_v20  ;;  %1775 = vst [vmem:[%s2563_s15 + $0x260] sm:$0xff] %v1493_v21 }
 0x124   : > { %v1239_v24 = vpop.f32.mrf.mxu0  ;;  %v1495_v25 = vpop.f32.mrf.mxu1 }
 0x125   : > { %v1240_v28 = vadd.f32 %v2556_v48, %v1239_v24  ;;  %v1496_v29 = vadd.f32 %v2556_v48, %v1495_v25 }
 0x126   : > { %v1241_v30 = vpop.f32.mrf.mxu0  ;;  %v1497_v31 = vpop.f32.mrf.mxu1 }
 0x127   : > { %1712 = vst [vmem:[%s2563_s15 + $0x68] sm:$0xff] %v1240_v28  ;;  %1776 = vst [vmem:[%s2563_s15 + $0x268] sm:$0xff] %v1496_v29 }
 0x128   : > { %v1244_v32 = vpop.f32.mrf.mxu0  ;;  %1435 = vmatmul.mubr.bf16.gmra.mxu0 %v2324_v26  ;;  %v1500_v33 = vpop.f32.mrf.mxu1  ;;  %1691 = vmatmul.mubr.bf16.gmra.mxu1 %v2325_v27 }
 0x129   : > { %v1245_v34 = vadd.f32 %v2556_v48, %v1244_v32  ;;  %v1501_v35 = vadd.f32 %v2556_v48, %v1500_v33 }
 0x12a   : > { %v1246_v36 = vpop.f32.mrf.mxu0  ;;  %v1502_v37 = vpop.f32.mrf.mxu1 }
 0x12b   : > { %1713 = vst [vmem:[%s2563_s15 + $0x70] sm:$0xff] %v1245_v34  ;;  %1777 = vst [vmem:[%s2563_s15 + $0x270] sm:$0xff] %v1501_v35 }
 0x12c   : > { %v1247_v38 = vpop.f32.mrf.mxu0  ;;  %v1503_v39 = vpop.f32.mrf.mxu1 }
 0x12d   : > { %v1248_v40 = vadd.f32 %v2556_v48, %v1247_v38  ;;  %v1504_v41 = vadd.f32 %v2556_v48, %v1503_v39 }
 0x12e   : > { %v1249_v42 = vpop.f32.mrf.mxu0  ;;  %v1505_v43 = vpop.f32.mrf.mxu1 }
 0x12f   : > { %1714 = vst [vmem:[%s2563_s15 + $0x78] sm:$0xff] %v1248_v40  ;;  %1778 = vst [vmem:[%s2563_s15 + $0x278] sm:$0xff] %v1504_v41 }
 0x130   : > { %v1252_v44 = vpop.f32.mrf.mxu0  ;;  %v1508_v45 = vpop.f32.mrf.mxu1 }
 0x131   : > { %v1253_v46 = vadd.f32 %v2556_v48, %v1252_v44  ;;  %v1509_v47 = vadd.f32 %v2556_v48, %v1508_v45 }
 0x132   : > { %v1254_v49 = vpop.f32.mrf.mxu0  ;;  %v1510_v50 = vpop.f32.mrf.mxu1 }
 0x133   : > { %1715 = vst [vmem:[%s2563_s15 + $0x80] sm:$0xff] %v1253_v46  ;;  %1779 = vst [vmem:[%s2563_s15 + $0x280] sm:$0xff] %v1509_v47 }
 0x134   : > { %v1255_v51 = vpop.f32.mrf.mxu0  ;;  %v1511_v52 = vpop.f32.mrf.mxu1 }
 0x135   : > { %v1256_v53 = vadd.f32 %v2556_v48, %v1255_v51  ;;  %v1512_v54 = vadd.f32 %v2556_v48, %v1511_v52 }
 0x136   : > { %v1257_v55 = vpop.f32.mrf.mxu0  ;;  %v1513_v56 = vpop.f32.mrf.mxu1 }
 0x137   : > { %1716 = vst [vmem:[%s2563_s15 + $0x88] sm:$0xff] %v1256_v53  ;;  %1780 = vst [vmem:[%s2563_s15 + $0x288] sm:$0xff] %v1512_v54 }
 0x138   : > { %v1260_v57 = vpop.f32.mrf.mxu0  ;;  %v1516_v58 = vpop.f32.mrf.mxu1 }
 0x139   : > { %v1261_v59 = vadd.f32 %v2556_v48, %v1260_v57  ;;  %v1517_v60 = vadd.f32 %v2556_v48, %v1516_v58 }
 0x13a   : > { %v1262_v61 = vpop.f32.mrf.mxu0  ;;  %v1518_v62 = vpop.f32.mrf.mxu1 }
 0x13b   : > { %1717 = vst [vmem:[%s2563_s15 + $0x90] sm:$0xff] %v1261_v59  ;;  %1781 = vst [vmem:[%s2563_s15 + $0x290] sm:$0xff] %v1517_v60 }
 0x13c   : > { %v1263_v63 = vpop.f32.mrf.mxu0  ;;  %v1519_v0 = vpop.f32.mrf.mxu1 }
 0x13d   : > { %v1264_v1 = vadd.f32 %v2556_v48, %v1263_v63  ;;  %v1520_v2 = vadd.f32 %v2556_v48, %v1519_v0 }
 0x13e   : > { %v1265_v3 = vpop.f32.mrf.mxu0  ;;  %v1521_v4 = vpop.f32.mrf.mxu1 }
 0x13f   : > { %1718 = vst [vmem:[%s2563_s15 + $0x98] sm:$0xff] %v1264_v1  ;;  %1782 = vst [vmem:[%s2563_s15 + $0x298] sm:$0xff] %v1520_v2 }
 0x140   : > { %v1268_v5 = vpop.f32.mrf.mxu0  ;;  %v1524_v6 = vpop.f32.mrf.mxu1 }
 0x141   : > { %v1269_v7 = vadd.f32 %v2556_v48, %v1268_v5  ;;  %v1525_v8 = vadd.f32 %v2556_v48, %v1524_v6 }
 0x142   : > { %v1270_v9 = vpop.f32.mrf.mxu0  ;;  %v1526_v10 = vpop.f32.mrf.mxu1 }
 0x143   : > { %1719 = vst [vmem:[%s2563_s15 + $0xa0] sm:$0xff] %v1269_v7  ;;  %1783 = vst [vmem:[%s2563_s15 + $0x2a0] sm:$0xff] %v1525_v8 }
 0x144   : > { %v1271_v11 = vpop.f32.mrf.mxu0  ;;  %v1527_v12 = vpop.f32.mrf.mxu1 }
 0x145   : > { %v1272_v13 = vadd.f32 %v2556_v48, %v1271_v11  ;;  %v1528_v14 = vadd.f32 %v2556_v48, %v1527_v12 }
 0x146   : > { %v1273_v15 = vpop.f32.mrf.mxu0  ;;  %v1529_v16 = vpop.f32.mrf.mxu1 }
 0x147   : > { %1720 = vst [vmem:[%s2563_s15 + $0xa8] sm:$0xff] %v1272_v13  ;;  %1784 = vst [vmem:[%s2563_s15 + $0x2a8] sm:$0xff] %v1528_v14 }
 0x148   : > { %v1276_v17 = vpop.f32.mrf.mxu0  ;;  %v1532_v18 = vpop.f32.mrf.mxu1 }
 0x149   : > { %v1277_v19 = vadd.f32 %v2556_v48, %v1276_v17  ;;  %v1533_v20 = vadd.f32 %v2556_v48, %v1532_v18 }
 0x14a   : > { %v1278_v21 = vpop.f32.mrf.mxu0  ;;  %v1534_v22 = vpop.f32.mrf.mxu1 }
 0x14b   : > { %1721 = vst [vmem:[%s2563_s15 + $0xb0] sm:$0xff] %v1277_v19  ;;  %1785 = vst [vmem:[%s2563_s15 + $0x2b0] sm:$0xff] %v1533_v20 }
 0x14c   : > { %v1279_v23 = vpop.f32.mrf.mxu0  ;;  %v1535_v24 = vpop.f32.mrf.mxu1 }
 0x14d   : > { %v1280_v25 = vadd.f32 %v2556_v48, %v1279_v23  ;;  %v1536_v26 = vadd.f32 %v2556_v48, %v1535_v24 }
 0x14e   : > { %v1281_v27 = vpop.f32.mrf.mxu0  ;;  %v1537_v28 = vpop.f32.mrf.mxu1 }
 0x14f   : > { %1722 = vst [vmem:[%s2563_s15 + $0xb8] sm:$0xff] %v1280_v25  ;;  %1786 = vst [vmem:[%s2563_s15 + $0x2b8] sm:$0xff] %v1536_v26 }
 0x150   : > { %v1284_v29 = vpop.f32.mrf.mxu0  ;;  %v1540_v30 = vpop.f32.mrf.mxu1 }
 0x151   : > { %v1285_v31 = vadd.f32 %v2556_v48, %v1284_v29  ;;  %v1541_v32 = vadd.f32 %v2556_v48, %v1540_v30 }
 0x152   : > { %v1286_v33 = vpop.f32.mrf.mxu0  ;;  %v1542_v34 = vpop.f32.mrf.mxu1 }
 0x153   : > { %1723 = vst [vmem:[%s2563_s15 + $0xc0] sm:$0xff] %v1285_v31  ;;  %1787 = vst [vmem:[%s2563_s15 + $0x2c0] sm:$0xff] %v1541_v32 }
 0x154   : > { %v1287_v35 = vpop.f32.mrf.mxu0  ;;  %v1543_v36 = vpop.f32.mrf.mxu1 }
 0x155   : > { %v1288_v37 = vadd.f32 %v2556_v48, %v1287_v35  ;;  %v1544_v38 = vadd.f32 %v2556_v48, %v1543_v36 }
 0x156   : > { %v1289_v39 = vpop.f32.mrf.mxu0  ;;  %v1545_v40 = vpop.f32.mrf.mxu1 }
 0x157   : > { %1724 = vst [vmem:[%s2563_s15 + $0xc8] sm:$0xff] %v1288_v37  ;;  %1788 = vst [vmem:[%s2563_s15 + $0x2c8] sm:$0xff] %v1544_v38 }
 0x158   : > { %v1292_v41 = vpop.f32.mrf.mxu0  ;;  %v1548_v42 = vpop.f32.mrf.mxu1 }
 0x159   : > { %v1293_v43 = vadd.f32 %v2556_v48, %v1292_v41  ;;  %v1549_v44 = vadd.f32 %v2556_v48, %v1548_v42 }
 0x15a   : > { %v1294_v45 = vpop.f32.mrf.mxu0  ;;  %v1550_v46 = vpop.f32.mrf.mxu1 }
 0x15b   : > { %1725 = vst [vmem:[%s2563_s15 + $0xd0] sm:$0xff] %v1293_v43  ;;  %1789 = vst [vmem:[%s2563_s15 + $0x2d0] sm:$0xff] %v1549_v44 }
 0x15c   : > { %v1295_v47 = vpop.f32.mrf.mxu0  ;;  %v1551_v49 = vpop.f32.mrf.mxu1 }
 0x15d   : > { %v1296_v50 = vadd.f32 %v2556_v48, %v1295_v47  ;;  %v1552_v51 = vadd.f32 %v2556_v48, %v1551_v49 }
 0x15e   : > { %v1297_v52 = vpop.f32.mrf.mxu0  ;;  %v1553_v53 = vpop.f32.mrf.mxu1 }
 0x15f   : > { %1726 = vst [vmem:[%s2563_s15 + $0xd8] sm:$0xff] %v1296_v50  ;;  %1790 = vst [vmem:[%s2563_s15 + $0x2d8] sm:$0xff] %v1552_v51 }
 0x160   : > { %v1300_v54 = vpop.f32.mrf.mxu0  ;;  %v1556_v55 = vpop.f32.mrf.mxu1 }
 0x161   : > { %v1301_v56 = vadd.f32 %v2556_v48, %v1300_v54  ;;  %v1557_v57 = vadd.f32 %v2556_v48, %v1556_v55 }
 0x162   : > { %v1302_v58 = vpop.f32.mrf.mxu0  ;;  %v1558_v59 = vpop.f32.mrf.mxu1 }
 0x163   : > { %1727 = vst [vmem:[%s2563_s15 + $0xe0] sm:$0xff] %v1301_v56  ;;  %1791 = vst [vmem:[%s2563_s15 + $0x2e0] sm:$0xff] %v1557_v57 }
 0x164   : > { %v1303_v60 = vpop.f32.mrf.mxu0  ;;  %v1559_v61 = vpop.f32.mrf.mxu1 }
 0x165   : > { %v1304_v62 = vadd.f32 %v2556_v48, %v1303_v60  ;;  %v1560_v63 = vadd.f32 %v2556_v48, %v1559_v61 }
 0x166   : > { %v1305_v0 = vpop.f32.mrf.mxu0  ;;  %v1561_v1 = vpop.f32.mrf.mxu1 }
 0x167   : > { %1728 = vst [vmem:[%s2563_s15 + $0xe8] sm:$0xff] %v1304_v62  ;;  %1792 = vst [vmem:[%s2563_s15 + $0x2e8] sm:$0xff] %v1560_v63 }
 0x168   : > { %v1308_v2 = vpop.f32.mrf.mxu0  ;;  %v1564_v3 = vpop.f32.mrf.mxu1 }
 0x169   : > { %v1309_v4 = vadd.f32 %v2556_v48, %v1308_v2  ;;  %v1565_v5 = vadd.f32 %v2556_v48, %v1564_v3 }
 0x16a   : > { %v1310_v6 = vpop.f32.mrf.mxu0  ;;  %v1566_v7 = vpop.f32.mrf.mxu1 }
 0x16b   : > { %1729 = vst [vmem:[%s2563_s15 + $0xf0] sm:$0xff] %v1309_v4  ;;  %1793 = vst [vmem:[%s2563_s15 + $0x2f0] sm:$0xff] %v1565_v5 }
 0x16c   : > { %v1311_v8 = vpop.f32.mrf.mxu0  ;;  %v1567_v9 = vpop.f32.mrf.mxu1 }
 0x16d   : > { %v1312_v10 = vadd.f32 %v2556_v48, %v1311_v8  ;;  %v1568_v11 = vadd.f32 %v2556_v48, %v1567_v9 }
 0x16e   : > { %v1313_v12 = vpop.f32.mrf.mxu0  ;;  %v1569_v13 = vpop.f32.mrf.mxu1 }
 0x16f   : > { %1730 = vst [vmem:[%s2563_s15 + $0xf8] sm:$0xff] %v1312_v10  ;;  %1794 = vst [vmem:[%s2563_s15 + $0x2f8] sm:$0xff] %v1568_v11 }
 0x170   : > { %v1316_v14 = vpop.f32.mrf.mxu0  ;;  %v1572_v15 = vpop.f32.mrf.mxu1 }
 0x171   : > { %v1317_v16 = vadd.f32 %v2556_v48, %v1316_v14  ;;  %v1573_v17 = vadd.f32 %v2556_v48, %v1572_v15 }
 0x172   : > { %v1318_v18 = vpop.f32.mrf.mxu0  ;;  %v1574_v19 = vpop.f32.mrf.mxu1 }
 0x173   : > { %1731 = vst [vmem:[%s2563_s15 + $0x100] sm:$0xff] %v1317_v16  ;;  %1795 = vst [vmem:[%s2563_s15 + $0x300] sm:$0xff] %v1573_v17 }
 0x174   : > { %v1319_v20 = vpop.f32.mrf.mxu0  ;;  %v1575_v21 = vpop.f32.mrf.mxu1 }
 0x175   : > { %v1320_v22 = vadd.f32 %v2556_v48, %v1319_v20  ;;  %v1576_v23 = vadd.f32 %v2556_v48, %v1575_v21 }
 0x176   : > { %v1321_v24 = vpop.f32.mrf.mxu0  ;;  %v1577_v25 = vpop.f32.mrf.mxu1 }
 0x177   : > { %1732 = vst [vmem:[%s2563_s15 + $0x108] sm:$0xff] %v1320_v22  ;;  %1796 = vst [vmem:[%s2563_s15 + $0x308] sm:$0xff] %v1576_v23 }
 0x178   : > { %v1324_v26 = vpop.f32.mrf.mxu0  ;;  %v1580_v27 = vpop.f32.mrf.mxu1 }
 0x179   : > { %v1325_v28 = vadd.f32 %v2556_v48, %v1324_v26  ;;  %v1581_v29 = vadd.f32 %v2556_v48, %v1580_v27 }
 0x17a   : > { %v1326_v30 = vpop.f32.mrf.mxu0  ;;  %v1582_v31 = vpop.f32.mrf.mxu1 }
 0x17b   : > { %1733 = vst [vmem:[%s2563_s15 + $0x110] sm:$0xff] %v1325_v28  ;;  %1797 = vst [vmem:[%s2563_s15 + $0x310] sm:$0xff] %v1581_v29 }
 0x17c   : > { %v1327_v32 = vpop.f32.mrf.mxu0  ;;  %v1583_v33 = vpop.f32.mrf.mxu1 }
 0x17d   : > { %v1328_v34 = vadd.f32 %v2556_v48, %v1327_v32  ;;  %v1584_v35 = vadd.f32 %v2556_v48, %v1583_v33 }
 0x17e   : > { %v1329_v36 = vpop.f32.mrf.mxu0  ;;  %v1585_v37 = vpop.f32.mrf.mxu1 }
 0x17f   : > { %1734 = vst [vmem:[%s2563_s15 + $0x118] sm:$0xff] %v1328_v34  ;;  %1798 = vst [vmem:[%s2563_s15 + $0x318] sm:$0xff] %v1584_v35 }
 0x180   : > { %v1332_v38 = vpop.f32.mrf.mxu0  ;;  %v1588_v39 = vpop.f32.mrf.mxu1 }
 0x181   : > { %v1333_v40 = vadd.f32 %v2556_v48, %v1332_v38  ;;  %v1589_v41 = vadd.f32 %v2556_v48, %v1588_v39 }
 0x182   : > { %v1334_v42 = vpop.f32.mrf.mxu0  ;;  %v1590_v43 = vpop.f32.mrf.mxu1 }
 0x183   : > { %1735 = vst [vmem:[%s2563_s15 + $0x120] sm:$0xff] %v1333_v40  ;;  %1799 = vst [vmem:[%s2563_s15 + $0x320] sm:$0xff] %v1589_v41 }
 0x184   : > { %v1335_v44 = vpop.f32.mrf.mxu0  ;;  %v1591_v45 = vpop.f32.mrf.mxu1 }
 0x185   : > { %v1336_v46 = vadd.f32 %v2556_v48, %v1335_v44  ;;  %v1592_v47 = vadd.f32 %v2556_v48, %v1591_v45 }
 0x186   : > { %v1337_v49 = vpop.f32.mrf.mxu0  ;;  %v1593_v50 = vpop.f32.mrf.mxu1 }
 0x187   : > { %1736 = vst [vmem:[%s2563_s15 + $0x128] sm:$0xff] %v1336_v46  ;;  %1800 = vst [vmem:[%s2563_s15 + $0x328] sm:$0xff] %v1592_v47 }
 0x188   : > { %v1340_v51 = vpop.f32.mrf.mxu0  ;;  %v1596_v52 = vpop.f32.mrf.mxu1 }
 0x189   : > { %v1341_v53 = vadd.f32 %v2556_v48, %v1340_v51  ;;  %v1597_v54 = vadd.f32 %v2556_v48, %v1596_v52 }
 0x18a   : > { %v1342_v55 = vpop.f32.mrf.mxu0  ;;  %v1598_v56 = vpop.f32.mrf.mxu1 }
 0x18b   : > { %1737 = vst [vmem:[%s2563_s15 + $0x130] sm:$0xff] %v1341_v53  ;;  %1801 = vst [vmem:[%s2563_s15 + $0x330] sm:$0xff] %v1597_v54 }
 0x18c   : > { %v1343_v57 = vpop.f32.mrf.mxu0  ;;  %v1599_v58 = vpop.f32.mrf.mxu1 }
 0x18d   : > { %v1344_v59 = vadd.f32 %v2556_v48, %v1343_v57  ;;  %v1600_v60 = vadd.f32 %v2556_v48, %v1599_v58 }
 0x18e   : > { %v1345_v61 = vpop.f32.mrf.mxu0  ;;  %v1601_v62 = vpop.f32.mrf.mxu1 }
 0x18f   : > { %1738 = vst [vmem:[%s2563_s15 + $0x138] sm:$0xff] %v1344_v59  ;;  %1802 = vst [vmem:[%s2563_s15 + $0x338] sm:$0xff] %v1600_v60 }
 0x190   : > { %v1348_v63 = vpop.f32.mrf.mxu0  ;;  %v1604_v0 = vpop.f32.mrf.mxu1 }
 0x191   : > { %v1349_v1 = vadd.f32 %v2556_v48, %v1348_v63  ;;  %v1605_v2 = vadd.f32 %v2556_v48, %v1604_v0 }
 0x192   : > { %v1350_v3 = vpop.f32.mrf.mxu0  ;;  %v1606_v4 = vpop.f32.mrf.mxu1 }
 0x193   : > { %1739 = vst [vmem:[%s2563_s15 + $0x140] sm:$0xff] %v1349_v1  ;;  %1803 = vst [vmem:[%s2563_s15 + $0x340] sm:$0xff] %v1605_v2 }
 0x194   : > { %v1351_v5 = vpop.f32.mrf.mxu0  ;;  %v1607_v6 = vpop.f32.mrf.mxu1 }
 0x195   : > { %v1352_v7 = vadd.f32 %v2556_v48, %v1351_v5  ;;  %v1608_v8 = vadd.f32 %v2556_v48, %v1607_v6 }
 0x196   : > { %v1353_v9 = vpop.f32.mrf.mxu0  ;;  %v1609_v10 = vpop.f32.mrf.mxu1 }
 0x197   : > { %1740 = vst [vmem:[%s2563_s15 + $0x148] sm:$0xff] %v1352_v7  ;;  %1804 = vst [vmem:[%s2563_s15 + $0x348] sm:$0xff] %v1608_v8 }
 0x198   : > { %v1356_v11 = vpop.f32.mrf.mxu0  ;;  %v1612_v12 = vpop.f32.mrf.mxu1 }
 0x199   : > { %v1357_v13 = vadd.f32 %v2556_v48, %v1356_v11  ;;  %v1613_v14 = vadd.f32 %v2556_v48, %v1612_v12 }
 0x19a   : > { %v1358_v15 = vpop.f32.mrf.mxu0  ;;  %v1614_v16 = vpop.f32.mrf.mxu1 }
 0x19b   : > { %1741 = vst [vmem:[%s2563_s15 + $0x150] sm:$0xff] %v1357_v13  ;;  %1805 = vst [vmem:[%s2563_s15 + $0x350] sm:$0xff] %v1613_v14 }
 0x19c   : > { %v1359_v17 = vpop.f32.mrf.mxu0  ;;  %v1615_v18 = vpop.f32.mrf.mxu1 }
 0x19d   : > { %v1360_v19 = vadd.f32 %v2556_v48, %v1359_v17  ;;  %v1616_v20 = vadd.f32 %v2556_v48, %v1615_v18 }
 0x19e   : > { %v1361_v21 = vpop.f32.mrf.mxu0  ;;  %v1617_v22 = vpop.f32.mrf.mxu1 }
 0x19f   : > { %1742 = vst [vmem:[%s2563_s15 + $0x158] sm:$0xff] %v1360_v19  ;;  %1806 = vst [vmem:[%s2563_s15 + $0x358] sm:$0xff] %v1616_v20 }
 0x1a0   : > { %v1364_v23 = vpop.f32.mrf.mxu0  ;;  %v1620_v24 = vpop.f32.mrf.mxu1 }
 0x1a1   : > { %v1365_v25 = vadd.f32 %v2556_v48, %v1364_v23  ;;  %v1621_v26 = vadd.f32 %v2556_v48, %v1620_v24 }
 0x1a2   : > { %v1366_v27 = vpop.f32.mrf.mxu0  ;;  %v1622_v28 = vpop.f32.mrf.mxu1 }
 0x1a3   : > { %1743 = vst [vmem:[%s2563_s15 + $0x160] sm:$0xff] %v1365_v25  ;;  %1807 = vst [vmem:[%s2563_s15 + $0x360] sm:$0xff] %v1621_v26 }
 0x1a4   : > { %v1367_v29 = vpop.f32.mrf.mxu0  ;;  %v1623_v30 = vpop.f32.mrf.mxu1 }
 0x1a5   : > { %v1368_v31 = vadd.f32 %v2556_v48, %v1367_v29  ;;  %v1624_v32 = vadd.f32 %v2556_v48, %v1623_v30 }
 0x1a6   : > { %v1369_v33 = vpop.f32.mrf.mxu0  ;;  %v1625_v34 = vpop.f32.mrf.mxu1 }
 0x1a7   : > { %1744 = vst [vmem:[%s2563_s15 + $0x168] sm:$0xff] %v1368_v31  ;;  %1808 = vst [vmem:[%s2563_s15 + $0x368] sm:$0xff] %v1624_v32 }
 0x1a8   : > { %v1372_v35 = vpop.f32.mrf.mxu0  ;;  %v1628_v36 = vpop.f32.mrf.mxu1 }
 0x1a9   : > { %v1373_v37 = vadd.f32 %v2556_v48, %v1372_v35  ;;  %v1629_v38 = vadd.f32 %v2556_v48, %v1628_v36 }
 0x1aa   : > { %v1374_v39 = vpop.f32.mrf.mxu0  ;;  %v1630_v40 = vpop.f32.mrf.mxu1 }
 0x1ab   : > { %1745 = vst [vmem:[%s2563_s15 + $0x170] sm:$0xff] %v1373_v37  ;;  %1809 = vst [vmem:[%s2563_s15 + $0x370] sm:$0xff] %v1629_v38  ;;  %v2326_v40 = vld [vmem:[%s2855_s2] ss:$0 sm:$0xff] }
 0x1ac   : > { %v1375_v41 = vpop.f32.mrf.mxu0  ;;  %v1631_v42 = vpop.f32.mrf.mxu1 }
 0x1ad   : > { %v1376_v43 = vadd.f32 %v2556_v48, %v1375_v41  ;;  %v1632_v44 = vadd.f32 %v2556_v48, %v1631_v42 }
 0x1ae   : > { %v1377_v45 = vpop.f32.mrf.mxu0  ;;  %v1633_v46 = vpop.f32.mrf.mxu1 }
 0x1af   : > { %1746 = vst [vmem:[%s2563_s15 + $0x178] sm:$0xff] %v1376_v43  ;;  %1810 = vst [vmem:[%s2563_s15 + $0x378] sm:$0xff] %v1632_v44 }
 0x1b0   : > { %v1380_v47 = vpop.f32.mrf.mxu0  ;;  %v1636_v49 = vpop.f32.mrf.mxu1 }
 0x1b1   : > { %v1381_v50 = vadd.f32 %v2556_v48, %v1380_v47  ;;  %v1637_v51 = vadd.f32 %v2556_v48, %v1636_v49 }
 0x1b2   : > { %v1382_v52 = vpop.f32.mrf.mxu0  ;;  %v1638_v53 = vpop.f32.mrf.mxu1 }
 0x1b3   : > { %1747 = vst [vmem:[%s2563_s15 + $0x180] sm:$0xff] %v1381_v50  ;;  %1811 = vst [vmem:[%s2563_s15 + $0x380] sm:$0xff] %v1637_v51 }
 0x1b4   : > { %v1383_v54 = vpop.f32.mrf.mxu0  ;;  %v1639_v55 = vpop.f32.mrf.mxu1 }
 0x1b5   : > { %v1384_v56 = vadd.f32 %v2556_v48, %v1383_v54  ;;  %v1640_v57 = vadd.f32 %v2556_v48, %v1639_v55 }
 0x1b6   : > { %v1385_v58 = vpop.f32.mrf.mxu0  ;;  %v1641_v59 = vpop.f32.mrf.mxu1 }
 0x1b7   : > { %1748 = vst [vmem:[%s2563_s15 + $0x188] sm:$0xff] %v1384_v56  ;;  %1812 = vst [vmem:[%s2563_s15 + $0x388] sm:$0xff] %v1640_v57 }
 0x1b8   : > { %v1388_v60 = vpop.f32.mrf.mxu0  ;;  %v1644_v61 = vpop.f32.mrf.mxu1 }
 0x1b9   : > { %v1389_v62 = vadd.f32 %v2556_v48, %v1388_v60  ;;  %v1645_v63 = vadd.f32 %v2556_v48, %v1644_v61 }
 0x1ba   : > { %v1390_v0 = vpop.f32.mrf.mxu0  ;;  %v1646_v1 = vpop.f32.mrf.mxu1 }
 0x1bb   : > { %1749 = vst [vmem:[%s2563_s15 + $0x190] sm:$0xff] %v1389_v62  ;;  %1813 = vst [vmem:[%s2563_s15 + $0x390] sm:$0xff] %v1645_v63 }
 0x1bc   : > { %v1391_v2 = vpop.f32.mrf.mxu0  ;;  %v1647_v3 = vpop.f32.mrf.mxu1 }
 0x1bd   : > { %v1392_v4 = vadd.f32 %v2556_v48, %v1391_v2  ;;  %v1648_v5 = vadd.f32 %v2556_v48, %v1647_v3 }
 0x1be   : > { %v1393_v6 = vpop.f32.mrf.mxu0  ;;  %v1649_v7 = vpop.f32.mrf.mxu1 }
 0x1bf   : > { %1750 = vst [vmem:[%s2563_s15 + $0x198] sm:$0xff] %v1392_v4  ;;  %1814 = vst [vmem:[%s2563_s15 + $0x398] sm:$0xff] %v1648_v5 }
 0x1c0   : > { %v1396_v8 = vpop.f32.mrf.mxu0  ;;  %v1652_v9 = vpop.f32.mrf.mxu1 }
 0x1c1   : > { %v1397_v10 = vadd.f32 %v2556_v48, %v1396_v8  ;;  %v1653_v11 = vadd.f32 %v2556_v48, %v1652_v9 }
 0x1c2   : > { %v1398_v12 = vpop.f32.mrf.mxu0  ;;  %v1654_v13 = vpop.f32.mrf.mxu1 }
 0x1c3   : > { %1751 = vst [vmem:[%s2563_s15 + $0x1a0] sm:$0xff] %v1397_v10  ;;  %1815 = vst [vmem:[%s2563_s15 + $0x3a0] sm:$0xff] %v1653_v11 }
 0x1c4   : > { %v1399_v14 = vpop.f32.mrf.mxu0  ;;  %v1655_v15 = vpop.f32.mrf.mxu1 }
 0x1c5   : > { %v1400_v16 = vadd.f32 %v2556_v48, %v1399_v14  ;;  %v1656_v17 = vadd.f32 %v2556_v48, %v1655_v15 }
 0x1c6   : > { %v1401_v18 = vpop.f32.mrf.mxu0  ;;  %v1657_v19 = vpop.f32.mrf.mxu1 }
 0x1c7   : > { %1752 = vst [vmem:[%s2563_s15 + $0x1a8] sm:$0xff] %v1400_v16  ;;  %1816 = vst [vmem:[%s2563_s15 + $0x3a8] sm:$0xff] %v1656_v17 }
 0x1c8   : > { %v1404_v20 = vpop.f32.mrf.mxu0  ;;  %v1660_v21 = vpop.f32.mrf.mxu1 }
 0x1c9   : > { %v1405_v22 = vadd.f32 %v2556_v48, %v1404_v20  ;;  %v1661_v23 = vadd.f32 %v2556_v48, %v1660_v21 }
 0x1ca   : > { %v1406_v24 = vpop.f32.mrf.mxu0  ;;  %v1662_v25 = vpop.f32.mrf.mxu1 }
 0x1cb   : > { %1753 = vst [vmem:[%s2563_s15 + $0x1b0] sm:$0xff] %v1405_v22  ;;  %1817 = vst [vmem:[%s2563_s15 + $0x3b0] sm:$0xff] %v1661_v23 }
 0x1cc   : > { %v1407_v26 = vpop.f32.mrf.mxu0  ;;  %v1663_v27 = vpop.f32.mrf.mxu1 }
 0x1cd   : > { %v1408_v28 = vadd.f32 %v2556_v48, %v1407_v26  ;;  %v1664_v29 = vadd.f32 %v2556_v48, %v1663_v27 }
 0x1ce   : > { %v1409_v30 = vpop.f32.mrf.mxu0  ;;  %v1665_v31 = vpop.f32.mrf.mxu1 }
 0x1cf   : > { %1754 = vst [vmem:[%s2563_s15 + $0x1b8] sm:$0xff] %v1408_v28  ;;  %1818 = vst [vmem:[%s2563_s15 + $0x3b8] sm:$0xff] %v1664_v29 }
 0x1d0   : > { %v1412_v32 = vpop.f32.mrf.mxu0  ;;  %v1668_v33 = vpop.f32.mrf.mxu1 }
 0x1d1   : > { %v1413_v34 = vadd.f32 %v2556_v48, %v1412_v32  ;;  %v1669_v35 = vadd.f32 %v2556_v48, %v1668_v33 }
 0x1d2   : > { %v1414_v36 = vpop.f32.mrf.mxu0  ;;  %v1670_v37 = vpop.f32.mrf.mxu1 }
 0x1d3   : > { %1755 = vst [vmem:[%s2563_s15 + $0x1c0] sm:$0xff] %v1413_v34  ;;  %1819 = vst [vmem:[%s2563_s15 + $0x3c0] sm:$0xff] %v1669_v35 }
 0x1d4   : > { %v1415_v38 = vpop.f32.mrf.mxu0  ;;  %v1671_v39 = vpop.f32.mrf.mxu1 }
 0x1d5   : > { %v1416_v41 = vadd.f32 %v2326_v40, %v1415_v38  ;;  %v1672_v42 = vadd.f32 %v2326_v40, %v1671_v39 }
 0x1d6   : > { %v1417_v43 = vpop.f32.mrf.mxu0  ;;  %v1673_v44 = vpop.f32.mrf.mxu1 }
 0x1d7   : > { %1756 = vst [vmem:[%s2563_s15 + $0x1c8] sm:$0xff] %v1416_v41  ;;  %1820 = vst [vmem:[%s2563_s15 + $0x3c8] sm:$0xff] %v1672_v42 }
 0x1d8   : > { %v1420_v48 = vpop.f32.mrf.mxu0  ;;  %v1676_v45 = vpop.f32.mrf.mxu1 }
 0x1d9   : > { %v1421_v46 = vadd.f32 %v2326_v40, %v1420_v48  ;;  %v1677_v47 = vadd.f32 %v2326_v40, %v1676_v45 }
 0x1da   : > { %v1422_v49 = vpop.f32.mrf.mxu0  ;;  %v1678_v50 = vpop.f32.mrf.mxu1 }
 0x1db   : > { %1757 = vst [vmem:[%s2563_s15 + $0x1d0] sm:$0xff] %v1421_v46  ;;  %1821 = vst [vmem:[%s2563_s15 + $0x3d0] sm:$0xff] %v1677_v47 }
 0x1dc   : > { %v1423_v51 = vpop.f32.mrf.mxu0  ;;  %v1679_v52 = vpop.f32.mrf.mxu1 }
 0x1dd   : > { %v1424_v53 = vadd.f32 %v2326_v40, %v1423_v51  ;;  %v1680_v54 = vadd.f32 %v2326_v40, %v1679_v52 }
 0x1de   : > { %v1425_v55 = vpop.f32.mrf.mxu0  ;;  %v1681_v56 = vpop.f32.mrf.mxu1 }
 0x1df   : > { %1758 = vst [vmem:[%s2563_s15 + $0x1d8] sm:$0xff] %v1424_v53  ;;  %1822 = vst [vmem:[%s2563_s15 + $0x3d8] sm:$0xff] %v1680_v54 }
 0x1e0   : > { %v1428_v57 = vpop.f32.mrf.mxu0  ;;  %v1684_v58 = vpop.f32.mrf.mxu1 }
 0x1e1   : > { %v1429_v59 = vadd.f32 %v2326_v40, %v1428_v57  ;;  %v1685_v60 = vadd.f32 %v2326_v40, %v1684_v58 }
 0x1e2   : > { %v1430_v61 = vpop.f32.mrf.mxu0  ;;  %v1686_v62 = vpop.f32.mrf.mxu1 }
 0x1e3   : > { %1759 = vst [vmem:[%s2563_s15 + $0x1e0] sm:$0xff] %v1429_v59  ;;  %1823 = vst [vmem:[%s2563_s15 + $0x3e0] sm:$0xff] %v1685_v60 }
 0x1e4   : > { %v1431_v63 = vpop.f32.mrf.mxu0  ;;  %v1687_v0 = vpop.f32.mrf.mxu1 }
 0x1e5   : > { %v1432_v1 = vadd.f32 %v2326_v40, %v1431_v63  ;;  %v1688_v2 = vadd.f32 %v2326_v40, %v1687_v0 }
 0x1e6   : > { %v1433_v3 = vpop.f32.mrf.mxu0  ;;  %v1689_v4 = vpop.f32.mrf.mxu1 }
 0x1e7   : > { %1760 = vst [vmem:[%s2563_s15 + $0x1e8] sm:$0xff] %v1432_v1  ;;  %1824 = vst [vmem:[%s2563_s15 + $0x3e8] sm:$0xff] %v1688_v2 }
 0x1e8   : > { %v1436_v5 = vpop.f32.mrf.mxu0  ;;  %v1692_v6 = vpop.f32.mrf.mxu1 }
 0x1e9   : > { %v1437_v7 = vadd.f32 %v2326_v40, %v1436_v5  ;;  %v1693_v8 = vadd.f32 %v2326_v40, %v1692_v6 }
 0x1ea   : > { %v1438_v9 = vpop.f32.mrf.mxu0  ;;  %v1694_v10 = vpop.f32.mrf.mxu1 }
 0x1eb   : > { %1761 = vst [vmem:[%s2563_s15 + $0x1f0] sm:$0xff] %v1437_v7  ;;  %1825 = vst [vmem:[%s2563_s15 + $0x3f0] sm:$0xff] %v1693_v8 }
 0x1ec   : > { %v1439_v11 = vpop.f32.mrf.mxu0  ;;  %v1695_v12 = vpop.f32.mrf.mxu1 }
 0x1ed   : > { %v1440_v13 = vadd.f32 %v2326_v40, %v1439_v11  ;;  %v1696_v14 = vadd.f32 %v2326_v40, %v1695_v12 }
 0x1ee   : > { %v1441_v15 = vpop.f32.mrf.mxu0  ;;  %v1697_v16 = vpop.f32.mrf.mxu1 }
 0x1ef   : > { %1762 = vst [vmem:[%s2563_s15 + $0x1f8] sm:$0xff] %v1440_v13  ;;  %1826 = vst [vmem:[%s2563_s15 + $0x3f8] sm:$0xff] %v1696_v14 }
 0x1f0 PF: > { %s13_s12 = sadd.s32 1, %s2333_s12  }
 0x1f1   : > { %p10_p4 = scmp.ge.s32.totalorder %s13_s12, 4  }
 0x1f3   :  { %12 = sbr.rel (!%p10_p4) target bundleno = 1 (0x1), region = 62 }

</bundles_post_ra>
